<compile_context>
chip_gen: v7x
topology: tpu7x:2x2x1
jax: 0.10.0
libtpu: 0.0.40
codegen_flags: <defaults>
</compile_context>

<pallas_src>
import numpy as np

import jax
import jax.numpy as jnp
from jax.experimental import pallas as pl
from jax.experimental.pallas import tpu as pltpu

# ----------------------------- static model geometry -----------------------------

L1, C1 = 10, 16            # conv1 output: (16, 10)  (input length 10, Cin = 1)
L1P = L1 // 2              # 5   after MaxPool1d(2, 2)
L2, C2 = L1P, 32           # conv2 output: (32, 5)
L2P = L2 // 2              # 2   after second pool -> flattened LSTM input = 64
HID = 50                   # lstm_hidden_dim
GATE_PAD = 56              # HID rounded up to a multiple of 8 (aligned gate rows)
GATE_I, GATE_G, GATE_O = 0, GATE_PAD, 2 * GATE_PAD
LSTM_ROWS = 3 * GATE_PAD   # fused i, g, o gates (forget gate is dead: c0 == 0)
K_MAX = C1 * L1            # 160 — widest contraction dim; width of the weight slab
SP_OFF = 8                 # 8-aligned row offset of the spatial gate inside 'g*'
B_TILE_MAX = 1024          # max batch tile (multiple of 256: v6e/v7x MXU lane passes)

# Packed-slab layout: (name, (rows, contraction)). Row offsets are 16-aligned (bf16).
_OP_SHAPES = (
    ('w1',   (C1 * L1, L1)),            # unrolled conv1                     (160, 10)
    ('g1',   (SP_OFF + L1, C1 * L1)),   # fused channel(avg)+spatial gates   (18, 160)
    ('cb1',  (C1, 1)),                  # channel gate: 1x1 conv back to C1  (16, 1)
    ('ee1',  (C1 * L1, C1 + L1)),       # fused (E_c | E_t) gate broadcast   (160, 26)
    ('s1',   (2 * C1 * L1P, C1 * L1)),  # stacked even/odd maxpool selects   (160, 160)
    ('w2',   (C2 * L2, C1 * L1P)),      # unrolled conv2                     (160, 80)
    ('g2',   (SP_OFF + L2, C2 * L2)),   # fused channel+spatial gates        (13, 160)
    ('cb2',  (C2, 2)),                  # (32, 2)
    ('ee2',  (C2 * L2, C2 + L2)),       # (160, 37)
    ('s2',   (2 * C2 * L2P, C2 * L2)),  # (128, 160)
    ('lstm', (LSTM_ROWS, C2 * L2P)),    # fused i/g/o gates                  (168, 64)
    ('fc1',  (128, HID)),               # (128, 50)
    ('fc2',  (3, 128)),                 # (3, 128)
)


def _build_layout():
    lay, off = {}, 0
    for name, (m, k) in _OP_SHAPES:
        lay[name] = (off, m, k)
        off += -(-m // 16) * 16          # 16-aligned offsets (bf16 sublane packing)
    return lay, off


LAYOUT, R_TOTAL = _build_layout()


# --------------------------------- the kernel --------------------------------

def cnn_lstm_kernel(x_ref, ws_ref, bs_ref, o_ref):
    def mm(name, rhs, bias=True):
        off, m, k = LAYOUT[name]
        w = ws_ref[pl.ds(off, m), pl.ds(0, k)]                     # bf16 weights
        y = jnp.dot(w, rhs.astype(jnp.bfloat16),                   # bf16 x bf16 MXU
                    preferred_element_type=jnp.float32)            # f32 accumulate
        if bias:
            y = y + bs_ref[pl.ds(off, m), :]                       # f32 bias
        return y

    def sig(v):
        # exact sigmoid via tanh: lands on the EUP slot, no VALU divide / exp overflow
        return 0.5 * (jnp.tanh(0.5 * v) + 1.0)

    x = x_ref[...]                                          # (10, BT), batch on lanes

    # conv1 + ReLU (single unrolled matmul)
    h = jnp.maximum(mm('w1', x), 0.0)                       # (160, BT)
    # CBAM1: fused channel+spatial gate pre-activations in ONE matmul
    g = mm('g1', h)                                         # (18, BT)
    gc = jnp.maximum(g[0:1], 0.0)                           # (1, BT)  channel gate mid
    gs = sig(g[SP_OFF:SP_OFF + L1])                         # (10, BT) spatial gate
    off, m, _ = LAYOUT['cb1']                               # 1x1 conv 1->16: K=1 broadcast
    gc = sig(ws_ref[pl.ds(off, m), pl.ds(0, 1)].astype(jnp.float32) * gc
             + bs_ref[pl.ds(off, m), :])                    # (16, BT)
    # fused (E_c | E_t) @ [gc; gs] broadcast, then gate
    h = mm('ee1', jnp.concatenate([gc, gs], axis=0), bias=False) * h
    # MaxPool1d(2,2): stacked even/odd selection matmul + one VPU maximum
    s = mm('s1', h, bias=False)                             # (160, BT)
    h = jnp.maximum(s[0:C1 * L1P], s[C1 * L1P:2 * C1 * L1P])        # (80, BT)

    # conv2 + ReLU
    h = jnp.maximum(mm('w2', h), 0.0)                       # (160, BT)
    g = mm('g2', h)                                         # (13, BT)
    gc = jnp.maximum(g[0:2], 0.0)                           # (2, BT)
    gs = sig(g[SP_OFF:SP_OFF + L2])                         # (5, BT)
    gc = sig(mm('cb2', gc))                                 # (32, BT)
    h = mm('ee2', jnp.concatenate([gc, gs], axis=0), bias=False) * h
    s = mm('s2', h, bias=False)                             # (128, BT)
    h = jnp.maximum(s[0:C2 * L2P], s[C2 * L2P:2 * C2 * L2P])        # (64, BT) == view(B,1,-1)

    # LSTM, seq_len == 1, zero initial state: only W_ih @ x + (b_ih + b_hh).
    # Forget gate is provably dead (c0 == 0) and was dropped from the fused weights.
    gates = mm('lstm', h)                                   # (168, BT)
    i_g = sig(gates[GATE_I:GATE_I + HID])
    g_g = jnp.tanh(gates[GATE_G:GATE_G + HID])
    o_g = sig(gates[GATE_O:GATE_O + HID])
    h = o_g * jnp.tanh(i_g * g_g)                           # (50, BT)
    # Attention over a length-1 sequence is the identity -> elided.

    # fc1 -> ReLU -> dropout(identity at inference) -> fc2 -> log_softmax(dim=1)
    z = jnp.maximum(mm('fc1', h), 0.0)                      # (128, BT)
    logits = mm('fc2', z)                                   # (3, BT)
    mx = jnp.max(logits, axis=0, keepdims=True)
    zc = logits - mx
    lse = jnp.log(jnp.sum(jnp.exp(zc), axis=0, keepdims=True))
    o_ref[...] = (zc - lse).astype(o_ref.dtype)


# --------------------------------- wrapper ------------------------------------

def _pick_b_tile(B, max_tile=B_TILE_MAX):
    """>=256 lanes per MXU pass; aim for >=2 grid steps (v7x's two TCs) once B allows;
    cap at 1024 so (160, B_TILE) f32 temporaries stay a few MB even on v7x's 64 MiB."""
    half = -(-B // 2)
    tile = -(-half // 256) * 256
    return int(max(256, min(max_tile, tile)))


def cnn_lstm_forward(x, ws, bs, b_tile=None):
    """x: (B, 1, 10) float32 (PyTorch NCW). Returns (B, 3) log-probabilities."""
    B = x.shape[0]
    if b_tile is None:
        b_tile = _pick_b_tile(B)
    n_tiles = pl.cdiv(B, b_tile)
    Bp = n_tiles * b_tile
    xt = jnp.transpose(x[:, 0, :])                          # (10, B): batch on lanes
    xt = jnp.pad(xt, ((0, 0), (0, Bp - B)))                 # zero-pad -> finite outputs

    out = pl.pallas_call(
        cnn_lstm_kernel,
        out_shape=jax.ShapeDtypeStruct((3, Bp), jnp.float32),
        grid_spec=pltpu.PrefetchScalarGridSpec(
            num_scalar_prefetch=0,
            grid=(n_tiles,),
            in_specs=[
                pl.BlockSpec((L1, b_tile), lambda b: (0, b)),          # input tile
                pl.BlockSpec(ws.shape, lambda b: (0, 0)),              # bf16 weight slab
                pl.BlockSpec(bs.shape, lambda b: (0, 0)),              # f32 bias slab
            ],
            out_specs=pl.BlockSpec((3, b_tile), lambda b: (0, b)),     # lane-dense out
        ),
        compiler_params=pltpu.CompilerParams(
            dimension_semantics=("parallel",),
            vmem_limit_bytes=48 * 1024 * 1024),             # > v5e's 16 MiB default
    )(xt, ws, bs)
    return out[:, :B].T                                     # (B, 3)


# ---------------------- parameters (deterministic, synthetic) -----------------

def init_torch_params(key):
    shapes = {
        'conv1_w': (16, 1, 3), 'conv1_b': (16,),
        'cb1_a_w': (1, 16, 1), 'cb1_a_b': (1,),
        'cb1_b_w': (16, 1, 1), 'cb1_b_b': (16,),
        'cb1_s_w': (1, 16, 7), 'cb1_s_b': (1,),
        'conv2_w': (32, 16, 3), 'conv2_b': (32,),
        'cb2_a_w': (2, 32, 1), 'cb2_a_b': (2,),
        'cb2_b_w': (32, 2, 1), 'cb2_b_b': (32,),
        'cb2_s_w': (1, 32, 7), 'cb2_s_b': (1,),
        'lstm_w_ih': (4 * HID, 64), 'lstm_b_ih': (4 * HID,), 'lstm_b_hh': (4 * HID,),
        'attn_w': (1, HID),
        'fc1_w': (128, HID), 'fc1_b': (128,),
        'fc2_w': (3, 128), 'fc2_b': (3,),
    }
    keys = jax.random.split(key, len(shapes))
    return {n: 0.1 * jax.random.normal(k, s, jnp.float32)
            for (n, s), k in zip(shapes.items(), keys)}


def to_kernel_slabs(P):
    """Unroll convs / CBAM / pools into dense matrices and pack into two slabs.
    Ws is returned in bfloat16 (MXU-native); Bs stays float32."""
    Pn = {k: np.asarray(v, np.float32) for k, v in P.items()}

    def conv_full(w, b, L, pad):
        # w: (Cout, Cin, k) -> dense (Cout*L, Cin*L) acting on channel-major flatten.
        Cout, Cin, kk = w.shape
        M = np.zeros((Cout, L, Cin, L), np.float32)
        for d in range(kk):
            for t in range(L):
                s = t + d - pad
                if 0 <= s < L:
                    M[:, t, :, s] += w[:, :, d]
        return M.reshape(Cout * L, Cin * L), np.repeat(b, L)

    def pool_select(C, L):
        Lo = L // 2
        Sa = np.zeros((C * Lo, C * L), np.float32)
        Sb = np.zeros((C * Lo, C * L), np.float32)
        for c in range(C):
            for j in range(Lo):
                Sa[c * Lo + j, c * L + 2 * j] = 1.0
                Sb[c * Lo + j, c * L + 2 * j + 1] = 1.0
        return np.concatenate([Sa, Sb], axis=0)

    # AdaptiveAvgPool1d(1) folded into the channel gate's first 1x1 conv.
    avg1 = np.kron(np.eye(C1, dtype=np.float32), np.ones((1, L1), np.float32) / L1)
    avg2 = np.kron(np.eye(C2, dtype=np.float32), np.ones((1, L2), np.float32) / L2)

    w1, b1 = conv_full(Pn['conv1_w'], Pn['conv1_b'], L1, 1)
    sp1, sp1b = conv_full(Pn['cb1_s_w'], Pn['cb1_s_b'], L1, 3)
    w2, b2 = conv_full(Pn['conv2_w'], Pn['conv2_b'], L2, 1)
    sp2, sp2b = conv_full(Pn['cb2_s_w'], Pn['cb2_s_b'], L2, 3)

    ca1 = Pn['cb1_a_w'][:, :, 0] @ avg1                     # (1, 160)
    cb1 = Pn['cb1_b_w'][:, :, 0]                            # (16, 1)
    ca2 = Pn['cb2_a_w'][:, :, 0] @ avg2                     # (2, 160)
    cb2 = Pn['cb2_b_w'][:, :, 0]                            # (32, 2)

    # Fused channel+spatial gate blocks (ca at row 0, sp at 8-aligned SP_OFF).
    g1_w = np.zeros((SP_OFF + L1, C1 * L1), np.float32)
    g1_b = np.zeros((SP_OFF + L1,), np.float32)
    g1_w[0:1] = ca1; g1_b[0:1] = Pn['cb1_a_b']
    g1_w[SP_OFF:SP_OFF + L1] = sp1; g1_b[SP_OFF:SP_OFF + L1] = sp1b

    g2_w = np.zeros((SP_OFF + L2, C2 * L2), np.float32)
    g2_b = np.zeros((SP_OFF + L2,), np.float32)
    g2_w[0:2] = ca2; g2_b[0:2] = Pn['cb2_a_b']
    g2_w[SP_OFF:SP_OFF + L2] = sp2; g2_b[SP_OFF:SP_OFF + L2] = sp2b

    # Fused broadcast matrices: [E_c | E_t]  ->  one matmul against [gc; gs].
    ec1 = np.repeat(np.eye(C1, dtype=np.float32), L1, axis=0)   # (160, 16)
    et1 = np.tile(np.eye(L1, dtype=np.float32), (C1, 1))        # (160, 10)
    ec2 = np.repeat(np.eye(C2, dtype=np.float32), L2, axis=0)   # (160, 32)
    et2 = np.tile(np.eye(L2, dtype=np.float32), (C2, 1))        # (160, 5)
    ee1 = np.concatenate([ec1, et1], axis=1)                    # (160, 26)
    ee2 = np.concatenate([ec2, et2], axis=1)                    # (160, 37)

    # Fused LSTM gates (PyTorch order i, f, g, o); forget gate dropped (c0 == 0).
    w_ih = Pn['lstm_w_ih']
    b_l = Pn['lstm_b_ih'] + Pn['lstm_b_hh']
    lstm_w = np.zeros((LSTM_ROWS, C2 * L2P), np.float32)
    lstm_b = np.zeros((LSTM_ROWS,), np.float32)
    for dst, src in ((GATE_I, 0), (GATE_G, 2), (GATE_O, 3)):
        lstm_w[dst:dst + HID] = w_ih[src * HID:(src + 1) * HID]
        lstm_b[dst:dst + HID] = b_l[src * HID:(src + 1) * HID]

    mats = {
        'w1': (w1, b1), 'g1': (g1_w, g1_b), 'cb1': (cb1, Pn['cb1_b_b']),
        'ee1': (ee1, None), 's1': (pool_select(C1, L1), None),
        'w2': (w2, b2), 'g2': (g2_w, g2_b), 'cb2': (cb2, Pn['cb2_b_b']),
        'ee2': (ee2, None), 's2': (pool_select(C2, L2), None),
        'lstm': (lstm_w, lstm_b),
        'fc1': (Pn['fc1_w'], Pn['fc1_b']), 'fc2': (Pn['fc2_w'], Pn['fc2_b']),
    }
    # Note: attn_w is unused — attention over a length-1 sequence is the identity.

    Ws = np.zeros((R_TOTAL, K_MAX), np.float32)
    Bs = np.zeros((R_TOTAL, 1), np.float32)
    for name, (off, m, k) in LAYOUT.items():
        w, b = mats[name]
        assert w.shape == (m, k), (name, w.shape, (m, k))
        Ws[off:off + m, :k] = w
        if b is not None:
            Bs[off:off + m, 0] = b
    return jnp.asarray(Ws, dtype=jnp.bfloat16), jnp.asarray(Bs)


# ------------------------- pure-JAX reference (check) --------------------------

def reference_forward(x, P):
    def conv1d(v, w, b, pad):
        y = jax.lax.conv_general_dilated(
            v, w, window_strides=(1,), padding=[(pad, pad)],
            dimension_numbers=('NCH', 'OIH', 'NCH'))
        return y + b[None, :, None]

    def maxpool(v):
        Bb, C, L = v.shape
        Lo = L // 2
        return v[..., :2 * Lo].reshape(Bb, C, Lo, 2).max(-1)

    def cbam(v, aw, ab, bw, bb, sw, sb):
        avg = jnp.mean(v, axis=2, keepdims=True)
        g = jax.nn.relu(conv1d(avg, aw, ab, 0))
        g = jax.nn.sigmoid(conv1d(g, bw, bb, 0))
        s = jax.nn.sigmoid(conv1d(v, sw, sb, 3))
        return g * v + s * v

    B = x.shape[0]
    h = jax.nn.relu(conv1d(x, P['conv1_w'], P['conv1_b'], 1))
    h = cbam(h, P['cb1_a_w'], P['cb1_a_b'], P['cb1_b_w'], P['cb1_b_b'],
             P['cb1_s_w'], P['cb1_s_b'])
    h = maxpool(h)
    h = jax.nn.relu(conv1d(h, P['conv2_w'], P['conv2_b'], 1))
    h = cbam(h, P['cb2_a_w'], P['cb2_a_b'], P['cb2_b_w'], P['cb2_b_b'],
             P['cb2_s_w'], P['cb2_s_b'])
    h = maxpool(h)                                        # (B, 32, 2)
    xf = h.reshape(B, 1, -1)                              # (B, 1, 64)
    gates = xf[:, 0, :] @ P['lstm_w_ih'].T + P['lstm_b_ih'] + P['lstm_b_hh']
    i = jax.nn.sigmoid(gates[:, :HID])
    f = jax.nn.sigmoid(gates[:, HID:2 * HID])
    g = jnp.tanh(gates[:, 2 * HID:3 * HID])
    o = jax.nn.sigmoid(gates[:, 3 * HID:])
    hl = o * jnp.tanh(i * g + 0.0 * f)                    # (B, 50)
    lstm_out = hl[:, None, :]
    scores = jnp.einsum('bsh,oh->bso', lstm_out, P['attn_w'])   # (B, 1, 1)
    aw = jax.nn.softmax(scores, axis=1)
    attn = jnp.einsum('bso,bsh->boh', aw, lstm_out)[:, 0, :]    # (B, 50)
    z = jax.nn.relu(attn @ P['fc1_w'].T + P['fc1_b'])
    logits = z @ P['fc2_w'].T + P['fc2_b']
    return jax.nn.log_softmax(logits, axis=1)


if __name__ == "__main__":
    key = jax.random.PRNGKey(0)
    kx, kp = jax.random.split(key)
    B = 4
    x = jax.random.normal(kx, (B, 1, L1), jnp.float32)    # (batch, 1 channel, 10)

    P = init_torch_params(kp)
    ws, bs = to_kernel_slabs(P)

    out = jax.block_until_ready(cnn_lstm_forward(x, ws, bs))
    ref = jax.block_until_ready(reference_forward(x, P))

    assert out.shape == (B, 3), out.shape
    assert bool(jnp.all(jnp.isfinite(out)))
    # bf16 MXU operands (f32 accumulation) -> tolerance loosened vs the f32 reference.
    max_err = float(jnp.max(jnp.abs(out - ref)))
    assert bool(jnp.allclose(out, ref, rtol=2.5e-2, atol=2.5e-2)), (max_err, out, ref)
    print("KERNEL_OK")
</pallas_src>

<mosaic_0001>
module attributes {stable_mosaic.version = 11 : i64} {
  func.func @cnn_lstm_kernel(%arg0: i32, %arg1: memref<10x256xf32, #tpu.memory_space<vmem>>, %arg2: memref<1344x160xbf16, #tpu.memory_space<vmem>>, %arg3: memref<1344x1xf32, #tpu.memory_space<vmem>>, %arg4: memref<3x256xf32, #tpu.memory_space<vmem>>) attributes {dimension_semantics = [#tpu.dimension_semantics<parallel>], iteration_bounds = array<i64: 1>, scalar_prefetch = 0 : i64, scratch_operands = 0 : i64, tpu.core_type = #tpu.core_type<tc>, window_params = [{transform_indices = @transform_0, window_bounds = array<i64: 10, 256>}, {pipeline_mode = #tpu.pipeline_mode<synchronous>, transform_indices = @transform_1, window_bounds = array<i64: 1344, 160>}, {pipeline_mode = #tpu.pipeline_mode<synchronous>, transform_indices = @transform_2, window_bounds = array<i64: 1344, 1>}, {transform_indices = @transform_3, window_bounds = array<i64: 3, 256>}]} {
    %c0 = arith.constant 0 : index
    %c0_0 = arith.constant 0 : index
    %0 = vector.load %arg1[%c0, %c0_0] : memref<10x256xf32, #tpu.memory_space<vmem>>, vector<10x256xf32>
    %c0_1 = arith.constant 0 : index
    %c0_2 = arith.constant 0 : index
    %1 = vector.load %arg2[%c0_1, %c0_2] : memref<1344x160xbf16, #tpu.memory_space<vmem>>, vector<160x10xbf16>
    %2 = arith.truncf %0 : vector<10x256xf32> to vector<10x256xbf16>
    %cst = arith.constant dense<0.000000e+00> : vector<160x256xf32>
    %3 = tpu.matmul %1, %2, %cst {dimension_numbers = #tpu.dot_dimension_numbers<[1], [0], [0], [1], [0, 0, 1, 1], [], []>} : vector<160x10xbf16>, vector<10x256xbf16>, vector<160x256xf32> -> vector<160x256xf32>
    %c0_3 = arith.constant 0 : index
    %c0_4 = arith.constant 0 : index
    %4 = vector.load %arg3[%c0_3, %c0_4] : memref<1344x1xf32, #tpu.memory_space<vmem>>, vector<160x1xf32>
    %5 = vector.broadcast %4 : vector<160x1xf32> to vector<160x256xf32>
    %6 = arith.addf %3, %5 : vector<160x256xf32>
    %cst_5 = arith.constant 0.000000e+00 : f32
    %7 = vector.broadcast %cst_5 : f32 to vector<160x256xf32>
    %8 = arith.maximumf %6, %7 : vector<160x256xf32>
    %c160 = arith.constant 160 : index
    %c0_6 = arith.constant 0 : index
    %9 = vector.load %arg2[%c160, %c0_6] : memref<1344x160xbf16, #tpu.memory_space<vmem>>, vector<18x160xbf16>
    %10 = arith.truncf %8 : vector<160x256xf32> to vector<160x256xbf16>
    %cst_7 = arith.constant dense<0.000000e+00> : vector<18x256xf32>
    %11 = tpu.matmul %9, %10, %cst_7 {dimension_numbers = #tpu.dot_dimension_numbers<[1], [0], [0], [1], [0, 0, 1, 1], [], []>} : vector<18x160xbf16>, vector<160x256xbf16>, vector<18x256xf32> -> vector<18x256xf32>
    %c160_8 = arith.constant 160 : index
    %c0_9 = arith.constant 0 : index
    %12 = vector.load %arg3[%c160_8, %c0_9] : memref<1344x1xf32, #tpu.memory_space<vmem>>, vector<18x1xf32>
    %13 = vector.broadcast %12 : vector<18x1xf32> to vector<18x256xf32>
    %14 = arith.addf %11, %13 : vector<18x256xf32>
    %15 = vector.extract_strided_slice %14 {offsets = [0, 0], sizes = [1, 256], strides = [1, 1]} : vector<18x256xf32> to vector<1x256xf32>
    %cst_10 = arith.constant 0.000000e+00 : f32
    %16 = vector.broadcast %cst_10 : f32 to vector<1x256xf32>
    %17 = arith.maximumf %15, %16 : vector<1x256xf32>
    %18 = vector.extract_strided_slice %14 {offsets = [8, 0], sizes = [10, 256], strides = [1, 1]} : vector<18x256xf32> to vector<10x256xf32>
    %cst_11 = arith.constant 5.000000e-01 : f32
    %19 = vector.broadcast %cst_11 : f32 to vector<10x256xf32>
    %20 = arith.mulf %19, %18 : vector<10x256xf32>
    %21 = math.tanh %20 : vector<10x256xf32>
    %cst_12 = arith.constant 1.000000e+00 : f32
    %22 = vector.broadcast %cst_12 : f32 to vector<10x256xf32>
    %23 = arith.addf %21, %22 : vector<10x256xf32>
    %cst_13 = arith.constant 5.000000e-01 : f32
    %24 = vector.broadcast %cst_13 : f32 to vector<10x256xf32>
    %25 = arith.mulf %24, %23 : vector<10x256xf32>
    %c192 = arith.constant 192 : index
    %c0_14 = arith.constant 0 : index
    %26 = vector.load %arg2[%c192, %c0_14] : memref<1344x160xbf16, #tpu.memory_space<vmem>>, vector<16x1xbf16>
    %27 = arith.extf %26 : vector<16x1xbf16> to vector<16x1xf32>
    %28 = vector.broadcast %27 : vector<16x1xf32> to vector<16x256xf32>
    %29 = vector.broadcast %17 : vector<1x256xf32> to vector<16x256xf32>
    %30 = arith.mulf %28, %29 : vector<16x256xf32>
    %c192_15 = arith.constant 192 : index
    %c0_16 = arith.constant 0 : index
    %31 = vector.load %arg3[%c192_15, %c0_16] : memref<1344x1xf32, #tpu.memory_space<vmem>>, vector<16x1xf32>
    %32 = vector.broadcast %31 : vector<16x1xf32> to vector<16x256xf32>
    %33 = arith.addf %30, %32 : vector<16x256xf32>
    %cst_17 = arith.constant 5.000000e-01 : f32
    %34 = vector.broadcast %cst_17 : f32 to vector<16x256xf32>
    %35 = arith.mulf %34, %33 : vector<16x256xf32>
    %36 = math.tanh %35 : vector<16x256xf32>
    %cst_18 = arith.constant 1.000000e+00 : f32
    %37 = vector.broadcast %cst_18 : f32 to vector<16x256xf32>
    %38 = arith.addf %36, %37 : vector<16x256xf32>
    %cst_19 = arith.constant 5.000000e-01 : f32
    %39 = vector.broadcast %cst_19 : f32 to vector<16x256xf32>
    %40 = arith.mulf %39, %38 : vector<16x256xf32>
    %41 = tpu.concatenate %40, %25 in 0 : vector<16x256xf32>, vector<10x256xf32> -> vector<26x256xf32>
    %c208 = arith.constant 208 : index
    %c0_20 = arith.constant 0 : index
    %42 = vector.load %arg2[%c208, %c0_20] : memref<1344x160xbf16, #tpu.memory_space<vmem>>, vector<160x26xbf16>
    %43 = arith.truncf %41 : vector<26x256xf32> to vector<26x256xbf16>
    %cst_21 = arith.constant dense<0.000000e+00> : vector<160x256xf32>
    %44 = tpu.matmul %42, %43, %cst_21 {dimension_numbers = #tpu.dot_dimension_numbers<[1], [0], [0], [1], [0, 0, 1, 1], [], []>} : vector<160x26xbf16>, vector<26x256xbf16>, vector<160x256xf32> -> vector<160x256xf32>
    %45 = arith.mulf %44, %8 : vector<160x256xf32>
    %c368 = arith.constant 368 : index
    %c0_22 = arith.constant 0 : index
    %46 = vector.load %arg2[%c368, %c0_22] : memref<1344x160xbf16, #tpu.memory_space<vmem>>, vector<160x160xbf16>
    %47 = arith.truncf %45 : vector<160x256xf32> to vector<160x256xbf16>
    %cst_23 = arith.constant dense<0.000000e+00> : vector<160x256xf32>
    %48 = tpu.matmul %46, %47, %cst_23 {dimension_numbers = #tpu.dot_dimension_numbers<[1], [0], [0], [1], [0, 0, 1, 1], [], []>} : vector<160x160xbf16>, vector<160x256xbf16>, vector<160x256xf32> -> vector<160x256xf32>
    %49 = vector.extract_strided_slice %48 {offsets = [0, 0], sizes = [80, 256], strides = [1, 1]} : vector<160x256xf32> to vector<80x256xf32>
    %50 = vector.extract_strided_slice %48 {offsets = [80, 0], sizes = [80, 256], strides = [1, 1]} : vector<160x256xf32> to vector<80x256xf32>
    %51 = arith.maximumf %49, %50 : vector<80x256xf32>
    %c528 = arith.constant 528 : index
    %c0_24 = arith.constant 0 : index
    %52 = vector.load %arg2[%c528, %c0_24] : memref<1344x160xbf16, #tpu.memory_space<vmem>>, vector<160x80xbf16>
    %53 = arith.truncf %51 : vector<80x256xf32> to vector<80x256xbf16>
    %cst_25 = arith.constant dense<0.000000e+00> : vector<160x256xf32>
    %54 = tpu.matmul %52, %53, %cst_25 {dimension_numbers = #tpu.dot_dimension_numbers<[1], [0], [0], [1], [0, 0, 1, 1], [], []>} : vector<160x80xbf16>, vector<80x256xbf16>, vector<160x256xf32> -> vector<160x256xf32>
    %c528_26 = arith.constant 528 : index
    %c0_27 = arith.constant 0 : index
    %55 = vector.load %arg3[%c528_26, %c0_27] : memref<1344x1xf32, #tpu.memory_space<vmem>>, vector<160x1xf32>
    %56 = vector.broadcast %55 : vector<160x1xf32> to vector<160x256xf32>
    %57 = arith.addf %54, %56 : vector<160x256xf32>
    %cst_28 = arith.constant 0.000000e+00 : f32
    %58 = vector.broadcast %cst_28 : f32 to vector<160x256xf32>
    %59 = arith.maximumf %57, %58 : vector<160x256xf32>
    %c688 = arith.constant 688 : index
    %c0_29 = arith.constant 0 : index
    %60 = vector.load %arg2[%c688, %c0_29] : memref<1344x160xbf16, #tpu.memory_space<vmem>>, vector<13x160xbf16>
    %61 = arith.truncf %59 : vector<160x256xf32> to vector<160x256xbf16>
    %cst_30 = arith.constant dense<0.000000e+00> : vector<13x256xf32>
    %62 = tpu.matmul %60, %61, %cst_30 {dimension_numbers = #tpu.dot_dimension_numbers<[1], [0], [0], [1], [0, 0, 1, 1], [], []>} : vector<13x160xbf16>, vector<160x256xbf16>, vector<13x256xf32> -> vector<13x256xf32>
    %c688_31 = arith.constant 688 : index
    %c0_32 = arith.constant 0 : index
    %63 = vector.load %arg3[%c688_31, %c0_32] : memref<1344x1xf32, #tpu.memory_space<vmem>>, vector<13x1xf32>
    %64 = vector.broadcast %63 : vector<13x1xf32> to vector<13x256xf32>
    %65 = arith.addf %62, %64 : vector<13x256xf32>
    %66 = vector.extract_strided_slice %65 {offsets = [0, 0], sizes = [2, 256], strides = [1, 1]} : vector<13x256xf32> to vector<2x256xf32>
    %cst_33 = arith.constant 0.000000e+00 : f32
    %67 = vector.broadcast %cst_33 : f32 to vector<2x256xf32>
    %68 = arith.maximumf %66, %67 : vector<2x256xf32>
    %69 = vector.extract_strided_slice %65 {offsets = [8, 0], sizes = [5, 256], strides = [1, 1]} : vector<13x256xf32> to vector<5x256xf32>
    %cst_34 = arith.constant 5.000000e-01 : f32
    %70 = vector.broadcast %cst_34 : f32 to vector<5x256xf32>
    %71 = arith.mulf %70, %69 : vector<5x256xf32>
    %72 = math.tanh %71 : vector<5x256xf32>
    %cst_35 = arith.constant 1.000000e+00 : f32
    %73 = vector.broadcast %cst_35 : f32 to vector<5x256xf32>
    %74 = arith.addf %72, %73 : vector<5x256xf32>
    %cst_36 = arith.constant 5.000000e-01 : f32
    %75 = vector.broadcast %cst_36 : f32 to vector<5x256xf32>
    %76 = arith.mulf %75, %74 : vector<5x256xf32>
    %c704 = arith.constant 704 : index
    %c0_37 = arith.constant 0 : index
    %77 = vector.load %arg2[%c704, %c0_37] : memref<1344x160xbf16, #tpu.memory_space<vmem>>, vector<32x2xbf16>
    %78 = arith.truncf %68 : vector<2x256xf32> to vector<2x256xbf16>
    %cst_38 = arith.constant dense<0.000000e+00> : vector<32x256xf32>
    %79 = tpu.matmul %77, %78, %cst_38 {dimension_numbers = #tpu.dot_dimension_numbers<[1], [0], [0], [1], [0, 0, 1, 1], [], []>} : vector<32x2xbf16>, vector<2x256xbf16>, vector<32x256xf32> -> vector<32x256xf32>
    %c704_39 = arith.constant 704 : index
    %c0_40 = arith.constant 0 : index
    %80 = vector.load %arg3[%c704_39, %c0_40] : memref<1344x1xf32, #tpu.memory_space<vmem>>, vector<32x1xf32>
    %81 = vector.broadcast %80 : vector<32x1xf32> to vector<32x256xf32>
    %82 = arith.addf %79, %81 : vector<32x256xf32>
    %cst_41 = arith.constant 5.000000e-01 : f32
    %83 = vector.broadcast %cst_41 : f32 to vector<32x256xf32>
    %84 = arith.mulf %83, %82 : vector<32x256xf32>
    %85 = math.tanh %84 : vector<32x256xf32>
    %cst_42 = arith.constant 1.000000e+00 : f32
    %86 = vector.broadcast %cst_42 : f32 to vector<32x256xf32>
    %87 = arith.addf %85, %86 : vector<32x256xf32>
    %cst_43 = arith.constant 5.000000e-01 : f32
    %88 = vector.broadcast %cst_43 : f32 to vector<32x256xf32>
    %89 = arith.mulf %88, %87 : vector<32x256xf32>
    %90 = tpu.concatenate %89, %76 in 0 : vector<32x256xf32>, vector<5x256xf32> -> vector<37x256xf32>
    %c736 = arith.constant 736 : index
    %c0_44 = arith.constant 0 : index
    %91 = vector.load %arg2[%c736, %c0_44] : memref<1344x160xbf16, #tpu.memory_space<vmem>>, vector<160x37xbf16>
    %92 = arith.truncf %90 : vector<37x256xf32> to vector<37x256xbf16>
    %cst_45 = arith.constant dense<0.000000e+00> : vector<160x256xf32>
    %93 = tpu.matmul %91, %92, %cst_45 {dimension_numbers = #tpu.dot_dimension_numbers<[1], [0], [0], [1], [0, 0, 1, 1], [], []>} : vector<160x37xbf16>, vector<37x256xbf16>, vector<160x256xf32> -> vector<160x256xf32>
    %94 = arith.mulf %93, %59 : vector<160x256xf32>
    %c896 = arith.constant 896 : index
    %c0_46 = arith.constant 0 : index
    %95 = vector.load %arg2[%c896, %c0_46] : memref<1344x160xbf16, #tpu.memory_space<vmem>>, vector<128x160xbf16>
    %96 = arith.truncf %94 : vector<160x256xf32> to vector<160x256xbf16>
    %cst_47 = arith.constant dense<0.000000e+00> : vector<128x256xf32>
    %97 = tpu.matmul %95, %96, %cst_47 {dimension_numbers = #tpu.dot_dimension_numbers<[1], [0], [0], [1], [0, 0, 1, 1], [], []>} : vector<128x160xbf16>, vector<160x256xbf16>, vector<128x256xf32> -> vector<128x256xf32>
    %98 = vector.extract_strided_slice %97 {offsets = [0, 0], sizes = [64, 256], strides = [1, 1]} : vector<128x256xf32> to vector<64x256xf32>
    %99 = vector.extract_strided_slice %97 {offsets = [64, 0], sizes = [64, 256], strides = [1, 1]} : vector<128x256xf32> to vector<64x256xf32>
    %100 = arith.maximumf %98, %99 : vector<64x256xf32>
    %c1024 = arith.constant 1024 : index
    %c0_48 = arith.constant 0 : index
    %101 = vector.load %arg2[%c1024, %c0_48] : memref<1344x160xbf16, #tpu.memory_space<vmem>>, vector<168x64xbf16>
    %102 = arith.truncf %100 : vector<64x256xf32> to vector<64x256xbf16>
    %cst_49 = arith.constant dense<0.000000e+00> : vector<168x256xf32>
    %103 = tpu.matmul %101, %102, %cst_49 {dimension_numbers = #tpu.dot_dimension_numbers<[1], [0], [0], [1], [0, 0, 1, 1], [], []>} : vector<168x64xbf16>, vector<64x256xbf16>, vector<168x256xf32> -> vector<168x256xf32>
    %c1024_50 = arith.constant 1024 : index
    %c0_51 = arith.constant 0 : index
    %104 = vector.load %arg3[%c1024_50, %c0_51] : memref<1344x1xf32, #tpu.memory_space<vmem>>, vector<168x1xf32>
    %105 = vector.broadcast %104 : vector<168x1xf32> to vector<168x256xf32>
    %106 = arith.addf %103, %105 : vector<168x256xf32>
    %107 = vector.extract_strided_slice %106 {offsets = [0, 0], sizes = [50, 256], strides = [1, 1]} : vector<168x256xf32> to vector<50x256xf32>
    %cst_52 = arith.constant 5.000000e-01 : f32
    %108 = vector.broadcast %cst_52 : f32 to vector<50x256xf32>
    %109 = arith.mulf %108, %107 : vector<50x256xf32>
    %110 = math.tanh %109 : vector<50x256xf32>
    %cst_53 = arith.constant 1.000000e+00 : f32
    %111 = vector.broadcast %cst_53 : f32 to vector<50x256xf32>
    %112 = arith.addf %110, %111 : vector<50x256xf32>
    %cst_54 = arith.constant 5.000000e-01 : f32
    %113 = vector.broadcast %cst_54 : f32 to vector<50x256xf32>
    %114 = arith.mulf %113, %112 : vector<50x256xf32>
    %115 = vector.extract_strided_slice %106 {offsets = [56, 0], sizes = [50, 256], strides = [1, 1]} : vector<168x256xf32> to vector<50x256xf32>
    %116 = math.tanh %115 : vector<50x256xf32>
    %117 = vector.extract_strided_slice %106 {offsets = [112, 0], sizes = [50, 256], strides = [1, 1]} : vector<168x256xf32> to vector<50x256xf32>
    %cst_55 = arith.constant 5.000000e-01 : f32
    %118 = vector.broadcast %cst_55 : f32 to vector<50x256xf32>
    %119 = arith.mulf %118, %117 : vector<50x256xf32>
    %120 = math.tanh %119 : vector<50x256xf32>
    %cst_56 = arith.constant 1.000000e+00 : f32
    %121 = vector.broadcast %cst_56 : f32 to vector<50x256xf32>
    %122 = arith.addf %120, %121 : vector<50x256xf32>
    %cst_57 = arith.constant 5.000000e-01 : f32
    %123 = vector.broadcast %cst_57 : f32 to vector<50x256xf32>
    %124 = arith.mulf %123, %122 : vector<50x256xf32>
    %125 = arith.mulf %114, %116 : vector<50x256xf32>
    %126 = math.tanh %125 : vector<50x256xf32>
    %127 = arith.mulf %124, %126 : vector<50x256xf32>
    %c1200 = arith.constant 1200 : index
    %c0_58 = arith.constant 0 : index
    %128 = vector.load %arg2[%c1200, %c0_58] : memref<1344x160xbf16, #tpu.memory_space<vmem>>, vector<128x50xbf16>
    %129 = arith.truncf %127 : vector<50x256xf32> to vector<50x256xbf16>
    %cst_59 = arith.constant dense<0.000000e+00> : vector<128x256xf32>
    %130 = tpu.matmul %128, %129, %cst_59 {dimension_numbers = #tpu.dot_dimension_numbers<[1], [0], [0], [1], [0, 0, 1, 1], [], []>} : vector<128x50xbf16>, vector<50x256xbf16>, vector<128x256xf32> -> vector<128x256xf32>
    %c1200_60 = arith.constant 1200 : index
    %c0_61 = arith.constant 0 : index
    %131 = vector.load %arg3[%c1200_60, %c0_61] : memref<1344x1xf32, #tpu.memory_space<vmem>>, vector<128x1xf32>
    %132 = vector.broadcast %131 : vector<128x1xf32> to vector<128x256xf32>
    %133 = arith.addf %130, %132 : vector<128x256xf32>
    %cst_62 = arith.constant 0.000000e+00 : f32
    %134 = vector.broadcast %cst_62 : f32 to vector<128x256xf32>
    %135 = arith.maximumf %133, %134 : vector<128x256xf32>
    %c1328 = arith.constant 1328 : index
    %c0_63 = arith.constant 0 : index
    %136 = vector.load %arg2[%c1328, %c0_63] : memref<1344x160xbf16, #tpu.memory_space<vmem>>, vector<3x128xbf16>
    %137 = arith.truncf %135 : vector<128x256xf32> to vector<128x256xbf16>
    %cst_64 = arith.constant dense<0.000000e+00> : vector<3x256xf32>
    %138 = tpu.matmul %136, %137, %cst_64 {dimension_numbers = #tpu.dot_dimension_numbers<[1], [0], [0], [1], [0, 0, 1, 1], [], []>} : vector<3x128xbf16>, vector<128x256xbf16>, vector<3x256xf32> -> vector<3x256xf32>
    %c1328_65 = arith.constant 1328 : index
    %c0_66 = arith.constant 0 : index
    %139 = vector.load %arg3[%c1328_65, %c0_66] : memref<1344x1xf32, #tpu.memory_space<vmem>>, vector<3x1xf32>
    %140 = vector.broadcast %139 : vector<3x1xf32> to vector<3x256xf32>
    %141 = arith.addf %138, %140 : vector<3x256xf32>
    %cst_67 = arith.constant dense<0xFF800000> : vector<256xf32>
    %142 = vector.multi_reduction <maximumf>, %141, %cst_67 [0] : vector<3x256xf32> to vector<256xf32>
    %143 = vector.shape_cast %142 : vector<256xf32> to vector<1x256xf32>
    %144 = vector.broadcast %143 : vector<1x256xf32> to vector<3x256xf32>
    %145 = arith.subf %141, %144 : vector<3x256xf32>
    %146 = math.exp %145 : vector<3x256xf32>
    %cst_68 = arith.constant dense<0.000000e+00> : vector<256xf32>
    %147 = vector.multi_reduction <add>, %146, %cst_68 [0] : vector<3x256xf32> to vector<256xf32>
    %148 = vector.shape_cast %147 : vector<256xf32> to vector<1x256xf32>
    %149 = math.log %148 : vector<1x256xf32>
    %150 = vector.broadcast %149 : vector<1x256xf32> to vector<3x256xf32>
    %151 = arith.subf %145, %150 : vector<3x256xf32>
    %c0_69 = arith.constant 0 : index
    %c0_70 = arith.constant 0 : index
    %152 = vector.load %arg4[%c0_69, %c0_70] : memref<3x256xf32, #tpu.memory_space<vmem>>, vector<3x256xf32>
    tpu.vector_store %arg4[%c0_69, %c0_70], %151 {strides = array<i32>} : memref<3x256xf32, #tpu.memory_space<vmem>>, vector<3x256xf32>,
    return
  }
  func.func @transform_0(%arg0: i32) -> (i32, i32) {
    %c0_i32 = arith.constant 0 : i32
    %c0_i32_0 = arith.constant 0 : i32
    return %c0_i32, %arg0 : i32, i32
  }
  func.func @transform_1(%arg0: i32) -> (i32, i32) {
    %c0_i32 = arith.constant 0 : i32
    %c0_i32_0 = arith.constant 0 : i32
    %c0_i32_1 = arith.constant 0 : i32
    return %c0_i32, %c0_i32_0 : i32, i32
  }
  func.func @transform_2(%arg0: i32) -> (i32, i32) {
    %c0_i32 = arith.constant 0 : i32
    %c0_i32_0 = arith.constant 0 : i32
    %c0_i32_1 = arith.constant 0 : i32
    return %c0_i32, %c0_i32_0 : i32, i32
  }
  func.func @transform_3(%arg0: i32) -> (i32, i32) {
    %c0_i32 = arith.constant 0 : i32
    %c0_i32_0 = arith.constant 0 : i32
    return %c0_i32, %arg0 : i32, i32
  }
}

</mosaic_0001>

<bundles_post_ra>
// kernel: tpu_custom_call.1
= control target key start
LH: loop header
LB: loop body
LE: loop exit
PB: predicated region body
PF: predicated region fallthrough
CT: control target
= control target key end

     0   :  { %v5351_v3 = vmov 0   ;;  %vm243_vm0 = vcmask 1044480   ;;  %vm212_vm1 = vcmask 80896   ;;  %s5307_s0 = inlined_call_operand.vmem [shape: f32[10,256], index: 0, kind: input, shape index: {}]   ;;  %s5308_s1 = inlined_call_operand.vmem [shape: bf16[1344,160], index: 1, kind: input, shape index: {}]   ;;  %s5309_s2 = inlined_call_operand.vmem [shape: f32[1344,1], index: 2, kind: input, shape index: {}]   ;;  %s5310_s3 = inlined_call_operand.hbm [shape: f32[3,256], index: 3, kind: output, shape index: {}]  }
   0x1   :  { %v44_v0 = vld [vmem:[%s5309_s2 + $0x10] sm:$0xff]  ;;  %v42_v1 = vld [vmem:[%s5309_s2] sm:$0xff]  ;;  %v17_v2 = vld [vmem:[%s5307_s0 + $0x8] sm:$0xff]  ;;  %3606 = vset.pattern.permute.xlu1 %v5351_v3  ;;  %3605 = vset.pattern.permute.xlu0 %v5351_v3 }
   0x2   :  { %v19_v4 = vld [vmem:[%s5307_s0 + $0x18] sm:$0x3]  ;;  %v16_v5 = vld [vmem:[%s5307_s0] sm:$0xff]  ;;  %v18_v6 = vld [vmem:[%s5307_s0 + $0x10] sm:$0x3]  ;;  %74 = vperm.xlu1 %3606, %v44_v0   ;;  %64 = vperm.xlu0 %3605, %v42_v1  }
   0x3   :  { %v41_v7 = vpack.c.bf16 %v19_v4, %v17_v2  ;;  %v40_v8 = vpack.c.bf16 %v18_v6, %v16_v5  ;;  %282 = vmatprep.mubr.bf16.mxu0 %v5351_v3  ;;  %v45_v9 = vld [vmem:[%s5309_s2 + $0x18] sm:$0xff]  ;;  %v43_v10 = vld [vmem:[%s5309_s2 + $0x8] sm:$0xff]  ;;  %v46_v14 = vld [vmem:[%s5309_s2 + $0x20] sm:$0xff] }
   0x4   :  { %v3612_v12 = vld [vmem:[%s5308_s1] ss:$8 sps:$4 sm:$0xff]   ;;  %v49_v15 = vld [vmem:[%s5309_s2 + $0x38] sm:$0xff]  ;;  %v48_v16 = vld [vmem:[%s5309_s2 + $0x30] sm:$0xff] }
   0x5   :  { %3423 = vmatprep.subr.msk.bf16.mxu0 %vm243_vm0, %v41_v7  ;;  %v245_v11 = vsel %vm243_vm0, %v40_v8, 0  ;;  %v47_v13 = vld [vmem:[%s5309_s2 + $0x28] sm:$0xff]  ;;  %v3613_v17 = vld [vmem:[%s5308_s1 + $0x10] ss:$8 sps:$4 sm:$0xff]   ;;  %v50_v19 = vld [vmem:[%s5309_s2 + $0x40] sm:$0xff] }
   0x6   :  { %251 = vmatpush1.bf16.msra.mxu0 %v245_v11  ;;  %79 = vperm.xlu1 %3606, %v45_v9   ;;  %v51_v18 = vld [vmem:[%s5309_s2 + $0x48] sm:$0xff]  ;;  %v53_v20 = vld [vmem:[%s5309_s2 + $0x58] sm:$0xff]  ;;  %v52_v21 = vld [vmem:[%s5309_s2 + $0x50] sm:$0xff] }
   0x7   :  { %69 = vperm.xlu0 %3605, %v43_v10   ;;  %v3614_v22 = vld [vmem:[%s5308_s1 + $0x20] ss:$8 sps:$4 sm:$0xff]   ;;  %v57_v25 = vld [vmem:[%s5309_s2 + $0x78] sm:$0xff]  ;;  %v56_v26 = vld [vmem:[%s5309_s2 + $0x70] sm:$0xff] }
   0x8   :  { %v55_v23 = vld [vmem:[%s5309_s2 + $0x68] sm:$0xff]  ;;  %v54_v24 = vld [vmem:[%s5309_s2 + $0x60] sm:$0xff]  ;;  %v3615_v27 = vld [vmem:[%s5308_s1 + $0x30] ss:$8 sps:$4 sm:$0xff]  }
   0x9   :  { %3424 = vmatmul.mubr.msk.bf16.vlgmr.msra.gmra.mrb[0].mxu0 %vm212_vm1, %v3612_v12  ;;  %v59_v28 = vld [vmem:[%s5309_s2 + $0x88] sm:$0xff]  ;;  %v58_v29 = vld [vmem:[%s5309_s2 + $0x80] sm:$0xff]  ;;  %v61_v33 = vld [vmem:[%s5309_s2 + $0x98] sm:$0xff] }
   0xa   :  { %292 = vmatprep.mubr.bf16.mxu0 %v5351_v3  ;;  %89 = vperm.xlu1 %3606, %v47_v13   ;;  %v555_v30 = vld [vmem:[%s5308_s1 + $0xc0] ss:$8 sps:$4 sm:$0xff]   ;;  %v60_v34 = vld [vmem:[%s5309_s2 + $0x90] sm:$0xff]  ;;  %v1241_v43 = vld [vmem:[%s5309_s2 + $0x218] sm:$0xff] }
   0xb   :  { %84 = vperm.xlu0 %3605, %v46_v14   ;;  %v557_v31 = vunpack.c.l.bf16 %v555_v30  ;;  %v558_v32 = vunpack.c.h.bf16 %v555_v30  ;;  %v3616_v35 = vld [vmem:[%s5308_s1 + $0x40] ss:$8 sps:$4 sm:$0xff]   ;;  %v3617_v40 = vld [vmem:[%s5308_s1 + $0x50] ss:$8 sps:$4 sm:$0xff]  }
   0xc   :  { %v446_v37 = vld [vmem:[%s5309_s2 + $0xa0] sm:$0xff]  ;;  %v582_v38 = vld [vmem:[%s5309_s2 + $0xc8] sm:$0xff]  ;;  %v448_v41 = vld [vmem:[%s5309_s2 + $0xb0] sm:$0x3] }
   0xd   :  { %v3607_v36 = vpack.i.bf16 %v558_v32, %v557_v31  ;;  %v581_v39 = vld [vmem:[%s5309_s2 + $0xc0] sm:$0xff]  ;;  %v447_v42 = vld [vmem:[%s5309_s2 + $0xa8] sm:$0xff]  ;;  %v1240_v44 = vld [vmem:[%s5309_s2 + $0x210] sm:$0xff] }
   0xe   :  { %99 = vperm.xlu1 %3606, %v49_v15   ;;  %v3618_v45 = vld [vmem:[%s5308_s1 + $0x60] ss:$8 sps:$4 sm:$0xff]   ;;  %v1245_v48 = vld [vmem:[%s5309_s2 + $0x238] sm:$0xff]  ;;  %v1244_v49 = vld [vmem:[%s5309_s2 + $0x230] sm:$0xff] }
   0xf   :  { %94 = vperm.xlu0 %3605, %v48_v16   ;;  %v1243_v46 = vld [vmem:[%s5309_s2 + $0x228] sm:$0xff]  ;;  %v1242_v47 = vld [vmem:[%s5309_s2 + $0x220] sm:$0xff]  ;;  %v3619_v50 = vld [vmem:[%s5308_s1 + $0x70] ss:$8 sps:$4 sm:$0xff]  }
  0x10   :  { %v1247_v51 = vld [vmem:[%s5309_s2 + $0x248] sm:$0xff]  ;;  %v1246_v52 = vld [vmem:[%s5309_s2 + $0x240] sm:$0xff]  ;;  %v1249_v53 = vld [vmem:[%s5309_s2 + $0x258] sm:$0xff] }
  0x11   :  { %3425 = vmatmul.mubr.msk.bf16.gmra.mrb[4].mxu0 %vm212_vm1, %v3613_v17  ;;  %v1248_v54 = vld [vmem:[%s5309_s2 + $0x250] sm:$0xff]  ;;  %v3620_v55 = vld [vmem:[%s5308_s1 + $0x80] ss:$8 sps:$4 sm:$0xff]   ;;  %v1253_v58 = vld [vmem:[%s5309_s2 + $0x278] sm:$0xff] }
  0x12   :  { %302 = vmatprep.mubr.bf16.mxu0 %v5351_v3  ;;  %109 = vperm.xlu1 %3606, %v51_v18   ;;  %v1251_v56 = vld [vmem:[%s5309_s2 + $0x268] sm:$0xff]  ;;  %v1250_v57 = vld [vmem:[%s5309_s2 + $0x260] sm:$0xff]  ;;  %v1252_v59 = vld [vmem:[%s5309_s2 + $0x270] sm:$0xff] }
  0x13   :  { %104 = vperm.xlu0 %3605, %v50_v19   ;;  %v3621_v60 = vld [vmem:[%s5308_s1 + $0x90] ss:$8 sps:$4 sm:$0xff]   ;;  %v1255_v61 = vld [vmem:[%s5309_s2 + $0x288] sm:$0xff]  ;;  %v1254_v62 = vld [vmem:[%s5309_s2 + $0x280] sm:$0xff] }
  0x14   :  { %v1257_v63 = vld [vmem:[%s5309_s2 + $0x298] sm:$0xff]  ;;  %v1256_v0 = vld [vmem:[%s5309_s2 + $0x290] sm:$0xff]  ;;  %v1259_v1 = vld [vmem:[%s5309_s2 + $0x2a8] sm:$0xff] }
  0x15   :  { %v1258_v2 = vld [vmem:[%s5309_s2 + $0x2a0] sm:$0xff] }
  0x16   :  { %119 = vperm.xlu1 %3606, %v53_v20  }
  0x17   :  { %114 = vperm.xlu0 %3605, %v52_v21  }
  0x19   :  { %3426 = vmatmul.mubr.msk.bf16.gmra.mrb[8].mxu0 %vm212_vm1, %v3614_v22 }
  0x1a   :  { %312 = vmatprep.mubr.bf16.mxu0 %v5351_v3  ;;  %129 = vperm.xlu1 %3606, %v55_v23  }
  0x1b   :  { %124 = vperm.xlu0 %3605, %v54_v24  }
  0x1e   :  { %139 = vperm.xlu1 %3606, %v57_v25  }
  0x1f   :  { %134 = vperm.xlu0 %3605, %v56_v26  }
  0x21   :  { %3427 = vmatmul.mubr.msk.bf16.gmra.mrb[12].mxu0 %vm212_vm1, %v3615_v27 }
  0x22   :  { %322 = vmatprep.mubr.bf16.mxu0 %v5351_v3  ;;  %149 = vperm.xlu1 %3606, %v59_v28  }
  0x23   :  { %144 = vperm.xlu0 %3605, %v58_v29  }
  0x26   :  { %159 = vperm.xlu1 %3606, %v61_v33  }
  0x27   :  { %154 = vperm.xlu0 %3605, %v60_v34  }
  0x29   :  { %3428 = vmatmul.mubr.msk.bf16.gmra.mrb[16].mxu0 %vm212_vm1, %v3616_v35 }
  0x2a   :  { %332 = vmatprep.mubr.bf16.mxu0 %v5351_v3  ;;  %3608 = vperm.xlu1 %3606, %v3607_v36  }
  0x2b   :  { %451 = vperm.xlu0 %3605, %v446_v37  }
  0x2e   :  { %590 = vperm.xlu1 %3606, %v582_v38  }
  0x2f   :  { %585 = vperm.xlu0 %3605, %v581_v39  }
  0x31   :  { %3429 = vmatmul.mubr.msk.bf16.gmra.mrb[20].mxu0 %vm212_vm1, %v3617_v40 }
  0x32   :  { %342 = vmatprep.mubr.bf16.mxu0 %v5351_v3  ;;  %461 = vperm.xlu1 %3606, %v448_v41  }
  0x33   :  { %456 = vperm.xlu0 %3605, %v447_v42  }
  0x36   :  { %1267 = vperm.xlu1 %3606, %v1241_v43  }
  0x37   :  { %1262 = vperm.xlu0 %3605, %v1240_v44  }
  0x39   :  { %3430 = vmatmul.mubr.msk.bf16.gmra.mrb[24].mxu0 %vm212_vm1, %v3618_v45 }
  0x3a   :  { %352 = vmatprep.mubr.bf16.mxu0 %v5351_v3  ;;  %1277 = vperm.xlu1 %3606, %v1243_v46  }
  0x3b   :  { %1272 = vperm.xlu0 %3605, %v1242_v47  }
  0x3e   :  { %1287 = vperm.xlu1 %3606, %v1245_v48  }
  0x3f   :  { %1282 = vperm.xlu0 %3605, %v1244_v49  }
  0x41   :  { %3431 = vmatmul.mubr.msk.bf16.gmra.mrb[28].mxu0 %vm212_vm1, %v3619_v50 }
  0x42   :  { %362 = vmatprep.mubr.bf16.mxu0 %v5351_v3  ;;  %1297 = vperm.xlu1 %3606, %v1247_v51  }
  0x43   :  { %1292 = vperm.xlu0 %3605, %v1246_v52  }
  0x46   :  { %1307 = vperm.xlu1 %3606, %v1249_v53  }
  0x47   :  { %1302 = vperm.xlu0 %3605, %v1248_v54  }
  0x49   :  { %3432 = vmatmul.mubr.msk.bf16.gmra.mrb[32].mxu0 %vm212_vm1, %v3620_v55 }
  0x4a   :  { %372 = vmatprep.mubr.bf16.mxu0 %v5351_v3  ;;  %1317 = vperm.xlu1 %3606, %v1251_v56  }
  0x4b   :  { %1312 = vperm.xlu0 %3605, %v1250_v57  }
  0x4e   :  { %1327 = vperm.xlu1 %3606, %v1253_v58  }
  0x4f   :  { %1322 = vperm.xlu0 %3605, %v1252_v59  }
  0x51   :  { %3433 = vmatmul.mubr.msk.bf16.gmra.mrb[36].mxu0 %vm212_vm1, %v3621_v60 }
  0x52   :  { %1337 = vperm.xlu1 %3606, %v1255_v61  }
  0x53   :  { %1332 = vperm.xlu0 %3605, %v1254_v62  }
  0x56   :  { %1347 = vperm.xlu1 %3606, %v1257_v63  }
  0x57   :  { %1342 = vperm.xlu0 %3605, %v1256_v0  }
  0x58   :  { %8 = vsyncpa [#allocation3], 0  ;;  %v1719_v4 = vld [vmem:[%s5309_s2 + $0x2c0] sm:$0xff]  ;;  %v1636_v5 = vld [vmem:[%s5309_s2 + $0x2b0] sm:$0xff]  ;;  %vm479_vm2 = vcmask 261120   ;;  %vm687_vm3 = vcmask 211968  }
  0x59   :  { %v1721_v6 = vld [vmem:[%s5309_s2 + $0x2d0] sm:$0xff]  ;;  %v1720_v7 = vld [vmem:[%s5309_s2 + $0x2c8] sm:$0xff]  ;;  %v1637_v8 = vld [vmem:[%s5309_s2 + $0x2b8] sm:$0x1f]  ;;  %vm1410_vm4 = vcmask 654336   ;;  %vm1760_vm5 = vcmask 1040384  }
  0x5a   :  { %1357 = vperm.xlu1 %3606, %v1259_v1   ;;  %v1722_v9 = vld [vmem:[%s5309_s2 + $0x2d8] sm:$0xff]  ;;  %v2433_v10 = vld [vmem:[%s5309_s2 + $0x408] sm:$0xff]  ;;  %v2432_v11 = vld [vmem:[%s5309_s2 + $0x400] sm:$0xff]  ;;  %vm1753_vm6 = vcmask 15360   ;;  %vm1959_vm7 = vcmask 1041408   ;;  %vm1960_vm8 = vcmask 1042432  }
  0x5b   :  { %1352 = vperm.xlu0 %3605, %v1258_v2   ;;  %v2435_v12 = vld [vmem:[%s5309_s2 + $0x418] sm:$0xff]  ;;  %v2434_v13 = vld [vmem:[%s5309_s2 + $0x410] sm:$0xff]  ;;  %v2440_v14 = vld [vmem:[%s5309_s2 + $0x440] sm:$0xff]  ;;  %vm1928_vm9 = vcmask 302080   ;;  %vm2611_vm10 = vcmask 523264   ;;  %vm3114_vm11 = vcmask 408576  }
  0x5c   :  { %v2439_v15 = vld [vmem:[%s5309_s2 + $0x438] sm:$0xff]  ;;  %v2437_v16 = vld [vmem:[%s5309_s2 + $0x428] sm:$0xff]  ;;  %v2436_v17 = vld [vmem:[%s5309_s2 + $0x420] sm:$0xff] }
  0x5d   :  { %v2442_v18 = vld [vmem:[%s5309_s2 + $0x450] sm:$0xff]  ;;  %v2441_v19 = vld [vmem:[%s5309_s2 + $0x448] sm:$0xff]  ;;  %v2443_v22 = vld [vmem:[%s5309_s2 + $0x458] sm:$0xff] }
  0x5e   :  { %1725 = vperm.xlu1 %3606, %v1719_v4   ;;  %v2446_v20 = vld [vmem:[%s5309_s2 + $0x470] sm:$0xff]  ;;  %v2447_v23 = vld [vmem:[%s5309_s2 + $0x478] sm:$0xff]  ;;  %v2448_v24 = vld [vmem:[%s5309_s2 + $0x480] sm:$0xff] }
  0x5f   :  { %1640 = vperm.xlu0 %3605, %v1636_v5   ;;  %v2438_v21 = vld [vmem:[%s5309_s2 + $0x430] sm:$0xff]  ;;  %v2444_v25 = vld [vmem:[%s5309_s2 + $0x460] sm:$0xff]  ;;  %v2445_v26 = vld [vmem:[%s5309_s2 + $0x468] sm:$0xff] }
  0x60   :  { %v2449_v27 = vld [vmem:[%s5309_s2 + $0x488] sm:$0xff]  ;;  %v2451_v28 = vld [vmem:[%s5309_s2 + $0x498] sm:$0xff]  ;;  %v2450_v29 = vld [vmem:[%s5309_s2 + $0x490] sm:$0xff] }
  0x61   :  { %v2978_v30 = vld [vmem:[%s5309_s2 + $0x4b0] sm:$0xff]  ;;  %v2452_v31 = vld [vmem:[%s5309_s2 + $0x4a0] sm:$0xff]  ;;  %v2979_v33 = vld [vmem:[%s5309_s2 + $0x4b8] sm:$0xff] }
  0x62   :  { %1735 = vperm.xlu1 %3606, %v1721_v6   ;;  %v2980_v32 = vld [vmem:[%s5309_s2 + $0x4c0] sm:$0xff]  ;;  %v2982_v34 = vld [vmem:[%s5309_s2 + $0x4d0] sm:$0xff]  ;;  %v2981_v35 = vld [vmem:[%s5309_s2 + $0x4c8] sm:$0xff] }
  0x63   :  { %1730 = vperm.xlu0 %3605, %v1720_v7   ;;  %v2984_v36 = vld [vmem:[%s5309_s2 + $0x4e0] sm:$0xff]  ;;  %v2983_v37 = vld [vmem:[%s5309_s2 + $0x4d8] sm:$0xff]  ;;  %v2986_v38 = vld [vmem:[%s5309_s2 + $0x4f0] sm:$0xff] }
  0x64   :  { %v2985_v39 = vld [vmem:[%s5309_s2 + $0x4e8] sm:$0xff]  ;;  %v2988_v40 = vld [vmem:[%s5309_s2 + $0x500] sm:$0xff]  ;;  %v2987_v41 = vld [vmem:[%s5309_s2 + $0x4f8] sm:$0xff] }
  0x65   :  { %v2990_v42 = vld [vmem:[%s5309_s2 + $0x510] sm:$0xff]  ;;  %v2989_v43 = vld [vmem:[%s5309_s2 + $0x508] sm:$0xff]  ;;  %v2992_v44 = vld [vmem:[%s5309_s2 + $0x520] sm:$0xff] }
  0x66   :  { %1645 = vperm.xlu1 %3606, %v1637_v8   ;;  %v2991_v45 = vld [vmem:[%s5309_s2 + $0x518] sm:$0xff]  ;;  %v3624_v46 = vld [vmem:[%s5308_s1 + $0xa4] ss:$8 sps:$4 sm:$0xff]   ;;  %v3307_v47 = vld [vmem:[%s5309_s2 + $0x530] sm:$0x7] }
  0x67   :  { %1740 = vperm.xlu0 %3605, %v1722_v9   ;;  %v2993_v48 = vld [vmem:[%s5309_s2 + $0x528] sm:$0xff]  ;;  %3438 = vmatprep.mubr.msk.bf16.mxu1 %vm479_vm2, %v3624_v46 }
  0x6a   :  { %2460 = vperm.xlu1 %3606, %v2433_v10  }
  0x6b   :  { %2455 = vperm.xlu0 %3605, %v2432_v11  }
  0x6e   :  { %2470 = vperm.xlu1 %3606, %v2435_v12  }
  0x6f   :  { %2465 = vperm.xlu0 %3605, %v2434_v13  }
  0x72   :  { %2495 = vperm.xlu1 %3606, %v2440_v14  }
  0x73   :  { %2490 = vperm.xlu0 %3605, %v2439_v15  }
  0x76   :  { %2480 = vperm.xlu1 %3606, %v2437_v16  }
  0x77   :  { %2475 = vperm.xlu0 %3605, %v2436_v17  }
  0x7a   :  { %2505 = vperm.xlu1 %3606, %v2442_v18  }
  0x7b   :  { %2500 = vperm.xlu0 %3605, %v2441_v19  }
  0x7e   :  { %2525 = vperm.xlu1 %3606, %v2446_v20  }
  0x7f   :  { %2485 = vperm.xlu0 %3605, %v2438_v21  }
  0x81   :  { %v65_v49 = vpop.permute.xlu0 %64  ;;  %v75_v58 = vpop.permute.xlu1 %74 }
  0x82   :  { %2510 = vperm.xlu1 %3606, %v2443_v22  }
  0x83   :  { %2530 = vperm.xlu0 %3605, %v2447_v23  }
  0x85   :  { %v80_v5 = vpop.permute.xlu1 %79 }
  0x86   :  { %2535 = vperm.xlu1 %3606, %v2448_v24   ;;  %v70_v52 = vpop.permute.xlu0 %69 }
  0x87   :  { %2515 = vperm.xlu0 %3605, %v2444_v25  }
  0x89   :  { %v90_v21 = vpop.permute.xlu1 %89 }
  0x8a   :  { %2520 = vperm.xlu1 %3606, %v2445_v26   ;;  %v85_v18 = vpop.permute.xlu0 %84 }
  0x8b   :  { %2540 = vperm.xlu0 %3605, %v2449_v27  }
  0x8e   :  { %2550 = vperm.xlu1 %3606, %v2451_v28  }
  0x8f   :  { %2545 = vperm.xlu0 %3605, %v2450_v29  }
  0x92   :  { %2996 = vperm.xlu1 %3606, %v2978_v30  }
  0x93   :  { %2555 = vperm.xlu0 %3605, %v2452_v31  }
  0x96   :  { %3006 = vperm.xlu1 %3606, %v2980_v32  }
  0x97   :  { %3001 = vperm.xlu0 %3605, %v2979_v33  }
  0x9a   :  { %3016 = vperm.xlu1 %3606, %v2982_v34   ;;  %v95_v34 = vpop.permute.xlu0 %94 }
  0x9b   :  { %3011 = vperm.xlu0 %3605, %v2981_v35  }
  0x9e   :  { %3026 = vperm.xlu1 %3606, %v2984_v36  }
  0x9f   :  { %3021 = vperm.xlu0 %3605, %v2983_v37   ;;  %v100_v37 = vpop.permute.xlu1 %99 }
  0xa2   :  { %3036 = vperm.xlu1 %3606, %v2986_v38  }
  0xa3   :  { %3031 = vperm.xlu0 %3605, %v2985_v39  }
  0xa6   :  { %3046 = vperm.xlu1 %3606, %v2988_v40  }
  0xa7   :  { %3041 = vperm.xlu0 %3605, %v2987_v41  }
  0xaa   :  { %3056 = vperm.xlu1 %3606, %v2990_v42  }
  0xab   :  { %3051 = vperm.xlu0 %3605, %v2989_v43  }
  0xae   :  { %3066 = vperm.xlu1 %3606, %v2992_v44  }
  0xaf   :  { %3061 = vperm.xlu0 %3605, %v2991_v45  }
  0xb2   :  { %3310 = vperm.xlu1 %3606, %v3307_v47  }
  0xb3   :  { %3071 = vperm.xlu0 %3605, %v2993_v48  }
  0xdc   :  { %v284_v50 = vpop.f32.mrb[0].mxu0 }
  0xdd   :  { %v286_v51 = vpop.f32.mrb[1].mxu0  ;;  %v4280_v55 = vadd.f32 %v284_v50, %v65_v49  ;;  %v105_v50 = vpop.permute.xlu0 %104 }
  0xde   :  { %v4278_v53 = vadd.f32 %v286_v51, %v65_v49  ;;  %v288_v54 = vpop.f32.mrb[2].mxu0 }
  0xdf   :  { %v4282_v56 = vadd.f32 %v288_v54, %v70_v52  ;;  %v290_v57 = vpop.f32.mrb[3].mxu0  ;;  %v5350_v63 = vmax.f32 %v4280_v55, 0.0  ;;  %v110_v54 = vpop.permute.xlu1 %109 }
  0xe0   :  { %v4284_v59 = vadd.f32 %v290_v57, %v70_v52  ;;  %v5348_v61 = vmax.f32 %v4278_v53, 0.0 }
  0xe1   :  { %v5349_v60 = vmax.f32 %v4282_v56, 0.0 }
  0xe2   :  { %v5347_v62 = vmax.f32 %v4284_v59, 0.0 }
  0xe3   :  { %v426_v4 = vpack.c.bf16 %v5349_v60, %v5350_v63 }
  0xe4   :  { %v294_v0 = vpop.f32.mrb[4].mxu0  ;;  %v427_v1 = vpack.c.bf16 %v5347_v62, %v5348_v61 }
  0xe5   :  { %v296_v2 = vpop.f32.mrb[5].mxu0  ;;  %v4300_v8 = vadd.f32 %v294_v0, %v75_v58 }
  0xe6   :  { %v4298_v6 = vadd.f32 %v296_v2, %v75_v58  ;;  %v298_v7 = vpop.f32.mrb[6].mxu0  ;;  %486 = vmatprep.subr.bf16.mxu1 %v427_v1 }
  0xe7   :  { %v4302_v9 = vadd.f32 %v298_v7, %v80_v5  ;;  %v300_v10 = vpop.f32.mrb[7].mxu0  ;;  %487 = vmatpush1.bf16.msra.mxu1 %v426_v4  ;;  %v5346_v15 = vmax.f32 %v4300_v8, 0.0 }
  0xe8   :  { %v4304_v11 = vadd.f32 %v300_v10, %v80_v5  ;;  %v5344_v13 = vmax.f32 %v4298_v6, 0.0 }
  0xe9   :  { %v5345_v12 = vmax.f32 %v4302_v9, 0.0 }
  0xea   :  { %v5343_v14 = vmax.f32 %v4304_v11, 0.0 }
  0xeb   :  { %v428_v19 = vpack.c.bf16 %v5345_v12, %v5346_v15 }
  0xec   :  { %v429_v16 = vpack.c.bf16 %v5343_v14, %v5344_v13  ;;  %v304_v17 = vpop.f32.mrb[8].mxu0 }
  0xed   :  { %v306_v20 = vpop.f32.mrb[9].mxu0  ;;  %v4320_v24 = vadd.f32 %v304_v17, %v85_v18 }
  0xee   :  { %v4318_v22 = vadd.f32 %v306_v20, %v85_v18  ;;  %v308_v23 = vpop.f32.mrb[10].mxu0  ;;  %488 = vmatprep.subr.bf16.mxu1 %v429_v16 }
  0xef   :  { %v4322_v25 = vadd.f32 %v308_v23, %v90_v21  ;;  %v310_v26 = vpop.f32.mrb[11].mxu0  ;;  %489 = vmatpush1.bf16.msra.mxu1 %v428_v19  ;;  %v5342_v31 = vmax.f32 %v4320_v24, 0.0  ;;  %v115_v19 = vpop.permute.xlu0 %114 }
  0xf0   :  { %v4324_v27 = vadd.f32 %v310_v26, %v90_v21  ;;  %v5338_v29 = vmax.f32 %v4318_v22, 0.0  ;;  %v120_v23 = vpop.permute.xlu1 %119 }
  0xf1   :  { %v5341_v28 = vmax.f32 %v4322_v25, 0.0 }
  0xf2   :  { %v5333_v30 = vmax.f32 %v4324_v27, 0.0 }
  0xf3   :  { %v430_v35 = vpack.c.bf16 %v5341_v28, %v5342_v31 }
  0xf4   :  { %v431_v32 = vpack.c.bf16 %v5333_v30, %v5338_v29  ;;  %v314_v33 = vpop.f32.mrb[12].mxu0 }
  0xf5   :  { %v316_v36 = vpop.f32.mrb[13].mxu0  ;;  %v4340_v40 = vadd.f32 %v314_v33, %v95_v34 }
  0xf6   :  { %v4338_v38 = vadd.f32 %v316_v36, %v95_v34  ;;  %v318_v39 = vpop.f32.mrb[14].mxu0  ;;  %490 = vmatprep.subr.bf16.mxu1 %v431_v32 }
  0xf7   :  { %v4342_v41 = vadd.f32 %v318_v39, %v100_v37  ;;  %v320_v42 = vpop.f32.mrb[15].mxu0  ;;  %491 = vmatpush1.bf16.msra.mxu1 %v430_v35  ;;  %v5330_v47 = vmax.f32 %v4340_v40, 0.0 }
  0xf8   :  { %v4344_v43 = vadd.f32 %v320_v42, %v100_v37  ;;  %v5328_v45 = vmax.f32 %v4338_v38, 0.0 }
  0xf9   :  { %v5329_v44 = vmax.f32 %v4342_v41, 0.0 }
  0xfa   :  { %v5325_v46 = vmax.f32 %v4344_v43, 0.0 }
  0xfb   :  { %v432_v51 = vpack.c.bf16 %v5329_v44, %v5330_v47 }
  0xfc   :  { %v433_v48 = vpack.c.bf16 %v5325_v46, %v5328_v45  ;;  %v324_v49 = vpop.f32.mrb[16].mxu0 }
  0xfd   :  { %v326_v52 = vpop.f32.mrb[17].mxu0  ;;  %v4360_v0 = vadd.f32 %v324_v49, %v105_v50 }
  0xfe   :  { %v4358_v57 = vadd.f32 %v326_v52, %v105_v50  ;;  %v328_v58 = vpop.f32.mrb[18].mxu0  ;;  %492 = vmatprep.subr.bf16.mxu1 %v433_v48 }
  0xff   :  { %v4362_v1 = vadd.f32 %v328_v58, %v110_v54  ;;  %v330_v2 = vpop.f32.mrb[19].mxu0  ;;  %493 = vmatpush1.bf16.msra.mxu1 %v432_v51  ;;  %v5322_v16 = vmax.f32 %v4360_v0, 0.0  ;;  %v125_v51 = vpop.permute.xlu0 %124 }
 0x100   :  { %v4364_v4 = vadd.f32 %v330_v2, %v110_v54  ;;  %v5320_v7 = vmax.f32 %v4358_v57, 0.0  ;;  %v130_v58 = vpop.permute.xlu1 %129 }
 0x101   :  { %v5321_v5 = vmax.f32 %v4362_v1, 0.0 }
 0x102   :  { %v5317_v10 = vmax.f32 %v4364_v4, 0.0 }
 0x103   :  { %v434_v20 = vpack.c.bf16 %v5321_v5, %v5322_v16 }
 0x104   :  { %v435_v17 = vpack.c.bf16 %v5317_v10, %v5320_v7  ;;  %v334_v18 = vpop.f32.mrb[20].mxu0 }
 0x105   :  { %v336_v21 = vpop.f32.mrb[21].mxu0  ;;  %v4380_v33 = vadd.f32 %v334_v18, %v115_v19 }
 0x106   :  { %v4378_v26 = vadd.f32 %v336_v21, %v115_v19  ;;  %v338_v32 = vpop.f32.mrb[22].mxu0  ;;  %494 = vmatprep.subr.bf16.mxu1 %v435_v17 }
 0x107   :  { %v4382_v34 = vadd.f32 %v338_v32, %v120_v23  ;;  %v340_v35 = vpop.f32.mrb[23].mxu0  ;;  %495 = vmatpush1.bf16.msra.mxu1 %v434_v20  ;;  %v5314_v48 = vmax.f32 %v4380_v33, 0.0 }
 0x108   :  { %v4384_v36 = vadd.f32 %v340_v35, %v120_v23  ;;  %v5312_v39 = vmax.f32 %v4378_v26, 0.0 }
 0x109   :  { %v5313_v37 = vmax.f32 %v4382_v34, 0.0 }
 0x10a   :  { %v5311_v42 = vmax.f32 %v4384_v36, 0.0 }
 0x10b   :  { %v436_v52 = vpack.c.bf16 %v5313_v37, %v5314_v48 }
 0x10c   :  { %v437_v49 = vpack.c.bf16 %v5311_v42, %v5312_v39  ;;  %v344_v50 = vpop.f32.mrb[24].mxu0 }
 0x10d   :  { %v346_v54 = vpop.f32.mrb[25].mxu0  ;;  %v4400_v18 = vadd.f32 %v344_v50, %v125_v51 }
 0x10e   :  { %v4398_v2 = vadd.f32 %v346_v54, %v125_v51  ;;  %v348_v17 = vpop.f32.mrb[26].mxu0  ;;  %496 = vmatprep.subr.bf16.mxu1 %v437_v49  ;;  %v135_v51 = vpop.permute.xlu0 %134 }
 0x10f   :  { %v4402_v19 = vadd.f32 %v348_v17, %v130_v58  ;;  %v350_v20 = vpop.f32.mrb[27].mxu0  ;;  %497 = vmatpush1.bf16.msra.mxu1 %v436_v52  ;;  %v5319_v42 = vmax.f32 %v4400_v18, 0.0 }
 0x110   :  { %v4404_v21 = vadd.f32 %v350_v20, %v130_v58  ;;  %v5316_v32 = vmax.f32 %v4398_v2, 0.0  ;;  %v140_v58 = vpop.permute.xlu1 %139 }
 0x111   :  { %v5318_v23 = vmax.f32 %v4402_v19, 0.0 }
 0x112   :  { %v5315_v35 = vmax.f32 %v4404_v21, 0.0 }
 0x113   :  { %v438_v52 = vpack.c.bf16 %v5318_v23, %v5319_v42 }
 0x114   :  { %v439_v49 = vpack.c.bf16 %v5315_v35, %v5316_v32  ;;  %v354_v50 = vpop.f32.mrb[28].mxu0 }
 0x115   :  { %v356_v54 = vpop.f32.mrb[29].mxu0  ;;  %v4420_v39 = vadd.f32 %v354_v50, %v135_v51 }
 0x116   :  { %v4418_v17 = vadd.f32 %v356_v54, %v135_v51  ;;  %v358_v20 = vpop.f32.mrb[30].mxu0  ;;  %498 = vmatprep.subr.bf16.mxu1 %v439_v49  ;;  %v145_v51 = vpop.permute.xlu0 %144 }
 0x117   :  { %v4422_v37 = vadd.f32 %v358_v20, %v140_v58  ;;  %v360_v48 = vpop.f32.mrb[31].mxu0  ;;  %499 = vmatpush1.bf16.msra.mxu1 %v438_v52  ;;  %v5327_v42 = vmax.f32 %v4420_v39, 0.0  ;;  %v150_v54 = vpop.permute.xlu1 %149 }
 0x118   :  { %v4424_v35 = vadd.f32 %v360_v48, %v140_v58  ;;  %v5324_v10 = vmax.f32 %v4418_v17, 0.0 }
 0x119   :  { %v5326_v32 = vmax.f32 %v4422_v37, 0.0 }
 0x11a   :  { %v5323_v23 = vmax.f32 %v4424_v35, 0.0 }
 0x11b   :  { %v440_v48 = vpack.c.bf16 %v5326_v32, %v5327_v42 }
 0x11c   :  { %v441_v49 = vpack.c.bf16 %v5323_v23, %v5324_v10  ;;  %v364_v50 = vpop.f32.mrb[32].mxu0 }
 0x11d   :  { %v366_v52 = vpop.f32.mrb[33].mxu0  ;;  %v4440_v7 = vadd.f32 %v364_v50, %v145_v51 }
 0x11e   :  { %v4438_v58 = vadd.f32 %v366_v52, %v145_v51  ;;  %v368_v20 = vpop.f32.mrb[34].mxu0  ;;  %500 = vmatprep.subr.bf16.mxu1 %v441_v49  ;;  %v155_v51 = vpop.permute.xlu0 %154 }
 0x11f   :  { %v4442_v5 = vadd.f32 %v368_v20, %v150_v54  ;;  %v370_v16 = vpop.f32.mrb[35].mxu0  ;;  %501 = vmatpush1.bf16.msra.mxu1 %v440_v48  ;;  %v5335_v42 = vmax.f32 %v4440_v7, 0.0  ;;  %v160_v52 = vpop.permute.xlu1 %159 }
 0x120   :  { %v4444_v23 = vadd.f32 %v370_v16, %v150_v54  ;;  %v5332_v46 = vmax.f32 %v4438_v58, 0.0 }
 0x121   :  { %v5334_v10 = vmax.f32 %v4442_v5, 0.0 }
 0x122   :  { %5398 = vst [vmem:[#allocation5_spill] sm:$0xff] %v4444_v23  ;;  %v5331_v32 = vmax.f32 %v4444_v23, 0.0 }
 0x123   :  { %v442_v16 = vpack.c.bf16 %v5334_v10, %v5335_v42 }
 0x124   :  { %v443_v49 = vpack.c.bf16 %v5331_v32, %v5332_v46  ;;  %v374_v50 = vpop.f32.mrb[36].mxu0 }
 0x125   :  { %v376_v48 = vpop.f32.mrb[37].mxu0  ;;  %v4460_v45 = vadd.f32 %v374_v50, %v155_v51  ;;  %v425_v50 = vld [vmem:[%s5308_s1 + $0xb0] sm:$0x11] }
 0x126   :  { %v4458_v54 = vadd.f32 %v376_v48, %v155_v51  ;;  %v378_v20 = vpop.f32.mrb[38].mxu0  ;;  %502 = vmatprep.subr.bf16.mxu1 %v443_v49  ;;  %v3622_v51 = vld [vmem:[%s5308_s1 + $0xa0] ss:$8 sps:$4 sm:$0xff]   ;;  %v3436_v48 = vcombine.low %v425_v50, %v425_v50 }
 0x127   :  { %5400 = vst [vmem:[#allocation7_spill] sm:$0xff] %v4460_v45  ;;  %v4462_v44 = vadd.f32 %v378_v20, %v160_v52  ;;  %v380_v47 = vpop.f32.mrb[39].mxu0  ;;  %503 = vmatpush1.bf16.msra.mxu1 %v442_v16  ;;  %v5340_v42 = vmax.f32 %v4460_v45, 0.0  ;;  %v3437_v16 = vcombine.high %v425_v50, %v425_v50  ;;  %v569_v20 = vlaneseq }
 0x128   :  { %5399 = vst [vmem:[#allocation6_spill] sm:$0xff] %v4458_v54  ;;  %v4464_v32 = vadd.f32 %v380_v47, %v160_v52  ;;  %v5337_v30 = vmax.f32 %v4458_v54, 0.0  ;;  %v452_v52 = vpop.permute.xlu0 %451 }
 0x129   :  { %5401 = vst [vmem:[#allocation8_spill] sm:$0xff] %v4462_v44  ;;  %v5339_v46 = vmax.f32 %v4462_v44, 0.0  ;;  %v570_v29 = vshrl.u32 %v569_v20, 7 }
 0x12a   :  { %5402 = vst [vmem:[#allocation9_spill] sm:$0xff] %v4464_v32  ;;  %v5336_v10 = vmax.f32 %v4464_v32, 0.0 }
 0x12b   :  { %v444_v47 = vpack.c.bf16 %v5339_v46, %v5340_v42  ;;  %v571_v28 = vsub.s32 0, %v570_v29 }
 0x12c   :  { %v445_v49 = vpack.c.bf16 %v5336_v10, %v5337_v30  ;;  %v3609_v10 = vpop.permute.xlu1 %3608  ;;  %v586_v30 = vpop.permute.xlu0 %585 }
 0x12d   :  { %v3611_v15 = vunpack.i.h.bf16 %v3609_v10  ;;  %v3610_v62 = vunpack.i.l.bf16 %v3609_v10 }
 0x12e   :  { %504 = vmatprep.subr.bf16.mxu1 %v445_v49 }
 0x12f   :  { %505 = vmatpush1.bf16.msra.mxu1 %v444_v47 }
 0x130   :  { %v591_v49 = vpop.permute.xlu1 %590  ;;  %v457_v14 = vpop.permute.xlu0 %456 }
 0x132   :  { %519 = vmatmul.mubr.bf16.vlgmr.msra.gmra.mrb[0].mxu1 %v3622_v51 }
 0x133   :  { %3439 = vmatprep.mubr.msk.bf16.mxu1 %vm479_vm2, %v3437_v16 }
 0x134   :  { %v462_v32 = vpop.permute.xlu1 %461 }
 0x13a   :  { %529 = vmatmul.mubr.bf16.gmra.mrb[4].mxu1 %v3436_v48 }
 0x13b   :  { %756 = vmatprep.mubr.bf16.mxu1 %v5351_v3 }
 0x205   :  { %v520_v46 = vpop.f32.mrb[0].mxu1 }
 0x206   :  { %v521_v42 = vadd.f32 %v520_v46, %v452_v52  ;;  %v522_v31 = vpop.f32.mrb[1].mxu1 }
 0x207   :  { %v523_v47 = vadd.f32 %v522_v31, %v452_v52  ;;  %v524_v13 = vpop.f32.mrb[2].mxu1 }
 0x208   :  { %v537_v51 = vmax.f32 %v521_v42, 0.0  ;;  %v525_v12 = vadd.f32 %v524_v13, %v457_v14  ;;  %v526_v16 = vpop.f32.mrb[3].mxu1 }
 0x209   :  { %v538_v50 = vmax.f32 %v523_v47, 0.0  ;;  %v527_v48 = vadd.f32 %v526_v16, %v457_v14 }
 0x20a   :  { %v572_v61 = vrot.slane %v537_v51, %v571_v28  ;;  %v539_v20 = vmul.f32 0.5, %v525_v12 }
 0x20b   :  { %v576_v60 = vrot.slane %v538_v50, %v571_v28  ;;  %v540_v29 = vmul.f32 0.5, %v527_v48 }
 0x20c   :  { %v577_v63 = vmul.f32 %v3610_v62, %v572_v61  ;;  %v579_v3 = vmul.f32 %v3611_v15, %v572_v61  ;;  %3735 = vtanh.f32 %v539_v20 }
 0x20d   :  { %v578_v54 = vmul.f32 %v3610_v62, %v576_v60  ;;  %v580_v46 = vmul.f32 %v3611_v15, %v576_v60  ;;  %v530_v44 = vpop.f32.mrb[4].mxu1  ;;  %3737 = vtanh.f32 %v540_v29 }
 0x20e   :  { %v593_v45 = vadd.f32 %v586_v30, %v577_v63  ;;  %v595_v31 = vadd.f32 %v591_v49, %v579_v3  ;;  %v531_v52 = vadd.f32 %v530_v44, %v462_v32  ;;  %v532_v42 = vpop.f32.mrb[5].mxu1 }
 0x20f   :  { %v594_v13 = vadd.f32 %v586_v30, %v578_v54  ;;  %v596_v23 = vadd.f32 %v591_v49, %v580_v46  ;;  %v533_v47 = vadd.f32 %v532_v42, %v462_v32  ;;  %v534_v14 = vpop.f32.mrb[6].mxu1 }
 0x210   :  { %v597_v16 = vmul.f32 0.5, %v593_v45  ;;  %v599_v10 = vmul.f32 0.5, %v595_v31  ;;  %v535_v28 = vpop.f32.mrb[7].mxu1  ;;  %v541_v62 = vmul.f32 0.5, %v531_v52 }
 0x211   :  { %v598_v51 = vmul.f32 0.5, %v594_v13  ;;  %v600_v61 = vmul.f32 0.5, %v596_v23  ;;  %v542_v60 = vmul.f32 0.5, %v533_v47 }
 0x212   :  { %3739 = vtanh.f32 %v597_v16 }
 0x213   :  { %3741 = vtanh.f32 %v599_v10 }
 0x214   :  { %3743 = vtanh.f32 %v598_v51 }
 0x215   :  { %3745 = vtanh.f32 %v600_v61 }
 0x216   :  { %3747 = vtanh.f32 %v541_v62  ;;  %v3736_v3 = vpop.eup %3735 }
 0x217   :  { %3749 = vtanh.f32 %v542_v60  ;;  %v3738_v63 = vpop.eup %3737  ;;  %v547_v54 = vadd.f32 1.0, %v3736_v3  ;;  %v3627_v3 = vld [vmem:[%s5308_s1 + $0xd0] ss:$8 sps:$4 sm:$0xff]  }
 0x218   :  { %v548_v50 = vadd.f32 1.0, %v3738_v63  ;;  %v5403_v63 = vmov 0  }
 0x219   :  { %v551_v47 = vmul.f32 0.5, %v547_v54  ;;  %v3634_v54 = vld [vmem:[%s5308_s1 + $0x140] ss:$8 sps:$4 sm:$0xff]  }
 0x21a   :  { %v552_v16 = vmul.f32 0.5, %v548_v50  ;;  %v3639_v50 = vld [vmem:[%s5308_s1 + $0x174] ss:$8 sps:$4 sm:$0xff]  }
 0x21b   :  { %3481 = vmatprep.mubr.msk.bf16.mxu0 %vm479_vm2, %v3639_v50 }
 0x21c   :  { %v3740_v12 = vpop.eup %3739 }
 0x21d   :  { %v3742_v15 = vpop.eup %3741  ;;  %v605_v30 = vadd.f32 1.0, %v3740_v12  ;;  %v3628_v12 = vld [vmem:[%s5308_s1 + $0xe0] ss:$8 sps:$4 sm:$0xff]  }
 0x21e   :  { %v3744_v44 = vpop.eup %3743  ;;  %v607_v45 = vadd.f32 1.0, %v3742_v15  ;;  %v3629_v15 = vld [vmem:[%s5308_s1 + $0xf0] ss:$8 sps:$4 sm:$0xff]  }
 0x21f   :  { %v3746_v32 = vpop.eup %3745  ;;  %v606_v49 = vadd.f32 1.0, %v3744_v44  ;;  %v609_v31 = vmul.f32 0.5, %v605_v30  ;;  %v3630_v30 = vld [vmem:[%s5308_s1 + $0x100] ss:$8 sps:$4 sm:$0xff]   ;;  %v3631_v44 = vld [vmem:[%s5308_s1 + $0x110] ss:$8 sps:$4 sm:$0xff]  }
 0x220   :  { %v3748_v23 = vpop.eup %3747  ;;  %v608_v48 = vadd.f32 1.0, %v3746_v32  ;;  %v611_v52 = vmul.f32 0.5, %v607_v45  ;;  %v3632_v45 = vld [vmem:[%s5308_s1 + $0x120] ss:$8 sps:$4 sm:$0xff]   ;;  %v3633_v32 = vld [vmem:[%s5308_s1 + $0x130] ss:$8 sps:$4 sm:$0xff]  }
 0x221   :  { %v3750_v20 = vpop.eup %3749  ;;  %v549_v46 = vadd.f32 1.0, %v3748_v23  ;;  %v610_v29 = vmul.f32 0.5, %v606_v49  ;;  %v3635_v49 = vld [vmem:[%s5308_s1 + $0x150] ss:$8 sps:$4 sm:$0xff]   ;;  %v3636_v23 = vld [vmem:[%s5308_s1 + $0x160] ss:$8 sps:$4 sm:$0xff]  }
 0x222   :  { %v550_v42 = vadd.f32 1.0, %v3750_v20  ;;  %v612_v13 = vmul.f32 0.5, %v608_v48  ;;  %v633_v51 = vpack.c.bf16 %v611_v52, %v609_v31  ;;  %v5405_v52 = vmax.f32 %v4282_v56, 0.0 }
 0x223   :  { %v553_v14 = vmul.f32 0.5, %v549_v46  ;;  %v5409_v56 = vmax.f32 %v4302_v9, 0.0  ;;  %v5413_v9 = vmax.f32 %v4322_v25, 0.0  ;;  %v5417_v25 = vmax.f32 %v4342_v41, 0.0 }
 0x224   :  { %v554_v10 = vmul.f32 0.5, %v550_v42  ;;  %v634_v28 = vpack.c.bf16 %v612_v13, %v610_v29  ;;  %v5404_v29 = vmax.f32 %v4280_v55, 0.0  ;;  %v5408_v55 = vmax.f32 %v4300_v8, 0.0 }
 0x225   :  { %v635_v61 = vpack.c.bf16 %v553_v14, %v551_v47  ;;  %v5406_v47 = vmax.f32 %v4278_v53, 0.0  ;;  %v5410_v53 = vmax.f32 %v4298_v6, 0.0  ;;  %v5412_v8 = vmax.f32 %v4320_v24, 0.0 }
 0x226   :  { %v636_v62 = vpack.c.bf16 %v554_v10, %v552_v16  ;;  %724 = vmatprep.subr.bf16.mxu1 %v634_v28  ;;  %v5407_v16 = vmax.f32 %v4284_v59, 0.0  ;;  %v5411_v59 = vmax.f32 %v4304_v11, 0.0  ;;  %v5414_v6 = vmax.f32 %v4318_v22, 0.0 }
 0x227   :  { %725 = vmatpush1.bf16.msra.mxu1 %v633_v51  ;;  %v719_v60 = vsel %vm243_vm0, %v635_v61, 0  ;;  %v5415_v11 = vmax.f32 %v4324_v27, 0.0  ;;  %v5416_v24 = vmax.f32 %v4340_v40, 0.0  ;;  %v5418_v22 = vmax.f32 %v4338_v38, 0.0 }
 0x228   :  { %3450 = vmatprep.subr.msk.bf16.mxu1 %vm243_vm0, %v636_v62  ;;  %v5419_v27 = vmax.f32 %v4344_v43, 0.0  ;;  %v5420_v40 = vmax.f32 %v4360_v0, 0.0  ;;  %v5421_v41 = vmax.f32 %v4362_v1, 0.0  ;;  %v5422_v38 = vmax.f32 %v4358_v57, 0.0 }
 0x229   :  { %v5423_v43 = vmax.f32 %v4364_v4, 0.0  ;;  %v5424_v0 = vmax.f32 %v4380_v33, 0.0  ;;  %v5425_v1 = vmax.f32 %v4382_v34, 0.0  ;;  %v5426_v57 = vmax.f32 %v4378_v26, 0.0 }
 0x22a   :  { %v5427_v4 = vmax.f32 %v4384_v36, 0.0  ;;  %v5428_v33 = vmax.f32 %v4400_v18, 0.0  ;;  %v5429_v34 = vmax.f32 %v4402_v19, 0.0  ;;  %v5430_v26 = vmax.f32 %v4398_v2, 0.0 }
 0x22b   :  { %727 = vmatpush1.bf16.msra.mxu1 %v719_v60  ;;  %v5431_v36 = vmax.f32 %v4404_v21, 0.0  ;;  %v5432_v18 = vmax.f32 %v4420_v39, 0.0  ;;  %v5433_v19 = vmax.f32 %v4422_v37, 0.0  ;;  %v5434_v2 = vmax.f32 %v4418_v17, 0.0 }
 0x22c   :  { %v5435_v21 = vmax.f32 %v4424_v35, 0.0  ;;  %v5436_v39 = vmax.f32 %v4440_v7, 0.0  ;;  %v5437_v37 = vmax.f32 %v4442_v5, 0.0  ;;  %v5438_v17 = vmax.f32 %v4438_v58, 0.0 }
 0x22e   :  { %3451 = vmatmul.mubr.msk.bf16.vlgmr.msra.gmra.mrb[8].mxu1 %vm687_vm3, %v3627_v3 }
 0x22f   :  { %766 = vmatprep.mubr.bf16.mxu1 %v5403_v63 }
 0x236   :  { %3452 = vmatmul.mubr.msk.bf16.gmra.mrb[12].mxu1 %vm687_vm3, %v3628_v12 }
 0x237   :  { %776 = vmatprep.mubr.bf16.mxu1 %v5403_v63 }
 0x23e   :  { %3453 = vmatmul.mubr.msk.bf16.gmra.mrb[16].mxu1 %vm687_vm3, %v3629_v15 }
 0x23f   :  { %786 = vmatprep.mubr.bf16.mxu1 %v5403_v63 }
 0x246   :  { %3454 = vmatmul.mubr.msk.bf16.gmra.mrb[20].mxu1 %vm687_vm3, %v3630_v30 }
 0x247   :  { %796 = vmatprep.mubr.bf16.mxu1 %v5403_v63 }
 0x24e   :  { %3455 = vmatmul.mubr.msk.bf16.gmra.mrb[24].mxu1 %vm687_vm3, %v3631_v44 }
 0x24f   :  { %806 = vmatprep.mubr.bf16.mxu1 %v5403_v63 }
 0x256   :  { %3456 = vmatmul.mubr.msk.bf16.gmra.mrb[28].mxu1 %vm687_vm3, %v3632_v45 }
 0x257   :  { %816 = vmatprep.mubr.bf16.mxu1 %v5403_v63 }
 0x25e   :  { %3457 = vmatmul.mubr.msk.bf16.gmra.mrb[32].mxu1 %vm687_vm3, %v3633_v32 }
 0x25f   :  { %826 = vmatprep.mubr.bf16.mxu1 %v5403_v63 }
 0x266   :  { %3458 = vmatmul.mubr.msk.bf16.gmra.mrb[36].mxu1 %vm687_vm3, %v3634_v54 }
 0x267   :  { %836 = vmatprep.mubr.bf16.mxu1 %v5403_v63 }
 0x26e   :  { %3459 = vmatmul.mubr.msk.bf16.gmra.mrb[40].mxu1 %vm687_vm3, %v3635_v49 }
 0x26f   :  { %846 = vmatprep.mubr.bf16.mxu1 %v5403_v63 }
 0x276   :  { %3460 = vmatmul.mubr.msk.bf16.gmra.mrb[44].mxu1 %vm687_vm3, %v3636_v23 }
 0x277   :  { %1473 = vmatprep.mubr.bf16.mxu1 %v5403_v63 }
 0x301   :  { %v758_v48 = vpop.f32.mrb[8].mxu1 }
 0x302   :  { %v760_v20 = vpop.f32.mrb[9].mxu1  ;;  %v857_v31 = vmul.f32 %v758_v48, %v5404_v29 }
 0x303   :  { %v762_v46 = vpop.f32.mrb[10].mxu1  ;;  %v858_v14 = vmul.f32 %v760_v20, %v5406_v47 }
 0x304   :  { %v859_v42 = vmul.f32 %v762_v46, %v5405_v52  ;;  %v764_v13 = vpop.f32.mrb[11].mxu1 }
 0x305   :  { %v860_v10 = vmul.f32 %v764_v13, %v5407_v16 }
 0x306   :  { %v917_v28 = vpack.c.bf16 %v859_v42, %v857_v31 }
 0x307   :  { %v918_v51 = vpack.c.bf16 %v860_v10, %v858_v14 }
 0x309   :  { %v768_v61 = vpop.f32.mrb[12].mxu1  ;;  %1057 = vmatprep.subr.bf16.mxu0 %v918_v51 }
 0x30a   :  { %v770_v62 = vpop.f32.mrb[13].mxu1  ;;  %1058 = vmatpush1.bf16.msra.mxu0 %v917_v28  ;;  %v861_v3 = vmul.f32 %v768_v61, %v5408_v55 }
 0x30b   :  { %v772_v60 = vpop.f32.mrb[14].mxu1  ;;  %v862_v30 = vmul.f32 %v770_v62, %v5410_v53 }
 0x30c   :  { %v863_v12 = vmul.f32 %v772_v60, %v5409_v56  ;;  %v774_v15 = vpop.f32.mrb[15].mxu1 }
 0x30d   :  { %v864_v44 = vmul.f32 %v774_v15, %v5411_v59 }
 0x30e   :  { %v919_v45 = vpack.c.bf16 %v863_v12, %v861_v3 }
 0x30f   :  { %v920_v32 = vpack.c.bf16 %v864_v44, %v862_v30 }
 0x311   :  { %v778_v54 = vpop.f32.mrb[16].mxu1  ;;  %1059 = vmatprep.subr.bf16.mxu0 %v920_v32 }
 0x312   :  { %v780_v49 = vpop.f32.mrb[17].mxu1  ;;  %1060 = vmatpush1.bf16.msra.mxu0 %v919_v45  ;;  %v865_v50 = vmul.f32 %v778_v54, %v5412_v8 }
 0x313   :  { %v782_v23 = vpop.f32.mrb[18].mxu1  ;;  %v866_v46 = vmul.f32 %v780_v49, %v5414_v6 }
 0x314   :  { %v867_v48 = vmul.f32 %v782_v23, %v5413_v9  ;;  %v784_v20 = vpop.f32.mrb[19].mxu1 }
 0x315   :  { %v868_v29 = vmul.f32 %v784_v20, %v5415_v11 }
 0x316   :  { %v921_v31 = vpack.c.bf16 %v867_v48, %v865_v50 }
 0x317   :  { %v922_v52 = vpack.c.bf16 %v868_v29, %v866_v46 }
 0x319   :  { %v788_v42 = vpop.f32.mrb[20].mxu1  ;;  %1061 = vmatprep.subr.bf16.mxu0 %v922_v52 }
 0x31a   :  { %v790_v13 = vpop.f32.mrb[21].mxu1  ;;  %1062 = vmatpush1.bf16.msra.mxu0 %v921_v31  ;;  %v869_v14 = vmul.f32 %v788_v42, %v5416_v24 }
 0x31b   :  { %v792_v47 = vpop.f32.mrb[22].mxu1  ;;  %v870_v28 = vmul.f32 %v790_v13, %v5418_v22 }
 0x31c   :  { %v871_v16 = vmul.f32 %v792_v47, %v5417_v25  ;;  %v794_v10 = vpop.f32.mrb[23].mxu1 }
 0x31d   :  { %v872_v51 = vmul.f32 %v794_v10, %v5419_v27 }
 0x31e   :  { %v923_v61 = vpack.c.bf16 %v871_v16, %v869_v14 }
 0x31f   :  { %v924_v62 = vpack.c.bf16 %v872_v51, %v870_v28 }
 0x321   :  { %v798_v60 = vpop.f32.mrb[24].mxu1  ;;  %1063 = vmatprep.subr.bf16.mxu0 %v924_v62 }
 0x322   :  { %v800_v55 = vpop.f32.mrb[25].mxu1  ;;  %1064 = vmatpush1.bf16.msra.mxu0 %v923_v61  ;;  %v873_v56 = vmul.f32 %v798_v60, %v5420_v40 }
 0x323   :  { %v802_v3 = vpop.f32.mrb[26].mxu1  ;;  %v874_v53 = vmul.f32 %v800_v55, %v5422_v38 }
 0x324   :  { %v875_v12 = vmul.f32 %v802_v3, %v5421_v41  ;;  %v804_v15 = vpop.f32.mrb[27].mxu1 }
 0x325   :  { %v876_v30 = vmul.f32 %v804_v15, %v5423_v43  ;;  %v5439_v15 = vld [vmem:[#allocation5_spill] sm:$0xff] }
 0x326   :  { %v925_v59 = vpack.c.bf16 %v875_v12, %v873_v56  ;;  %v5440_v35 = vmax.f32 %v5439_v15, 0.0 }
 0x327   :  { %v926_v44 = vpack.c.bf16 %v876_v30, %v874_v53 }
 0x329   :  { %v808_v45 = vpop.f32.mrb[28].mxu1  ;;  %1065 = vmatprep.subr.bf16.mxu0 %v926_v44 }
 0x32a   :  { %v810_v32 = vpop.f32.mrb[29].mxu1  ;;  %1066 = vmatpush1.bf16.msra.mxu0 %v925_v59  ;;  %v877_v49 = vmul.f32 %v808_v45, %v5424_v0  ;;  %v5441_v45 = vld [vmem:[#allocation7_spill] sm:$0xff] }
 0x32b   :  { %v812_v54 = vpop.f32.mrb[30].mxu1  ;;  %v878_v50 = vmul.f32 %v810_v32, %v5426_v57  ;;  %v5442_v7 = vmax.f32 %v5441_v45, 0.0 }
 0x32c   :  { %v879_v23 = vmul.f32 %v812_v54, %v5425_v1  ;;  %v814_v8 = vpop.f32.mrb[31].mxu1  ;;  %v5443_v54 = vld [vmem:[#allocation8_spill] sm:$0xff]  ;;  %v5445_v1 = vld [vmem:[#allocation6_spill] sm:$0xff] }
 0x32d   :  { %v880_v9 = vmul.f32 %v814_v8, %v5427_v4  ;;  %v5444_v5 = vmax.f32 %v5443_v54, 0.0  ;;  %v5446_v58 = vmax.f32 %v5445_v1, 0.0  ;;  %v5447_v8 = vld [vmem:[#allocation9_spill] sm:$0xff] }
 0x32e   :  { %v927_v48 = vpack.c.bf16 %v879_v23, %v877_v49  ;;  %v5448_v57 = vmax.f32 %v5447_v8, 0.0 }
 0x32f   :  { %v928_v20 = vpack.c.bf16 %v880_v9, %v878_v50 }
 0x331   :  { %v818_v6 = vpop.f32.mrb[32].mxu1  ;;  %1067 = vmatprep.subr.bf16.mxu0 %v928_v20  ;;  %v3640_v20 = vld [vmem:[%s5308_s1 + $0x184] ss:$8 sps:$4 sm:$0xff]  }
 0x332   :  { %v820_v46 = vpop.f32.mrb[33].mxu1  ;;  %1068 = vmatpush1.bf16.msra.mxu0 %v927_v48  ;;  %v881_v29 = vmul.f32 %v818_v6, %v5428_v33  ;;  %v3637_v48 = vld [vmem:[%s5308_s1 + $0x170] ss:$8 sps:$4 sm:$0xff]   ;;  %v3642_v6 = vld [vmem:[%s5308_s1 + $0x180] ss:$8 sps:$4 sm:$0xff]  }
 0x333   :  { %v822_v11 = vpop.f32.mrb[34].mxu1  ;;  %v882_v42 = vmul.f32 %v820_v46, %v5430_v26  ;;  %v3643_v46 = vld [vmem:[%s5308_s1 + $0x194] ss:$8 sps:$4 sm:$0xff]   ;;  %v3646_v33 = vld [vmem:[%s5308_s1 + $0x1a4] ss:$8 sps:$4 sm:$0xff]  }
 0x334   :  { %v883_v31 = vmul.f32 %v822_v11, %v5429_v34  ;;  %v824_v52 = vpop.f32.mrb[35].mxu1  ;;  %v3645_v11 = vld [vmem:[%s5308_s1 + $0x190] ss:$8 sps:$4 sm:$0xff]   ;;  %v3649_v34 = vld [vmem:[%s5308_s1 + $0x1b4] ss:$8 sps:$4 sm:$0xff]  }
 0x335   :  { %v884_v13 = vmul.f32 %v824_v52, %v5431_v36  ;;  %v3652_v52 = vld [vmem:[%s5308_s1 + $0x1c4] ss:$8 sps:$4 sm:$0xff]   ;;  %v3654_v26 = vld [vmem:[%s5308_s1 + $0x1c0] ss:$8 sps:$4 sm:$0xff]   ;;  %v3657_v36 = vld [vmem:[%s5308_s1 + $0x1d0] ss:$8 sps:$4 sm:$0xff]  }
 0x336   :  { %v929_v47 = vpack.c.bf16 %v883_v31, %v881_v29  ;;  %v3648_v29 = vld [vmem:[%s5308_s1 + $0x1a0] ss:$8 sps:$4 sm:$0xff]   ;;  %v3651_v31 = vld [vmem:[%s5308_s1 + $0x1b0] ss:$8 sps:$4 sm:$0xff]  }
 0x337   :  { %v930_v24 = vpack.c.bf16 %v884_v13, %v882_v42  ;;  %v3655_v42 = vld [vmem:[%s5308_s1 + $0x1d4] ss:$8 sps:$4 sm:$0xff]   ;;  %v3658_v13 = vld [vmem:[%s5308_s1 + $0x1e4] ss:$8 sps:$4 sm:$0xff]  }
 0x339   :  { %v828_v14 = vpop.f32.mrb[36].mxu1  ;;  %1069 = vmatprep.subr.bf16.mxu0 %v930_v24  ;;  %v3661_v24 = vld [vmem:[%s5308_s1 + $0x1f4] ss:$8 sps:$4 sm:$0xff]  }
 0x33a   :  { %v830_v25 = vpop.f32.mrb[37].mxu1  ;;  %1070 = vmatpush1.bf16.msra.mxu0 %v929_v47  ;;  %v885_v10 = vmul.f32 %v828_v14, %v5432_v18  ;;  %v3660_v47 = vld [vmem:[%s5308_s1 + $0x1e0] ss:$8 sps:$4 sm:$0xff]   ;;  %v3663_v14 = vld [vmem:[%s5308_s1 + $0x1f0] ss:$8 sps:$4 sm:$0xff]  }
 0x33b   :  { %v832_v16 = vpop.f32.mrb[38].mxu1  ;;  %v886_v27 = vmul.f32 %v830_v25, %v5434_v2  ;;  %v3664_v25 = vld [vmem:[%s5308_s1 + $0x204] ss:$8 sps:$4 sm:$0xff]  }
 0x33c   :  { %v887_v22 = vmul.f32 %v832_v16, %v5433_v19  ;;  %v834_v28 = vpop.f32.mrb[39].mxu1  ;;  %v3666_v16 = vld [vmem:[%s5308_s1 + $0x200] ss:$8 sps:$4 sm:$0xff]  }
 0x33d   :  { %v888_v51 = vmul.f32 %v834_v28, %v5435_v21 }
 0x33e   :  { %v931_v61 = vpack.c.bf16 %v887_v22, %v885_v10 }
 0x33f   :  { %v932_v62 = vpack.c.bf16 %v888_v51, %v886_v27 }
 0x341   :  { %v838_v60 = vpop.f32.mrb[40].mxu1  ;;  %1071 = vmatprep.subr.bf16.mxu0 %v932_v62 }
 0x342   :  { %v840_v55 = vpop.f32.mrb[41].mxu1  ;;  %1072 = vmatpush1.bf16.msra.mxu0 %v931_v61  ;;  %v889_v40 = vmul.f32 %v838_v60, %v5436_v39 }
 0x343   :  { %v842_v3 = vpop.f32.mrb[42].mxu1  ;;  %v890_v12 = vmul.f32 %v840_v55, %v5438_v17 }
 0x344   :  { %v891_v56 = vmul.f32 %v842_v3, %v5437_v37  ;;  %v844_v41 = vpop.f32.mrb[43].mxu1 }
 0x345   :  { %v892_v38 = vmul.f32 %v844_v41, %v5440_v35 }
 0x346   :  { %v933_v53 = vpack.c.bf16 %v891_v56, %v889_v40 }
 0x347   :  { %v934_v43 = vpack.c.bf16 %v892_v38, %v890_v12 }
 0x349   :  { %v848_v30 = vpop.f32.mrb[44].mxu1  ;;  %1073 = vmatprep.subr.bf16.mxu0 %v934_v43 }
 0x34a   :  { %v850_v59 = vpop.f32.mrb[45].mxu1  ;;  %1074 = vmatpush1.bf16.msra.mxu0 %v933_v53  ;;  %v893_v32 = vmul.f32 %v848_v30, %v5442_v7 }
 0x34b   :  { %v852_v44 = vpop.f32.mrb[46].mxu1  ;;  %v894_v23 = vmul.f32 %v850_v59, %v5446_v58 }
 0x34c   :  { %v895_v0 = vmul.f32 %v852_v44, %v5444_v5  ;;  %v854_v49 = vpop.f32.mrb[47].mxu1 }
 0x34d   :  { %v896_v50 = vmul.f32 %v854_v49, %v5448_v57 }
 0x34e   :  { %v935_v4 = vpack.c.bf16 %v895_v0, %v893_v32 }
 0x34f   :  { %v936_v9 = vpack.c.bf16 %v896_v50, %v894_v23 }
 0x351   :  { %1075 = vmatprep.subr.bf16.mxu0 %v936_v9 }
 0x352   :  { %1076 = vmatpush1.bf16.msra.mxu0 %v935_v4 }
 0x355   :  { %1090 = vmatmul.mubr.bf16.vlgmr.msra.gmra.mrb[40].mxu0 %v3637_v48 }
 0x356   :  { %3482 = vmatprep.mubr.msk.bf16.mxu0 %vm479_vm2, %v3640_v20 }
 0x35d   :  { %1100 = vmatmul.mubr.bf16.gmra.mrb[44].mxu0 %v3642_v6 }
 0x35e   :  { %3483 = vmatprep.mubr.msk.bf16.mxu0 %vm479_vm2, %v3643_v46 }
 0x365   :  { %1110 = vmatmul.mubr.bf16.gmra.mrb[48].mxu0 %v3645_v11 }
 0x366   :  { %3484 = vmatprep.mubr.msk.bf16.mxu0 %vm479_vm2, %v3646_v33 }
 0x36d   :  { %1120 = vmatmul.mubr.bf16.gmra.mrb[52].mxu0 %v3648_v29 }
 0x36e   :  { %3485 = vmatprep.mubr.msk.bf16.mxu0 %vm479_vm2, %v3649_v34 }
 0x375   :  { %1130 = vmatmul.mubr.bf16.gmra.mrb[56].mxu0 %v3651_v31 }
 0x376   :  { %3486 = vmatprep.mubr.msk.bf16.mxu0 %vm479_vm2, %v3652_v52 }
 0x37d   :  { %1140 = vmatmul.mubr.bf16.gmra.mrb[60].mxu0 %v3654_v26 }
 0x37e   :  { %3487 = vmatprep.mubr.msk.bf16.mxu0 %vm479_vm2, %v3655_v42 }
 0x385   :  { %1150 = vmatmul.mubr.bf16.gmra.mrb[64].mxu0 %v3657_v36 }
 0x386   :  { %3488 = vmatprep.mubr.msk.bf16.mxu0 %vm479_vm2, %v3658_v13 }
 0x38d   :  { %1160 = vmatmul.mubr.bf16.gmra.mrb[68].mxu0 %v3660_v47 }
 0x38e   :  { %3489 = vmatprep.mubr.msk.bf16.mxu0 %vm479_vm2, %v3661_v24 }
 0x395   :  { %1170 = vmatmul.mubr.bf16.gmra.mrb[72].mxu0 %v3663_v14 }
 0x396   :  { %3490 = vmatprep.mubr.msk.bf16.mxu0 %vm479_vm2, %v3664_v25 }
 0x39d   :  { %1180 = vmatmul.mubr.bf16.gmra.mrb[76].mxu0 %v3666_v16 }
 0x428   :  { %v1091_v18 = vpop.f32.mrb[40].mxu0 }
 0x429   :  { %v1093_v10 = vpop.f32.mrb[41].mxu0 }
 0x42a   :  { %v1095_v19 = vpop.f32.mrb[42].mxu0 }
 0x42b   :  { %v1097_v22 = vpop.f32.mrb[43].mxu0 }
 0x430   :  { %v1101_v28 = vpop.f32.mrb[44].mxu0 }
 0x431   :  { %v1103_v2 = vpop.f32.mrb[45].mxu0 }
 0x432   :  { %v1105_v27 = vpop.f32.mrb[46].mxu0 }
 0x433   :  { %v1107_v21 = vpop.f32.mrb[47].mxu0 }
 0x438   :  { %v1111_v51 = vpop.f32.mrb[48].mxu0 }
 0x439   :  { %v1113_v61 = vpop.f32.mrb[49].mxu0 }
 0x43a   :  { %v1115_v62 = vpop.f32.mrb[50].mxu0 }
 0x43b   :  { %v1117_v60 = vpop.f32.mrb[51].mxu0 }
 0x440   :  { %v1121_v55 = vpop.f32.mrb[52].mxu0 }
 0x441   :  { %v1123_v3 = vpop.f32.mrb[53].mxu0 }
 0x442   :  { %v1125_v39 = vpop.f32.mrb[54].mxu0 }
 0x443   :  { %v1127_v40 = vpop.f32.mrb[55].mxu0 }
 0x448   :  { %v1131_v37 = vpop.f32.mrb[56].mxu0 }
 0x449   :  { %v1133_v56 = vpop.f32.mrb[57].mxu0 }
 0x44a   :  { %v1135_v41 = vpop.f32.mrb[58].mxu0 }
 0x44b   :  { %v1137_v17 = vpop.f32.mrb[59].mxu0 }
 0x450   :  { %v1141_v12 = vpop.f32.mrb[60].mxu0 }
 0x451   :  { %v1190_v15 = vmax.f32 %v1091_v18, %v1141_v12  ;;  %v1143_v35 = vpop.f32.mrb[61].mxu0 }
 0x452   :  { %v1191_v38 = vmax.f32 %v1093_v10, %v1143_v35  ;;  %v1145_v53 = vpop.f32.mrb[62].mxu0 }
 0x453   :  { %v1192_v43 = vmax.f32 %v1095_v19, %v1145_v53  ;;  %v1147_v30 = vpop.f32.mrb[63].mxu0 }
 0x454   :  { %v1193_v59 = vmax.f32 %v1097_v22, %v1147_v30 }
 0x455   :  { %v1230_v44 = vpack.c.bf16 %v1192_v43, %v1190_v15  ;;  %v1268_v15 = vpop.permute.xlu1 %1267 }
 0x456   :  { %v1231_v45 = vpack.c.bf16 %v1193_v59, %v1191_v38 }
 0x458   :  { %v1151_v7 = vpop.f32.mrb[64].mxu0  ;;  %1441 = vmatprep.subr.bf16.mxu1 %v1231_v45 }
 0x459   :  { %v1194_v32 = vmax.f32 %v1101_v28, %v1151_v7  ;;  %v1153_v54 = vpop.f32.mrb[65].mxu0  ;;  %1442 = vmatpush1.bf16.msra.mxu1 %v1230_v44 }
 0x45a   :  { %v1195_v5 = vmax.f32 %v1103_v2, %v1153_v54  ;;  %v1155_v0 = vpop.f32.mrb[66].mxu0 }
 0x45b   :  { %v1196_v49 = vmax.f32 %v1105_v27, %v1155_v0  ;;  %v1157_v1 = vpop.f32.mrb[67].mxu0 }
 0x45c   :  { %v1197_v58 = vmax.f32 %v1107_v21, %v1157_v1  ;;  %v3667_v21 = vld [vmem:[%s5308_s1 + $0x210] ss:$8 sps:$4 sm:$0xff]  }
 0x45d   :  { %v1232_v23 = vpack.c.bf16 %v1196_v49, %v1194_v32 }
 0x45e   :  { %v1233_v8 = vpack.c.bf16 %v1197_v58, %v1195_v5  ;;  %v1278_v58 = vpop.permute.xlu1 %1277 }
 0x460   :  { %v1161_v57 = vpop.f32.mrb[68].mxu0  ;;  %1443 = vmatprep.subr.bf16.mxu1 %v1233_v8 }
 0x461   :  { %v1198_v50 = vmax.f32 %v1111_v51, %v1161_v57  ;;  %v1163_v4 = vpop.f32.mrb[69].mxu0  ;;  %1444 = vmatpush1.bf16.msra.mxu1 %v1232_v23  ;;  %v3668_v51 = vld [vmem:[%s5308_s1 + $0x220] ss:$8 sps:$4 sm:$0xff]  }
 0x462   :  { %v1199_v9 = vmax.f32 %v1113_v61, %v1163_v4  ;;  %v1165_v48 = vpop.f32.mrb[70].mxu0  ;;  %v3669_v61 = vld [vmem:[%s5308_s1 + $0x230] ss:$8 sps:$4 sm:$0xff]  }
 0x463   :  { %v1200_v20 = vmax.f32 %v1115_v62, %v1165_v48  ;;  %v1167_v6 = vpop.f32.mrb[71].mxu0  ;;  %v3670_v62 = vld [vmem:[%s5308_s1 + $0x240] ss:$8 sps:$4 sm:$0xff]  }
 0x464   :  { %v1201_v46 = vmax.f32 %v1117_v60, %v1167_v6  ;;  %v3671_v60 = vld [vmem:[%s5308_s1 + $0x250] ss:$8 sps:$4 sm:$0xff]  }
 0x465   :  { %v1234_v11 = vpack.c.bf16 %v1200_v20, %v1198_v50 }
 0x466   :  { %v1235_v33 = vpack.c.bf16 %v1201_v46, %v1199_v9 }
 0x468   :  { %v1171_v29 = vpop.f32.mrb[72].mxu0  ;;  %1445 = vmatprep.subr.bf16.mxu1 %v1235_v33 }
 0x469   :  { %v1202_v34 = vmax.f32 %v1121_v55, %v1171_v29  ;;  %v1173_v31 = vpop.f32.mrb[73].mxu0  ;;  %1446 = vmatpush1.bf16.msra.mxu1 %v1234_v11  ;;  %v3672_v55 = vld [vmem:[%s5308_s1 + $0x260] ss:$8 sps:$4 sm:$0xff]  }
 0x46a   :  { %v1203_v52 = vmax.f32 %v1123_v3, %v1173_v31  ;;  %v1175_v26 = vpop.f32.mrb[74].mxu0  ;;  %v3673_v3 = vld [vmem:[%s5308_s1 + $0x270] ss:$8 sps:$4 sm:$0xff]  }
 0x46b   :  { %v1204_v42 = vmax.f32 %v1125_v39, %v1175_v26  ;;  %v1177_v36 = vpop.f32.mrb[75].mxu0  ;;  %v3674_v39 = vld [vmem:[%s5308_s1 + $0x280] ss:$8 sps:$4 sm:$0xff]  }
 0x46c   :  { %v1205_v13 = vmax.f32 %v1127_v40, %v1177_v36  ;;  %v3675_v40 = vld [vmem:[%s5308_s1 + $0x290] ss:$8 sps:$4 sm:$0xff]  }
 0x46d   :  { %v1236_v47 = vpack.c.bf16 %v1204_v42, %v1202_v34 }
 0x46e   :  { %v1237_v24 = vpack.c.bf16 %v1205_v13, %v1203_v52  ;;  %v1288_v52 = vpop.permute.xlu1 %1287 }
 0x470   :  { %v1181_v14 = vpop.f32.mrb[76].mxu0  ;;  %1447 = vmatprep.subr.bf16.mxu1 %v1237_v24 }
 0x471   :  { %v1206_v25 = vmax.f32 %v1131_v37, %v1181_v14  ;;  %v1183_v16 = vpop.f32.mrb[77].mxu0  ;;  %1448 = vmatpush1.bf16.msra.mxu1 %v1236_v47  ;;  %v3676_v37 = vld [vmem:[%s5308_s1 + $0x2a0] ss:$8 sps:$4 sm:$0xff]  }
 0x472   :  { %v1207_v18 = vmax.f32 %v1133_v56, %v1183_v16  ;;  %v1185_v10 = vpop.f32.mrb[78].mxu0  ;;  %v3679_v56 = vld [vmem:[%s5308_s1 + $0x2b4] ss:$8 sps:$4 sm:$0x7f]  }
 0x473   :  { %v1208_v19 = vmax.f32 %v1135_v41, %v1185_v10  ;;  %v1187_v22 = vpop.f32.mrb[79].mxu0  ;;  %3513 = vmatprep.mubr.msk.bf16.mxu0 %vm479_vm2, %v3679_v56 }
 0x474   :  { %v1209_v28 = vmax.f32 %v1137_v17, %v1187_v22  ;;  %v1263_v17 = vpop.permute.xlu0 %1262 }
 0x475   :  { %v1238_v2 = vpack.c.bf16 %v1208_v19, %v1206_v25 }
 0x476   :  { %v1239_v27 = vpack.c.bf16 %v1209_v28, %v1207_v18 }
 0x478   :  { %1449 = vmatprep.subr.bf16.mxu1 %v1239_v27  ;;  %v1273_v0 = vpop.permute.xlu0 %1272  ;;  %v1298_v27 = vpop.permute.xlu1 %1297 }
 0x479   :  { %1450 = vmatpush1.bf16.msra.mxu1 %v1238_v2 }
 0x47c   :  { %3501 = vmatmul.mubr.msk.bf16.vlgmr.msra.gmra.mrb[48].mxu1 %vm1410_vm4, %v3667_v21  ;;  %v1283_v29 = vpop.permute.xlu0 %1282 }
 0x47d   :  { %1483 = vmatprep.mubr.bf16.mxu1 %v5403_v63 }
 0x480   :  { %v1293_v22 = vpop.permute.xlu0 %1292 }
 0x484   :  { %3502 = vmatmul.mubr.msk.bf16.gmra.mrb[52].mxu1 %vm1410_vm4, %v3668_v51 }
 0x485   :  { %1493 = vmatprep.mubr.bf16.mxu1 %v5403_v63 }
 0x48c   :  { %3503 = vmatmul.mubr.msk.bf16.gmra.mrb[56].mxu1 %vm1410_vm4, %v3669_v61 }
 0x48d   :  { %1503 = vmatprep.mubr.bf16.mxu1 %v5403_v63 }
 0x494   :  { %3504 = vmatmul.mubr.msk.bf16.gmra.mrb[60].mxu1 %vm1410_vm4, %v3670_v62 }
 0x495   :  { %1513 = vmatprep.mubr.bf16.mxu1 %v5403_v63 }
 0x49c   :  { %3505 = vmatmul.mubr.msk.bf16.gmra.mrb[64].mxu1 %vm1410_vm4, %v3671_v60 }
 0x49d   :  { %1523 = vmatprep.mubr.bf16.mxu1 %v5403_v63 }
 0x4a4   :  { %3506 = vmatmul.mubr.msk.bf16.gmra.mrb[68].mxu1 %vm1410_vm4, %v3672_v55 }
 0x4a5   :  { %1533 = vmatprep.mubr.bf16.mxu1 %v5403_v63 }
 0x4ac   :  { %3507 = vmatmul.mubr.msk.bf16.gmra.mrb[72].mxu1 %vm1410_vm4, %v3673_v3 }
 0x4ad   :  { %1543 = vmatprep.mubr.bf16.mxu1 %v5403_v63 }
 0x4b4   :  { %3508 = vmatmul.mubr.msk.bf16.gmra.mrb[76].mxu1 %vm1410_vm4, %v3674_v39 }
 0x4b5   :  { %1553 = vmatprep.mubr.bf16.mxu1 %v5403_v63 }
 0x4bc   :  { %3509 = vmatmul.mubr.msk.bf16.gmra.mrb[80].mxu1 %vm1410_vm4, %v3675_v40 }
 0x4bd   :  { %1563 = vmatprep.mubr.bf16.mxu1 %v5403_v63 }
 0x4c4   :  { %3510 = vmatmul.mubr.msk.bf16.gmra.mrb[84].mxu1 %vm1410_vm4, %v3676_v37 }
 0x54f   :  { %v1475_v41 = vpop.f32.mrb[48].mxu1 }
 0x550   :  { %v1477_v12 = vpop.f32.mrb[49].mxu1  ;;  %v4743_v53 = vadd.f32 %v1475_v41, %v1263_v17 }
 0x551   :  { %v4741_v35 = vadd.f32 %v1477_v12, %v1263_v17  ;;  %v1479_v38 = vpop.f32.mrb[50].mxu1  ;;  %v1303_v17 = vpop.permute.xlu0 %1302 }
 0x552   :  { %v4745_v43 = vadd.f32 %v1479_v38, %v1268_v15  ;;  %v1481_v30 = vpop.f32.mrb[51].mxu1  ;;  %v5397_v32 = vmax.f32 %v4743_v53, 0.0  ;;  %v1308_v38 = vpop.permute.xlu1 %1307 }
 0x553   :  { %v4747_v59 = vadd.f32 %v1481_v30, %v1268_v15  ;;  %v5395_v45 = vmax.f32 %v4741_v35, 0.0 }
 0x554   :  { %v5396_v44 = vmax.f32 %v4745_v43, 0.0 }
 0x555   :  { %v5394_v7 = vmax.f32 %v4747_v59, 0.0 }
 0x556   :  { %v1616_v49 = vpack.c.bf16 %v5396_v44, %v5397_v32 }
 0x557   :  { %v1617_v54 = vpack.c.bf16 %v5394_v7, %v5395_v45  ;;  %v1485_v5 = vpop.f32.mrb[52].mxu1 }
 0x558   :  { %v1487_v1 = vpop.f32.mrb[53].mxu1  ;;  %v4763_v57 = vadd.f32 %v1485_v5, %v1273_v0 }
 0x559   :  { %v4761_v23 = vadd.f32 %v1487_v1, %v1273_v0  ;;  %v1489_v8 = vpop.f32.mrb[54].mxu1  ;;  %1660 = vmatprep.subr.bf16.mxu0 %v1617_v54 }
 0x55a   :  { %v4765_v50 = vadd.f32 %v1489_v8, %v1278_v58  ;;  %v1491_v4 = vpop.f32.mrb[55].mxu1  ;;  %1661 = vmatpush1.bf16.msra.mxu0 %v1616_v49  ;;  %v5393_v46 = vmax.f32 %v4763_v57, 0.0 }
 0x55b   :  { %v4767_v9 = vadd.f32 %v1491_v4, %v1278_v58  ;;  %v5391_v20 = vmax.f32 %v4761_v23, 0.0 }
 0x55c   :  { %v5392_v48 = vmax.f32 %v4765_v50, 0.0 }
 0x55d   :  { %v5390_v6 = vmax.f32 %v4767_v9, 0.0 }
 0x55e   :  { %v1618_v34 = vpack.c.bf16 %v5392_v48, %v5393_v46 }
 0x55f   :  { %v1619_v11 = vpack.c.bf16 %v5390_v6, %v5391_v20  ;;  %v1495_v33 = vpop.f32.mrb[56].mxu1 }
 0x560   :  { %v1497_v31 = vpop.f32.mrb[57].mxu1  ;;  %v4783_v36 = vadd.f32 %v1495_v33, %v1283_v29 }
 0x561   :  { %v4781_v26 = vadd.f32 %v1497_v31, %v1283_v29  ;;  %v1499_v42 = vpop.f32.mrb[58].mxu1  ;;  %1662 = vmatprep.subr.bf16.mxu0 %v1619_v11 }
 0x562   :  { %v4785_v13 = vadd.f32 %v1499_v42, %v1288_v52  ;;  %v1501_v47 = vpop.f32.mrb[59].mxu1  ;;  %1663 = vmatpush1.bf16.msra.mxu0 %v1618_v34  ;;  %v5389_v18 = vmax.f32 %v4783_v36, 0.0  ;;  %v1313_v34 = vpop.permute.xlu0 %1312 }
 0x563   :  { %v4787_v24 = vadd.f32 %v1501_v47, %v1288_v52  ;;  %v5385_v25 = vmax.f32 %v4781_v26, 0.0  ;;  %v1318_v42 = vpop.permute.xlu1 %1317 }
 0x564   :  { %v5386_v14 = vmax.f32 %v4785_v13, 0.0 }
 0x565   :  { %v5380_v16 = vmax.f32 %v4787_v24, 0.0 }
 0x566   :  { %v1620_v28 = vpack.c.bf16 %v5386_v14, %v5389_v18 }
 0x567   :  { %v1621_v10 = vpack.c.bf16 %v5380_v16, %v5385_v25  ;;  %v1505_v19 = vpop.f32.mrb[60].mxu1 }
 0x568   :  { %v1507_v2 = vpop.f32.mrb[61].mxu1  ;;  %v4803_v61 = vadd.f32 %v1505_v19, %v1293_v22 }
 0x569   :  { %v4801_v21 = vadd.f32 %v1507_v2, %v1293_v22  ;;  %v1509_v51 = vpop.f32.mrb[62].mxu1  ;;  %1664 = vmatprep.subr.bf16.mxu0 %v1621_v10 }
 0x56a   :  { %v4805_v62 = vadd.f32 %v1509_v51, %v1298_v27  ;;  %v1511_v60 = vpop.f32.mrb[63].mxu1  ;;  %1665 = vmatpush1.bf16.msra.mxu0 %v1620_v28  ;;  %v5377_v37 = vmax.f32 %v4803_v61, 0.0 }
 0x56b   :  { %v4807_v55 = vadd.f32 %v1511_v60, %v1298_v27  ;;  %v5375_v39 = vmax.f32 %v4801_v21, 0.0 }
 0x56c   :  { %v5376_v3 = vmax.f32 %v4805_v62, 0.0 }
 0x56d   :  { %v5372_v40 = vmax.f32 %v4807_v55, 0.0 }
 0x56e   :  { %v1622_v12 = vpack.c.bf16 %v5376_v3, %v5377_v37 }
 0x56f   :  { %v1623_v56 = vpack.c.bf16 %v5372_v40, %v5375_v39  ;;  %v1515_v41 = vpop.f32.mrb[64].mxu1 }
 0x570   :  { %v1517_v15 = vpop.f32.mrb[65].mxu1  ;;  %v4823_v5 = vadd.f32 %v1515_v41, %v1303_v17 }
 0x571   :  { %v4821_v30 = vadd.f32 %v1517_v15, %v1303_v17  ;;  %v1519_v54 = vpop.f32.mrb[66].mxu1  ;;  %1666 = vmatprep.subr.bf16.mxu0 %v1623_v56 }
 0x572   :  { %v4825_v0 = vadd.f32 %v1519_v54, %v1308_v38  ;;  %v1521_v49 = vpop.f32.mrb[67].mxu1  ;;  %1667 = vmatpush1.bf16.msra.mxu0 %v1622_v12  ;;  %v5369_v11 = vmax.f32 %v4823_v5, 0.0  ;;  %v1323_v12 = vpop.permute.xlu0 %1322 }
 0x573   :  { %v4827_v1 = vadd.f32 %v1521_v49, %v1308_v38  ;;  %v5367_v8 = vmax.f32 %v4821_v30, 0.0  ;;  %v1328_v54 = vpop.permute.xlu1 %1327 }
 0x574   :  { %v5368_v58 = vmax.f32 %v4825_v0, 0.0 }
 0x575   :  { %v5364_v4 = vmax.f32 %v4827_v1, 0.0 }
 0x576   :  { %v1624_v31 = vpack.c.bf16 %v5368_v58, %v5369_v11 }
 0x577   :  { %v1625_v33 = vpack.c.bf16 %v5364_v4, %v5367_v8  ;;  %v1525_v29 = vpop.f32.mrb[68].mxu1 }
 0x578   :  { %v1527_v52 = vpop.f32.mrb[69].mxu1  ;;  %v4843_v19 = vadd.f32 %v1525_v29, %v1313_v34 }
 0x579   :  { %v4841_v47 = vadd.f32 %v1527_v52, %v1313_v34  ;;  %v1529_v10 = vpop.f32.mrb[70].mxu1  ;;  %1668 = vmatprep.subr.bf16.mxu0 %v1625_v33 }
 0x57a   :  { %v4845_v22 = vadd.f32 %v1529_v10, %v1318_v42  ;;  %v1531_v28 = vpop.f32.mrb[71].mxu1  ;;  %1669 = vmatpush1.bf16.msra.mxu0 %v1624_v31  ;;  %v5361_v56 = vmax.f32 %v4843_v19, 0.0 }
 0x57b   :  { %v4847_v2 = vadd.f32 %v1531_v28, %v1318_v42  ;;  %v5359_v51 = vmax.f32 %v4841_v47, 0.0 }
 0x57c   :  { %v5360_v27 = vmax.f32 %v4845_v22, 0.0 }
 0x57d   :  { %v5358_v60 = vmax.f32 %v4847_v2, 0.0 }
 0x57e   :  { %v1626_v15 = vpack.c.bf16 %v5360_v27, %v5361_v56 }
 0x57f   :  { %v1627_v41 = vpack.c.bf16 %v5358_v60, %v5359_v51  ;;  %v1535_v17 = vpop.f32.mrb[72].mxu1 }
 0x580   :  { %v1537_v38 = vpop.f32.mrb[73].mxu1  ;;  %v4863_v29 = vadd.f32 %v1535_v17, %v1323_v12 }
 0x581   :  { %v4861_v49 = vadd.f32 %v1537_v38, %v1323_v12  ;;  %v1539_v33 = vpop.f32.mrb[74].mxu1  ;;  %1670 = vmatprep.subr.bf16.mxu0 %v1627_v41  ;;  %v1333_v12 = vpop.permute.xlu0 %1332 }
 0x582   :  { %v4865_v34 = vadd.f32 %v1539_v33, %v1328_v54  ;;  %v1541_v31 = vpop.f32.mrb[75].mxu1  ;;  %1671 = vmatpush1.bf16.msra.mxu0 %v1626_v15  ;;  %v5366_v60 = vmax.f32 %v4863_v29, 0.0 }
 0x583   :  { %v4867_v52 = vadd.f32 %v1541_v31, %v1328_v54  ;;  %v5363_v10 = vmax.f32 %v4861_v49, 0.0  ;;  %v1338_v54 = vpop.permute.xlu1 %1337 }
 0x584   :  { %v5365_v42 = vmax.f32 %v4865_v34, 0.0 }
 0x585   :  { %v5362_v28 = vmax.f32 %v4867_v52, 0.0 }
 0x586   :  { %v1628_v15 = vpack.c.bf16 %v5365_v42, %v5366_v60 }
 0x587   :  { %v1629_v41 = vpack.c.bf16 %v5362_v28, %v5363_v10  ;;  %v1545_v17 = vpop.f32.mrb[76].mxu1 }
 0x588   :  { %v1547_v38 = vpop.f32.mrb[77].mxu1  ;;  %v4883_v51 = vadd.f32 %v1545_v17, %v1333_v12 }
 0x589   :  { %v4881_v33 = vadd.f32 %v1547_v38, %v1333_v12  ;;  %v1549_v31 = vpop.f32.mrb[78].mxu1  ;;  %1672 = vmatprep.subr.bf16.mxu0 %v1629_v41  ;;  %v1343_v12 = vpop.permute.xlu0 %1342 }
 0x58a   :  { %v4885_v27 = vadd.f32 %v1549_v31, %v1338_v54  ;;  %v1551_v56 = vpop.f32.mrb[79].mxu1  ;;  %1673 = vmatpush1.bf16.msra.mxu0 %v1628_v15  ;;  %v5374_v60 = vmax.f32 %v4883_v51, 0.0  ;;  %v1348_v38 = vpop.permute.xlu1 %1347 }
 0x58b   :  { %v4887_v28 = vadd.f32 %v1551_v56, %v1338_v54  ;;  %v5371_v4 = vmax.f32 %v4881_v33, 0.0 }
 0x58c   :  { %v5373_v10 = vmax.f32 %v4885_v27, 0.0 }
 0x58d   :  { %v5370_v42 = vmax.f32 %v4887_v28, 0.0 }
 0x58e   :  { %v1630_v56 = vpack.c.bf16 %v5373_v10, %v5374_v60 }
 0x58f   :  { %v1631_v41 = vpack.c.bf16 %v5370_v42, %v5371_v4  ;;  %v1555_v17 = vpop.f32.mrb[80].mxu1 }
 0x590   :  { %v1557_v15 = vpop.f32.mrb[81].mxu1  ;;  %v4903_v8 = vadd.f32 %v1555_v17, %v1343_v12 }
 0x591   :  { %v4901_v54 = vadd.f32 %v1557_v15, %v1343_v12  ;;  %v1559_v31 = vpop.f32.mrb[82].mxu1  ;;  %1674 = vmatprep.subr.bf16.mxu0 %v1631_v41  ;;  %v1353_v12 = vpop.permute.xlu0 %1352 }
 0x592   :  { %v4905_v58 = vadd.f32 %v1559_v31, %v1348_v38  ;;  %v1561_v11 = vpop.f32.mrb[83].mxu1  ;;  %1675 = vmatpush1.bf16.msra.mxu0 %v1630_v56  ;;  %v5382_v60 = vmax.f32 %v4903_v8, 0.0  ;;  %v1358_v15 = vpop.permute.xlu1 %1357 }
 0x593   :  { %v4907_v42 = vadd.f32 %v1561_v11, %v1348_v38  ;;  %v5379_v40 = vmax.f32 %v4901_v54, 0.0 }
 0x594   :  { %v5381_v4 = vmax.f32 %v4905_v58, 0.0 }
 0x595   :  { %v5378_v10 = vmax.f32 %v4907_v42, 0.0 }
 0x596   :  { %v1632_v11 = vpack.c.bf16 %v5381_v4, %v5382_v60 }
 0x597   :  { %v1633_v41 = vpack.c.bf16 %v5378_v10, %v5379_v40  ;;  %v1565_v17 = vpop.f32.mrb[84].mxu1 }
 0x598   :  { %v1567_v56 = vpop.f32.mrb[85].mxu1  ;;  %v4923_v39 = vadd.f32 %v1565_v17, %v1353_v12 }
 0x599   :  { %v4921_v38 = vadd.f32 %v1567_v56, %v1353_v12  ;;  %v1569_v31 = vpop.f32.mrb[86].mxu1  ;;  %1676 = vmatprep.subr.bf16.mxu0 %v1633_v41  ;;  %v1641_v12 = vpop.permute.xlu0 %1640 }
 0x59a   :  { %v4925_v3 = vadd.f32 %v1569_v31, %v1358_v15  ;;  %v1571_v37 = vpop.f32.mrb[87].mxu1  ;;  %1677 = vmatpush1.bf16.msra.mxu0 %v1632_v11  ;;  %v5388_v60 = vmax.f32 %v4923_v39, 0.0 }
 0x59b   :  { %v4927_v10 = vadd.f32 %v1571_v37, %v1358_v15  ;;  %v5384_v16 = vmax.f32 %v4921_v38, 0.0  ;;  %v3677_v37 = vld [vmem:[%s5308_s1 + $0x2b0] ss:$8 sps:$4 sm:$0x7f]  }
 0x59c   :  { %v5387_v40 = vmax.f32 %v4925_v3, 0.0 }
 0x59d   :  { %v5383_v4 = vmax.f32 %v4927_v10, 0.0 }
 0x59e   :  { %v1634_v17 = vpack.c.bf16 %v5387_v40, %v5388_v60 }
 0x59f   :  { %v1635_v41 = vpack.c.bf16 %v5383_v4, %v5384_v16 }
 0x5a1   :  { %1678 = vmatprep.subr.bf16.mxu0 %v1635_v41 }
 0x5a2   :  { %1679 = vmatpush1.bf16.msra.mxu0 %v1634_v17  ;;  %v3680_v17 = vld [vmem:[%s5308_s1 + $0x2c0] ss:$8 sps:$4 sm:$0xff]  }
 0x5a5   :  { %1693 = vmatmul.mubr.bf16.vlgmr.msra.gmra.mrb[80].mxu0 %v3677_v37  ;;  %v3681_v37 = vld [vmem:[%s5308_s1 + $0x2d0] ss:$8 sps:$4 sm:$0xff]  }
 0x5a6   :  { %1799 = vmatprep.mubr.bf16.mxu0 %v5403_v63 }
 0x678   :  { %v1694_v11 = vpop.f32.mrb[80].mxu0 }
 0x679   :  { %v1695_v56 = vadd.f32 %v1694_v11, %v1641_v12  ;;  %v1696_v15 = vpop.f32.mrb[81].mxu0 }
 0x67a   :  { %v1697_v31 = vadd.f32 %v1696_v15, %v1641_v12  ;;  %v1698_v4 = vpop.f32.mrb[82].mxu0 }
 0x67b   :  { %v1703_v16 = vmax.f32 %v1695_v56, 0.0  ;;  %v1700_v25 = vpop.f32.mrb[83].mxu0 }
 0x67c   :  { %v1704_v14 = vmax.f32 %v1697_v31, 0.0 }
 0x67d   :  { %v1717_v40 = vpack.c.bf16 %v1703_v16, %v1703_v16 }
 0x67e   :  { %v1718_v41 = vpack.c.bf16 %v1704_v14, %v1704_v14  ;;  %v1726_v14 = vpop.permute.xlu1 %1725 }
 0x67f   :  { %v1762_v60 = vsel %vm1760_vm5, %v1717_v40, 0 }
 0x680   :  { %3516 = vmatprep.subr.msk.bf16.mxu0 %vm1760_vm5, %v1718_v41 }
 0x681   :  { %1768 = vmatpush1.bf16.msra.mxu0 %v1762_v60  ;;  %v1731_v60 = vpop.permute.xlu0 %1730 }
 0x682   :  { %v1736_v16 = vpop.permute.xlu1 %1735 }
 0x684   :  { %3517 = vmatmul.mubr.msk.bf16.vlgmr.msra.gmra.mrb[84].mxu0 %vm1753_vm6, %v3680_v17 }
 0x685   :  { %1809 = vmatprep.mubr.bf16.mxu0 %v5403_v63  ;;  %v1741_v32 = vpop.permute.xlu0 %1740 }
 0x686   :  { %v1646_v40 = vpop.permute.xlu1 %1645 }
 0x687   :  { %v1701_v12 = vadd.f32 %v1700_v25, %v1646_v40  ;;  %v1699_v18 = vadd.f32 %v1698_v4, %v1646_v40 }
 0x689   :  { %v1706_v11 = vmul.f32 0.5, %v1701_v12  ;;  %v1705_v44 = vmul.f32 0.5, %v1699_v18 }
 0x68b   :  { %3751 = vtanh.f32 %v1706_v11 }
 0x68c   :  { %3518 = vmatmul.mubr.msk.bf16.gmra.mrb[88].mxu0 %vm1753_vm6, %v3681_v37 }
 0x68d   :  { %2001 = vmatprep.mubr.bf16.mxu0 %v5403_v63 }
 0x757   :  { %v1801_v56 = vpop.f32.mrb[84].mxu0 }
 0x758   :  { %v1802_v15 = vadd.f32 %v1801_v56, %v1726_v14  ;;  %v1803_v31 = vpop.f32.mrb[85].mxu0 }
 0x759   :  { %v1804_v41 = vadd.f32 %v1803_v31, %v1726_v14  ;;  %v1805_v17 = vpop.f32.mrb[86].mxu0 }
 0x75a   :  { %v1820_v6 = vmul.f32 0.5, %v1802_v15  ;;  %v1806_v20 = vadd.f32 %v1805_v17, %v1731_v60  ;;  %v1807_v48 = vpop.f32.mrb[87].mxu0 }
 0x75b   :  { %v1821_v46 = vmul.f32 0.5, %v1804_v41  ;;  %v1808_v37 = vadd.f32 %v1807_v48, %v1731_v60 }
 0x75c   :  { %3753 = vtanh.f32 %v1820_v6  ;;  %v1822_v7 = vmul.f32 0.5, %v1806_v20  ;;  %v3752_v20 = vpop.eup %3751 }
 0x75d   :  { %3755 = vtanh.f32 %v1821_v46  ;;  %v1823_v45 = vmul.f32 0.5, %v1808_v37 }
 0x75e   :  { %3757 = vtanh.f32 %v1822_v7 }
 0x75f   :  { %3759 = vtanh.f32 %v1823_v45  ;;  %v1811_v25 = vpop.f32.mrb[88].mxu0 }
 0x760   :  { %v1812_v12 = vadd.f32 %v1811_v25, %v1736_v16  ;;  %v1813_v56 = vpop.f32.mrb[89].mxu0  ;;  %3761 = vtanh.f32 %v1705_v44 }
 0x761   :  { %v1814_v14 = vadd.f32 %v1813_v56, %v1736_v16  ;;  %v1815_v31 = vpop.f32.mrb[90].mxu0  ;;  %v1710_v56 = vadd.f32 1.0, %v3752_v20 }
 0x762   :  { %v1824_v4 = vmul.f32 0.5, %v1812_v12  ;;  %v1816_v40 = vadd.f32 %v1815_v31, %v1741_v32  ;;  %v1817_v15 = vpop.f32.mrb[91].mxu0 }
 0x763   :  { %v1825_v11 = vmul.f32 0.5, %v1814_v14  ;;  %v1818_v41 = vadd.f32 %v1817_v15, %v1741_v32 }
 0x764   :  { %3763 = vtanh.f32 %v1824_v4  ;;  %v1826_v48 = vmul.f32 0.5, %v1816_v40 }
 0x765   :  { %3765 = vtanh.f32 %v1825_v11  ;;  %v1827_v6 = vmul.f32 0.5, %v1818_v41 }
 0x766   :  { %v3754_v46 = vpop.eup %3753  ;;  %3767 = vtanh.f32 %v1826_v48 }
 0x767   :  { %v3756_v45 = vpop.eup %3755  ;;  %v1836_v7 = vadd.f32 1.0, %v3754_v46  ;;  %3769 = vtanh.f32 %v1827_v6  ;;  %v1712_v6 = vmul.f32 0.5, %v1710_v56 }
 0x768   :  { %v3758_v18 = vpop.eup %3757  ;;  %v1837_v60 = vadd.f32 1.0, %v3756_v45 }
 0x769   :  { %v3760_v16 = vpop.eup %3759  ;;  %v1838_v17 = vadd.f32 1.0, %v3758_v18  ;;  %v1844_v37 = vmul.f32 0.5, %v1836_v7 }
 0x76a   :  { %v1839_v44 = vadd.f32 1.0, %v3760_v16  ;;  %v3762_v12 = vpop.eup %3761  ;;  %v1845_v32 = vmul.f32 0.5, %v1837_v60  ;;  %v3916_v16 = vmov 65535  }
 0x76b   :  { %v1846_v25 = vmul.f32 0.5, %v1838_v17  ;;  %v1709_v11 = vadd.f32 1.0, %v3762_v12  ;;  %v1961_v20 = vsel %vm1959_vm7, 4294967295, %v3916_v16  ;;  %v3691_v16 = vld [vmem:[%s5308_s1 + $0x370] ss:$8 sps:$4 sm:$0xff]  }
 0x76c   :  { %v1847_v14 = vmul.f32 0.5, %v1839_v44 }
 0x76d   :  { %v1872_v31 = vpack.c.bf16 %v1846_v25, %v1844_v37  ;;  %v1711_v60 = vmul.f32 0.5, %v1709_v11  ;;  %v1877_v37 = vpack.c.bf16 %v1712_v6, %v1712_v6  ;;  %v3683_v11 = vld [vmem:[%s5308_s1 + $0x2f0] ss:$8 sps:$4 sm:$0xff]   ;;  %v3686_v6 = vld [vmem:[%s5308_s1 + $0x320] ss:$8 sps:$4 sm:$0xff]  }
 0x76e   :  { %v3764_v4 = vpop.eup %3763  ;;  %v1873_v40 = vpack.c.bf16 %v1847_v14, %v1845_v32  ;;  %v1962_v14 = vsel %vm1960_vm8, %v1961_v20, 0  ;;  %v3694_v20 = vld [vmem:[%s5308_s1 + $0x384] ss:$8 sps:$4 sm:$0xff]  }
 0x76f   :  { %v3766_v15 = vpop.eup %3765  ;;  %v1840_v41 = vadd.f32 1.0, %v3764_v4  ;;  %v1876_v56 = vpack.c.bf16 %v1711_v60, %v1711_v60  ;;  %3555 = vmatprep.mubr.msk.bf16.mxu1 %vm479_vm2, %v3694_v20 }
 0x770   :  { %v3768_v48 = vpop.eup %3767  ;;  %v1841_v46 = vadd.f32 1.0, %v3766_v15  ;;  %1969 = vmatprep.subr.bf16.mxu0 %v1873_v40  ;;  %v1967_v40 = vand.u32 %v1962_v14, %v1877_v37  ;;  %v3682_v15 = vld [vmem:[%s5308_s1 + $0x2e0] ss:$8 sps:$4 sm:$0xff]   ;;  %v5449_v37 = vmax.f32 %v4743_v53, 0.0  ;;  %v5453_v53 = vmax.f32 %v4763_v57, 0.0 }
 0x771   :  { %v3770_v45 = vpop.eup %3769  ;;  %v1842_v18 = vadd.f32 1.0, %v3768_v48  ;;  %1970 = vmatpush1.bf16.msra.mxu0 %v1872_v31  ;;  %v1848_v17 = vmul.f32 0.5, %v1840_v41  ;;  %v1964_v31 = vand.u32 %v1962_v14, %v1876_v56  ;;  %v3684_v41 = vld [vmem:[%s5308_s1 + $0x300] ss:$8 sps:$4 sm:$0xff]   ;;  %v3685_v48 = vld [vmem:[%s5308_s1 + $0x310] ss:$8 sps:$4 sm:$0xff]  }
 0x772   :  { %v1843_v7 = vadd.f32 1.0, %v3770_v45  ;;  %v1849_v25 = vmul.f32 0.5, %v1841_v46  ;;  %v3687_v46 = vld [vmem:[%s5308_s1 + $0x330] ss:$8 sps:$4 sm:$0xff]   ;;  %v3688_v45 = vld [vmem:[%s5308_s1 + $0x340] ss:$8 sps:$4 sm:$0xff]  }
 0x773   :  { %v1850_v44 = vmul.f32 0.5, %v1842_v18  ;;  %v3689_v18 = vld [vmem:[%s5308_s1 + $0x350] ss:$8 sps:$4 sm:$0xff]   ;;  %v5457_v57 = vmax.f32 %v4783_v36, 0.0  ;;  %v5461_v36 = vmax.f32 %v4803_v61, 0.0  ;;  %v5465_v61 = vmax.f32 %v4823_v5, 0.0 }
 0x774   :  { %v1851_v32 = vmul.f32 0.5, %v1843_v7  ;;  %v3690_v7 = vld [vmem:[%s5308_s1 + $0x360] ss:$8 sps:$4 sm:$0xff]   ;;  %v5469_v5 = vmax.f32 %v4843_v19, 0.0  ;;  %v5473_v19 = vmax.f32 %v4863_v29, 0.0  ;;  %v5477_v29 = vmax.f32 %v4883_v51, 0.0 }
 0x775   :  { %v1874_v12 = vpack.c.bf16 %v1850_v44, %v1848_v17  ;;  %v5481_v51 = vmax.f32 %v4903_v8, 0.0  ;;  %v5485_v8 = vmax.f32 %v4923_v39, 0.0  ;;  %v3697_v39 = vld [vmem:[%s5308_s1 + $0x390] ss:$8 sps:$4 sm:$0xff]  }
 0x776   :  { %v1875_v4 = vpack.c.bf16 %v1851_v32, %v1849_v25  ;;  %v5450_v32 = vmax.f32 %v4745_v43, 0.0  ;;  %v5454_v43 = vmax.f32 %v4765_v50, 0.0  ;;  %v5458_v50 = vmax.f32 %v4785_v13, 0.0 }
 0x777   :  { %v5462_v13 = vmax.f32 %v4805_v62, 0.0  ;;  %v5466_v62 = vmax.f32 %v4825_v0, 0.0  ;;  %v5470_v0 = vmax.f32 %v4845_v22, 0.0  ;;  %v5474_v22 = vmax.f32 %v4865_v34, 0.0 }
 0x778   :  { %1971 = vmatprep.subr.bf16.mxu0 %v1875_v4  ;;  %v5451_v4 = vmax.f32 %v4741_v35, 0.0  ;;  %v5455_v35 = vmax.f32 %v4761_v23, 0.0  ;;  %v5459_v23 = vmax.f32 %v4781_v26, 0.0  ;;  %v5463_v26 = vmax.f32 %v4801_v21, 0.0 }
 0x779   :  { %1972 = vmatpush1.bf16.msra.mxu0 %v1874_v12  ;;  %v5467_v21 = vmax.f32 %v4821_v30, 0.0  ;;  %v5471_v30 = vmax.f32 %v4841_v47, 0.0  ;;  %v5475_v47 = vmax.f32 %v4861_v49, 0.0  ;;  %v5478_v34 = vmax.f32 %v4885_v27, 0.0 }
 0x77a   :  { %1973 = vmatprep.subr.bf16.mxu0 %v1967_v40  ;;  %v5452_v40 = vmax.f32 %v4747_v59, 0.0  ;;  %v5456_v59 = vmax.f32 %v4767_v9, 0.0  ;;  %v5460_v9 = vmax.f32 %v4787_v24, 0.0  ;;  %v5464_v24 = vmax.f32 %v4807_v55, 0.0 }
 0x77b   :  { %v5468_v55 = vmax.f32 %v4827_v1, 0.0  ;;  %v5472_v1 = vmax.f32 %v4847_v2, 0.0  ;;  %v5476_v2 = vmax.f32 %v4867_v52, 0.0  ;;  %v5479_v49 = vmax.f32 %v4881_v33, 0.0 }
 0x77c   :  { %v5480_v52 = vmax.f32 %v4887_v28, 0.0  ;;  %v5482_v27 = vmax.f32 %v4905_v58, 0.0  ;;  %v5483_v33 = vmax.f32 %v4901_v54, 0.0  ;;  %v5484_v28 = vmax.f32 %v4907_v42, 0.0 }
 0x77d   :  { %1974 = vmatpush1.bf16.msra.mxu0 %v1964_v31  ;;  %v5486_v58 = vmax.f32 %v4925_v3, 0.0  ;;  %v5487_v54 = vmax.f32 %v4921_v38, 0.0  ;;  %v5488_v42 = vmax.f32 %v4927_v10, 0.0  ;;  %v3695_v3 = vld [vmem:[%s5308_s1 + $0x394] ss:$8 sps:$4 sm:$0xff]  }
 0x77e   :  { %v3698_v10 = vld [vmem:[%s5308_s1 + $0x3a4] ss:$8 sps:$4 sm:$0xff]   ;;  %v3700_v38 = vld [vmem:[%s5308_s1 + $0x3a0] ss:$8 sps:$4 sm:$0xff]  }
 0x780   :  { %3529 = vmatmul.mubr.msk.bf16.vlgmr.msra.gmra.mrb[92].mxu0 %vm1928_vm9, %v3682_v15 }
 0x781   :  { %2011 = vmatprep.mubr.bf16.mxu0 %v5403_v63 }
 0x788   :  { %3530 = vmatmul.mubr.msk.bf16.gmra.mrb[96].mxu0 %vm1928_vm9, %v3683_v11 }
 0x789   :  { %2021 = vmatprep.mubr.bf16.mxu0 %v5403_v63 }
 0x790   :  { %3531 = vmatmul.mubr.msk.bf16.gmra.mrb[100].mxu0 %vm1928_vm9, %v3684_v41 }
 0x791   :  { %2031 = vmatprep.mubr.bf16.mxu0 %v5403_v63 }
 0x798   :  { %3532 = vmatmul.mubr.msk.bf16.gmra.mrb[104].mxu0 %vm1928_vm9, %v3685_v48 }
 0x799   :  { %2041 = vmatprep.mubr.bf16.mxu0 %v5403_v63 }
 0x7a0   :  { %3533 = vmatmul.mubr.msk.bf16.gmra.mrb[108].mxu0 %vm1928_vm9, %v3686_v6 }
 0x7a1   :  { %2051 = vmatprep.mubr.bf16.mxu0 %v5403_v63 }
 0x7a8   :  { %3534 = vmatmul.mubr.msk.bf16.gmra.mrb[112].mxu0 %vm1928_vm9, %v3687_v46 }
 0x7a9   :  { %2061 = vmatprep.mubr.bf16.mxu0 %v5403_v63 }
 0x7b0   :  { %3535 = vmatmul.mubr.msk.bf16.gmra.mrb[116].mxu0 %vm1928_vm9, %v3688_v45 }
 0x7b1   :  { %2071 = vmatprep.mubr.bf16.mxu0 %v5403_v63 }
 0x7b8   :  { %3536 = vmatmul.mubr.msk.bf16.gmra.mrb[120].mxu0 %vm1928_vm9, %v3689_v18 }
 0x7b9   :  { %2081 = vmatprep.mubr.bf16.mxu0 %v5403_v63 }
 0x7c0   :  { %3537 = vmatmul.mubr.msk.bf16.gmra.mrb[124].mxu0 %vm1928_vm9, %v3690_v7 }
 0x7c1   :  { %2091 = vmatprep.mubr.bf16.mxu0 %v5403_v63 }
 0x7c8   :  { %3538 = vmatmul.mubr.msk.bf16.gmra.mrb[128].mxu0 %vm1928_vm9, %v3691_v16 }
 0x7c9   :  { %2677 = vmatprep.mubr.bf16.mxu0 %v5403_v63 }
 0x853   :  { %v2003_v60 = vpop.f32.mrb[92].mxu0 }
 0x854   :  { %v2005_v17 = vpop.f32.mrb[93].mxu0  ;;  %v2102_v25 = vmul.f32 %v2003_v60, %v5449_v37 }
 0x855   :  { %v2007_v44 = vpop.f32.mrb[94].mxu0  ;;  %v2103_v56 = vmul.f32 %v2005_v17, %v5451_v4 }
 0x856   :  { %v2104_v12 = vmul.f32 %v2007_v44, %v5450_v32  ;;  %v2009_v14 = vpop.f32.mrb[95].mxu0 }
 0x857   :  { %v2105_v31 = vmul.f32 %v2009_v14, %v5452_v40 }
 0x858   :  { %v2158_v15 = vpack.c.bf16 %v2104_v12, %v2102_v25 }
 0x859   :  { %v2159_v11 = vpack.c.bf16 %v2105_v31, %v2103_v56 }
 0x85b   :  { %v2013_v41 = vpop.f32.mrb[96].mxu0  ;;  %2274 = vmatprep.subr.bf16.mxu1 %v2159_v11 }
 0x85c   :  { %v2015_v48 = vpop.f32.mrb[97].mxu0  ;;  %2275 = vmatpush1.bf16.msra.mxu1 %v2158_v15  ;;  %v2106_v46 = vmul.f32 %v2013_v41, %v5453_v53 }
 0x85d   :  { %v2017_v6 = vpop.f32.mrb[98].mxu0  ;;  %v2107_v7 = vmul.f32 %v2015_v48, %v5455_v35 }
 0x85e   :  { %v2108_v45 = vmul.f32 %v2017_v6, %v5454_v43  ;;  %v2019_v18 = vpop.f32.mrb[99].mxu0 }
 0x85f   :  { %v2109_v16 = vmul.f32 %v2019_v18, %v5456_v59 }
 0x860   :  { %v2160_v20 = vpack.c.bf16 %v2108_v45, %v2106_v46 }
 0x861   :  { %v2161_v60 = vpack.c.bf16 %v2109_v16, %v2107_v7 }
 0x863   :  { %v2023_v17 = vpop.f32.mrb[100].mxu0  ;;  %2276 = vmatprep.subr.bf16.mxu1 %v2161_v60 }
 0x864   :  { %v2025_v44 = vpop.f32.mrb[101].mxu0  ;;  %2277 = vmatpush1.bf16.msra.mxu1 %v2160_v20  ;;  %v2110_v25 = vmul.f32 %v2023_v17, %v5457_v57 }
 0x865   :  { %v2027_v37 = vpop.f32.mrb[102].mxu0  ;;  %v2111_v14 = vmul.f32 %v2025_v44, %v5459_v23 }
 0x866   :  { %v2112_v32 = vmul.f32 %v2027_v37, %v5458_v50  ;;  %v2029_v12 = vpop.f32.mrb[103].mxu0 }
 0x867   :  { %v2113_v4 = vmul.f32 %v2029_v12, %v5460_v9 }
 0x868   :  { %v2162_v56 = vpack.c.bf16 %v2112_v32, %v2110_v25 }
 0x869   :  { %v2163_v40 = vpack.c.bf16 %v2113_v4, %v2111_v14 }
 0x86b   :  { %v2033_v31 = vpop.f32.mrb[104].mxu0  ;;  %2278 = vmatprep.subr.bf16.mxu1 %v2163_v40 }
 0x86c   :  { %v2035_v15 = vpop.f32.mrb[105].mxu0  ;;  %2279 = vmatpush1.bf16.msra.mxu1 %v2162_v56  ;;  %v2114_v41 = vmul.f32 %v2033_v31, %v5461_v36 }
 0x86d   :  { %v2037_v11 = vpop.f32.mrb[106].mxu0  ;;  %v2115_v53 = vmul.f32 %v2035_v15, %v5463_v26 }
 0x86e   :  { %v2116_v48 = vmul.f32 %v2037_v11, %v5462_v13  ;;  %v2039_v6 = vpop.f32.mrb[107].mxu0 }
 0x86f   :  { %v2117_v46 = vmul.f32 %v2039_v6, %v5464_v24 }
 0x870   :  { %v2164_v43 = vpack.c.bf16 %v2116_v48, %v2114_v41 }
 0x871   :  { %v2165_v45 = vpack.c.bf16 %v2117_v46, %v2115_v53 }
 0x873   :  { %v2043_v18 = vpop.f32.mrb[108].mxu0  ;;  %2280 = vmatprep.subr.bf16.mxu1 %v2165_v45 }
 0x874   :  { %v2045_v35 = vpop.f32.mrb[109].mxu0  ;;  %2281 = vmatpush1.bf16.msra.mxu1 %v2164_v43  ;;  %v2118_v59 = vmul.f32 %v2043_v18, %v5465_v61 }
 0x875   :  { %v2047_v7 = vpop.f32.mrb[110].mxu0  ;;  %v2119_v60 = vmul.f32 %v2045_v35, %v5467_v21 }
 0x876   :  { %v2120_v16 = vmul.f32 %v2047_v7, %v5466_v62  ;;  %v2049_v20 = vpop.f32.mrb[111].mxu0 }
 0x877   :  { %v2121_v17 = vmul.f32 %v2049_v20, %v5468_v55 }
 0x878   :  { %v2166_v44 = vpack.c.bf16 %v2120_v16, %v2118_v59 }
 0x879   :  { %v2167_v37 = vpack.c.bf16 %v2121_v17, %v2119_v60 }
 0x87b   :  { %v2053_v57 = vpop.f32.mrb[112].mxu0  ;;  %2282 = vmatprep.subr.bf16.mxu1 %v2167_v37 }
 0x87c   :  { %v2055_v25 = vpop.f32.mrb[113].mxu0  ;;  %2283 = vmatpush1.bf16.msra.mxu1 %v2166_v44  ;;  %v2122_v32 = vmul.f32 %v2053_v57, %v5469_v5 }
 0x87d   :  { %v2057_v50 = vpop.f32.mrb[114].mxu0  ;;  %v2123_v14 = vmul.f32 %v2055_v25, %v5471_v30 }
 0x87e   :  { %v2124_v12 = vmul.f32 %v2057_v50, %v5470_v0  ;;  %v2059_v23 = vpop.f32.mrb[115].mxu0 }
 0x87f   :  { %v2125_v9 = vmul.f32 %v2059_v23, %v5472_v1 }
 0x880   :  { %v2168_v4 = vpack.c.bf16 %v2124_v12, %v2122_v32 }
 0x881   :  { %v2169_v56 = vpack.c.bf16 %v2125_v9, %v2123_v14  ;;  %v3692_v9 = vld [vmem:[%s5308_s1 + $0x380] ss:$8 sps:$4 sm:$0xff]  }
 0x883   :  { %v2063_v40 = vpop.f32.mrb[116].mxu0  ;;  %2284 = vmatprep.subr.bf16.mxu1 %v2169_v56  ;;  %v3703_v56 = vld [vmem:[%s5308_s1 + $0x3b0] ss:$8 sps:$4 sm:$0xff]  }
 0x884   :  { %v2065_v31 = vpop.f32.mrb[117].mxu0  ;;  %2285 = vmatpush1.bf16.msra.mxu1 %v2168_v4  ;;  %v2126_v11 = vmul.f32 %v2063_v40, %v5473_v19  ;;  %v3701_v4 = vld [vmem:[%s5308_s1 + $0x3b4] ss:$8 sps:$4 sm:$0xff]   ;;  %v3704_v40 = vld [vmem:[%s5308_s1 + $0x3c4] ss:$8 sps:$4 sm:$0xff]  }
 0x885   :  { %v2067_v15 = vpop.f32.mrb[118].mxu0  ;;  %v2127_v13 = vmul.f32 %v2065_v31, %v5475_v47  ;;  %v3706_v31 = vld [vmem:[%s5308_s1 + $0x3c0] ss:$8 sps:$4 sm:$0xff]   ;;  %v3709_v19 = vld [vmem:[%s5308_s1 + $0x3d0] ss:$8 sps:$4 sm:$0xff]  }
 0x886   :  { %v2128_v36 = vmul.f32 %v2067_v15, %v5474_v22  ;;  %v2069_v41 = vpop.f32.mrb[119].mxu0  ;;  %v3707_v15 = vld [vmem:[%s5308_s1 + $0x3d4] ss:$8 sps:$4 sm:$0xff]   ;;  %v3712_v22 = vld [vmem:[%s5308_s1 + $0x3e0] ss:$8 sps:$4 sm:$0xff]  }
 0x887   :  { %v2129_v48 = vmul.f32 %v2069_v41, %v5476_v2  ;;  %v3715_v41 = vld [vmem:[%s5308_s1 + $0x3f0] ss:$8 sps:$4 sm:$0xff]  }
 0x888   :  { %v2170_v6 = vpack.c.bf16 %v2128_v36, %v2126_v11  ;;  %v3710_v11 = vld [vmem:[%s5308_s1 + $0x3e4] ss:$8 sps:$4 sm:$0xff]   ;;  %v3713_v36 = vld [vmem:[%s5308_s1 + $0x3f4] ss:$8 sps:$4 sm:$0xff]  }
 0x889   :  { %v2171_v26 = vpack.c.bf16 %v2129_v48, %v2127_v13 }
 0x88b   :  { %v2073_v53 = vpop.f32.mrb[120].mxu0  ;;  %2286 = vmatprep.subr.bf16.mxu1 %v2171_v26 }
 0x88c   :  { %v2075_v24 = vpop.f32.mrb[121].mxu0  ;;  %2287 = vmatpush1.bf16.msra.mxu1 %v2170_v6  ;;  %v2130_v43 = vmul.f32 %v2073_v53, %v5477_v29 }
 0x88d   :  { %v2077_v46 = vpop.f32.mrb[122].mxu0  ;;  %v2131_v35 = vmul.f32 %v2075_v24, %v5479_v49 }
 0x88e   :  { %v2132_v45 = vmul.f32 %v2077_v46, %v5478_v34  ;;  %v2079_v18 = vpop.f32.mrb[123].mxu0 }
 0x88f   :  { %v2133_v7 = vmul.f32 %v2079_v18, %v5480_v52 }
 0x890   :  { %v2172_v61 = vpack.c.bf16 %v2132_v45, %v2130_v43 }
 0x891   :  { %v2173_v59 = vpack.c.bf16 %v2133_v7, %v2131_v35 }
 0x893   :  { %v2083_v62 = vpop.f32.mrb[124].mxu0  ;;  %2288 = vmatprep.subr.bf16.mxu1 %v2173_v59 }
 0x894   :  { %v2085_v16 = vpop.f32.mrb[125].mxu0  ;;  %2289 = vmatpush1.bf16.msra.mxu1 %v2172_v61  ;;  %v2134_v21 = vmul.f32 %v2083_v62, %v5481_v51 }
 0x895   :  { %v2087_v20 = vpop.f32.mrb[126].mxu0  ;;  %v2135_v17 = vmul.f32 %v2085_v16, %v5483_v33 }
 0x896   :  { %v2136_v60 = vmul.f32 %v2087_v20, %v5482_v27  ;;  %v2089_v55 = vpop.f32.mrb[127].mxu0 }
 0x897   :  { %v2137_v44 = vmul.f32 %v2089_v55, %v5484_v28 }
 0x898   :  { %v2174_v37 = vpack.c.bf16 %v2136_v60, %v2134_v21 }
 0x899   :  { %v2175_v57 = vpack.c.bf16 %v2137_v44, %v2135_v17 }
 0x89b   :  { %v2093_v25 = vpop.f32.mrb[128].mxu0  ;;  %2290 = vmatprep.subr.bf16.mxu1 %v2175_v57 }
 0x89c   :  { %v2095_v50 = vpop.f32.mrb[129].mxu0  ;;  %2291 = vmatpush1.bf16.msra.mxu1 %v2174_v37  ;;  %v2138_v32 = vmul.f32 %v2093_v25, %v5485_v8 }
 0x89d   :  { %v2097_v5 = vpop.f32.mrb[130].mxu0  ;;  %v2139_v23 = vmul.f32 %v2095_v50, %v5487_v54 }
 0x89e   :  { %v2140_v0 = vmul.f32 %v2097_v5, %v5486_v58  ;;  %v2099_v12 = vpop.f32.mrb[131].mxu0 }
 0x89f   :  { %v2141_v30 = vmul.f32 %v2099_v12, %v5488_v42 }
 0x8a0   :  { %v2176_v14 = vpack.c.bf16 %v2140_v0, %v2138_v32 }
 0x8a1   :  { %v2177_v1 = vpack.c.bf16 %v2141_v30, %v2139_v23 }
 0x8a3   :  { %2292 = vmatprep.subr.bf16.mxu1 %v2177_v1 }
 0x8a4   :  { %2293 = vmatpush1.bf16.msra.mxu1 %v2176_v14 }
 0x8a7   :  { %2307 = vmatmul.mubr.bf16.vlgmr.msra.gmra.mrb[88].mxu1 %v3692_v9 }
 0x8a8   :  { %3556 = vmatprep.mubr.msk.bf16.mxu1 %vm479_vm2, %v3695_v3 }
 0x8af   :  { %2317 = vmatmul.mubr.bf16.gmra.mrb[92].mxu1 %v3697_v39 }
 0x8b0   :  { %3557 = vmatprep.mubr.msk.bf16.mxu1 %vm479_vm2, %v3698_v10 }
 0x8b7   :  { %2327 = vmatmul.mubr.bf16.gmra.mrb[96].mxu1 %v3700_v38 }
 0x8b8   :  { %3558 = vmatprep.mubr.msk.bf16.mxu1 %vm479_vm2, %v3701_v4 }
 0x8bf   :  { %2337 = vmatmul.mubr.bf16.gmra.mrb[100].mxu1 %v3703_v56 }
 0x8c0   :  { %3559 = vmatprep.mubr.msk.bf16.mxu1 %vm479_vm2, %v3704_v40 }
 0x8c7   :  { %2347 = vmatmul.mubr.bf16.gmra.mrb[104].mxu1 %v3706_v31  ;;  %v3716_v31 = vld [vmem:[%s5308_s1 + $0x400] ss:$8 sps:$4 sm:$0xff]  }
 0x8c8   :  { %3560 = vmatprep.mubr.msk.bf16.mxu1 %vm479_vm2, %v3707_v15  ;;  %v3717_v15 = vld [vmem:[%s5308_s1 + $0x410] ss:$8 sps:$4 sm:$0xff]  }
 0x8cf   :  { %2357 = vmatmul.mubr.bf16.gmra.mrb[108].mxu1 %v3709_v19  ;;  %v3718_v19 = vld [vmem:[%s5308_s1 + $0x420] ss:$8 sps:$4 sm:$0xff]  }
 0x8d0   :  { %3561 = vmatprep.mubr.msk.bf16.mxu1 %vm479_vm2, %v3710_v11  ;;  %v3719_v11 = vld [vmem:[%s5308_s1 + $0x430] ss:$8 sps:$4 sm:$0xff]  }
 0x8d7   :  { %2367 = vmatmul.mubr.bf16.gmra.mrb[112].mxu1 %v3712_v22  ;;  %v3720_v22 = vld [vmem:[%s5308_s1 + $0x440] ss:$8 sps:$4 sm:$0xff]  }
 0x8d8   :  { %3562 = vmatprep.mubr.msk.bf16.mxu1 %vm479_vm2, %v3713_v36  ;;  %v3721_v36 = vld [vmem:[%s5308_s1 + $0x450] ss:$8 sps:$4 sm:$0xff]  }
 0x8df   :  { %2377 = vmatmul.mubr.bf16.gmra.mrb[116].mxu1 %v3715_v41  ;;  %v3722_v41 = vld [vmem:[%s5308_s1 + $0x460] ss:$8 sps:$4 sm:$0xff]  }
 0x8e0   :  { %3177 = vmatprep.mubr.bf16.mxu1 %v5403_v63 }
 0x97a   :  { %v2308_v47 = vpop.f32.mrb[88].mxu1 }
 0x97b   :  { %v2310_v13 = vpop.f32.mrb[89].mxu1 }
 0x97c   :  { %v2312_v2 = vpop.f32.mrb[90].mxu1 }
 0x97d   :  { %v2314_v48 = vpop.f32.mrb[91].mxu1 }
 0x982   :  { %v2318_v6 = vpop.f32.mrb[92].mxu1 }
 0x983   :  { %v2320_v26 = vpop.f32.mrb[93].mxu1 }
 0x984   :  { %v2322_v53 = vpop.f32.mrb[94].mxu1 }
 0x985   :  { %v2324_v24 = vpop.f32.mrb[95].mxu1 }
 0x98a   :  { %v2328_v46 = vpop.f32.mrb[96].mxu1 }
 0x98b   :  { %v2330_v29 = vpop.f32.mrb[97].mxu1 }
 0x98c   :  { %v2332_v43 = vpop.f32.mrb[98].mxu1 }
 0x98d   :  { %v2334_v34 = vpop.f32.mrb[99].mxu1 }
 0x992   :  { %v2338_v45 = vpop.f32.mrb[100].mxu1 }
 0x993   :  { %v2340_v18 = vpop.f32.mrb[101].mxu1 }
 0x994   :  { %v2342_v49 = vpop.f32.mrb[102].mxu1 }
 0x995   :  { %v2344_v35 = vpop.f32.mrb[103].mxu1 }
 0x99a   :  { %v2348_v52 = vpop.f32.mrb[104].mxu1 }
 0x99b   :  { %v2387_v7 = vmax.f32 %v2308_v47, %v2348_v52  ;;  %v2350_v61 = vpop.f32.mrb[105].mxu1  ;;  %v3723_v47 = vld [vmem:[%s5308_s1 + $0x470] ss:$8 sps:$4 sm:$0xff]  }
 0x99c   :  { %v2388_v59 = vmax.f32 %v2310_v13, %v2350_v61  ;;  %v2352_v62 = vpop.f32.mrb[106].mxu1  ;;  %v3724_v13 = vld [vmem:[%s5308_s1 + $0x480] ss:$8 sps:$4 sm:$0xff]  }
 0x99d   :  { %v2389_v16 = vmax.f32 %v2312_v2, %v2352_v62  ;;  %v2354_v20 = vpop.f32.mrb[107].mxu1  ;;  %v3725_v2 = vld [vmem:[%s5308_s1 + $0x490] ss:$8 sps:$4 sm:$0xff]  }
 0x99e   :  { %v2390_v51 = vmax.f32 %v2314_v48, %v2354_v20  ;;  %v3726_v48 = vld [vmem:[%s5308_s1 + $0x4a0] ss:$0 sps:$4 sm:$0xff]  }
 0x99f   :  { %v2424_v21 = vpack.c.bf16 %v2389_v16, %v2387_v7 }
 0x9a0   :  { %v2425_v27 = vpack.c.bf16 %v2390_v51, %v2388_v59 }
 0x9a2   :  { %v2358_v60 = vpop.f32.mrb[108].mxu1  ;;  %2645 = vmatprep.subr.bf16.mxu0 %v2425_v27 }
 0x9a3   :  { %v2391_v55 = vmax.f32 %v2318_v6, %v2358_v60  ;;  %v2360_v33 = vpop.f32.mrb[109].mxu1  ;;  %2646 = vmatpush1.bf16.msra.mxu0 %v2424_v21 }
 0x9a4   :  { %v2392_v17 = vmax.f32 %v2320_v26, %v2360_v33  ;;  %v2362_v28 = vpop.f32.mrb[110].mxu1 }
 0x9a5   :  { %v2393_v44 = vmax.f32 %v2322_v53, %v2362_v28  ;;  %v2364_v37 = vpop.f32.mrb[111].mxu1  ;;  %v2461_v53 = vpop.permute.xlu1 %2460 }
 0x9a6   :  { %v2394_v57 = vmax.f32 %v2324_v24, %v2364_v37 }
 0x9a7   :  { %v2426_v25 = vpack.c.bf16 %v2393_v44, %v2391_v55 }
 0x9a8   :  { %v2427_v50 = vpack.c.bf16 %v2394_v57, %v2392_v17 }
 0x9aa   :  { %v2368_v5 = vpop.f32.mrb[112].mxu1  ;;  %2647 = vmatprep.subr.bf16.mxu0 %v2427_v50 }
 0x9ab   :  { %v2395_v8 = vmax.f32 %v2328_v46, %v2368_v5  ;;  %v2370_v32 = vpop.f32.mrb[113].mxu1  ;;  %2648 = vmatpush1.bf16.msra.mxu0 %v2426_v25 }
 0x9ac   :  { %v2396_v58 = vmax.f32 %v2330_v29, %v2370_v32  ;;  %v2372_v0 = vpop.f32.mrb[114].mxu1  ;;  %v2456_v29 = vpop.permute.xlu0 %2455 }
 0x9ad   :  { %v2397_v12 = vmax.f32 %v2332_v43, %v2372_v0  ;;  %v2374_v54 = vpop.f32.mrb[115].mxu1  ;;  %v2471_v43 = vpop.permute.xlu1 %2470 }
 0x9ae   :  { %v2398_v23 = vmax.f32 %v2334_v34, %v2374_v54 }
 0x9af   :  { %v2428_v42 = vpack.c.bf16 %v2397_v12, %v2395_v8 }
 0x9b0   :  { %v2429_v30 = vpack.c.bf16 %v2398_v23, %v2396_v58 }
 0x9b1   :  { %v2496_v52 = vpop.permute.xlu1 %2495 }
 0x9b2   :  { %v2378_v14 = vpop.f32.mrb[116].mxu1  ;;  %2649 = vmatprep.subr.bf16.mxu0 %v2429_v30 }
 0x9b3   :  { %v2399_v1 = vmax.f32 %v2338_v45, %v2378_v14  ;;  %v2380_v9 = vpop.f32.mrb[117].mxu1  ;;  %2650 = vmatpush1.bf16.msra.mxu0 %v2428_v42 }
 0x9b4   :  { %v2400_v3 = vmax.f32 %v2340_v18, %v2380_v9  ;;  %v2382_v39 = vpop.f32.mrb[118].mxu1 }
 0x9b5   :  { %v2401_v10 = vmax.f32 %v2342_v49, %v2382_v39  ;;  %v2384_v38 = vpop.f32.mrb[119].mxu1  ;;  %v2481_v33 = vpop.permute.xlu1 %2480 }
 0x9b6   :  { %v2402_v4 = vmax.f32 %v2344_v35, %v2384_v38  ;;  %v2466_v35 = vpop.permute.xlu0 %2465 }
 0x9b7   :  { %v2430_v56 = vpack.c.bf16 %v2401_v10, %v2399_v1 }
 0x9b8   :  { %v2431_v40 = vpack.c.bf16 %v2402_v4, %v2400_v3 }
 0x9b9   :  { %v5197_v32 = vpop.permute.xlu1 %2505 }
 0x9ba   :  { %2651 = vmatprep.subr.bf16.mxu0 %v2431_v40  ;;  %v2491_v16 = vpop.permute.xlu0 %2490 }
 0x9bb   :  { %2652 = vmatpush1.bf16.msra.mxu0 %v2430_v56 }
 0x9bd   :  { %v5199_v39 = vpop.permute.xlu1 %2525 }
 0x9be   :  { %3574 = vmatmul.mubr.msk.bf16.vlgmr.msra.gmra.mrb[132].mxu0 %vm2611_vm10, %v3716_v31  ;;  %v2476_v57 = vpop.permute.xlu0 %2475 }
 0x9bf   :  { %2687 = vmatprep.mubr.bf16.mxu0 %v5403_v63 }
 0x9c2   :  { %v2501_v14 = vpop.permute.xlu0 %2500 }
 0x9c6   :  { %3575 = vmatmul.mubr.msk.bf16.gmra.mrb[136].mxu0 %vm2611_vm10, %v3717_v15 }
 0x9c7   :  { %2697 = vmatprep.mubr.bf16.mxu0 %v5403_v63 }
 0x9ce   :  { %3576 = vmatmul.mubr.msk.bf16.gmra.mrb[140].mxu0 %vm2611_vm10, %v3718_v19 }
 0x9cf   :  { %2707 = vmatprep.mubr.bf16.mxu0 %v5403_v63 }
 0x9d6   :  { %3577 = vmatmul.mubr.msk.bf16.gmra.mrb[144].mxu0 %vm2611_vm10, %v3719_v11 }
 0x9d7   :  { %2717 = vmatprep.mubr.bf16.mxu0 %v5403_v63 }
 0x9de   :  { %3578 = vmatmul.mubr.msk.bf16.gmra.mrb[148].mxu0 %vm2611_vm10, %v3720_v22 }
 0x9df   :  { %2727 = vmatprep.mubr.bf16.mxu0 %v5403_v63 }
 0x9e6   :  { %3579 = vmatmul.mubr.msk.bf16.gmra.mrb[152].mxu0 %vm2611_vm10, %v3721_v36 }
 0x9e7   :  { %2737 = vmatprep.mubr.bf16.mxu0 %v5403_v63 }
 0x9ee   :  { %3580 = vmatmul.mubr.msk.bf16.gmra.mrb[156].mxu0 %vm2611_vm10, %v3722_v41 }
 0x9ef   :  { %2747 = vmatprep.mubr.bf16.mxu0 %v5403_v63 }
 0x9f6   :  { %3581 = vmatmul.mubr.msk.bf16.gmra.mrb[160].mxu0 %vm2611_vm10, %v3723_v47 }
 0x9f7   :  { %2757 = vmatprep.mubr.bf16.mxu0 %v5403_v63 }
 0x9fe   :  { %3582 = vmatmul.mubr.msk.bf16.gmra.mrb[164].mxu0 %vm2611_vm10, %v3724_v13  ;;  %v2486_v13 = vpop.permute.xlu0 %2485 }
 0x9ff   :  { %2767 = vmatprep.mubr.bf16.mxu0 %v5403_v63 }
 0xa06   :  { %3583 = vmatmul.mubr.msk.bf16.gmra.mrb[168].mxu0 %vm2611_vm10, %v3725_v2 }
 0xa07   :  { %2777 = vmatprep.mubr.bf16.mxu0 %v5403_v63 }
 0xa0e   :  { %3584 = vmatmul.mubr.msk.bf16.gmra.mrb[172].mxu0 %vm2611_vm10, %v3726_v48 }
 0xa91   :  { %v2679_v6 = vpop.f32.mrb[132].mxu0 }
 0xa92   :  { %v2681_v26 = vpop.f32.mrb[133].mxu0  ;;  %v2680_v7 = vadd.f32 %v2679_v6, %v2456_v29 }
 0xa93   :  { %v2683_v24 = vpop.f32.mrb[134].mxu0  ;;  %v2682_v61 = vadd.f32 %v2681_v26, %v2456_v29 }
 0xa94   :  { %v2685_v46 = vpop.f32.mrb[135].mxu0  ;;  %v2786_v20 = vmul.f32 0.5, %v2680_v7  ;;  %v2684_v51 = vadd.f32 %v2683_v24, %v2461_v53 }
 0xa95   :  { %v2787_v27 = vmul.f32 0.5, %v2682_v61  ;;  %v2686_v60 = vadd.f32 %v2685_v46, %v2461_v53  ;;  %v2511_v46 = vpop.permute.xlu1 %2510 }
 0xa96   :  { %3771 = vtanh.f32 %v2786_v20  ;;  %v2788_v28 = vmul.f32 0.5, %v2684_v51 }
 0xa97   :  { %3773 = vtanh.f32 %v2787_v27  ;;  %v2789_v37 = vmul.f32 0.5, %v2686_v60 }
 0xa98   :  { %3775 = vtanh.f32 %v2788_v28 }
 0xa99   :  { %v2689_v34 = vpop.f32.mrb[136].mxu0  ;;  %3777 = vtanh.f32 %v2789_v37 }
 0xa9a   :  { %v2691_v45 = vpop.f32.mrb[137].mxu0  ;;  %v2690_v17 = vadd.f32 %v2689_v34, %v2466_v35 }
 0xa9b   :  { %v2693_v18 = vpop.f32.mrb[138].mxu0  ;;  %v2692_v44 = vadd.f32 %v2691_v45, %v2466_v35 }
 0xa9c   :  { %v2695_v49 = vpop.f32.mrb[139].mxu0  ;;  %v2790_v50 = vmul.f32 0.5, %v2690_v17  ;;  %v2694_v5 = vadd.f32 %v2693_v18, %v2471_v43 }
 0xa9d   :  { %v2791_v58 = vmul.f32 0.5, %v2692_v44  ;;  %v2696_v0 = vadd.f32 %v2695_v49, %v2471_v43 }
 0xa9e   :  { %3779 = vtanh.f32 %v2790_v50  ;;  %v2792_v30 = vmul.f32 0.5, %v2694_v5  ;;  %v5209_v50 = vpop.permute.xlu1 %2535 }
 0xa9f   :  { %3781 = vtanh.f32 %v2791_v58  ;;  %v2793_v1 = vmul.f32 0.5, %v2696_v0 }
 0xaa0   :  { %v3772_v3 = vpop.eup %3771 }
 0xaa1   :  { %v2699_v59 = vpop.f32.mrb[140].mxu0  ;;  %v3774_v38 = vpop.eup %3773  ;;  %v2814_v11 = vadd.f32 1.0, %v3772_v3 }
 0xaa2   :  { %v2701_v62 = vpop.f32.mrb[141].mxu0  ;;  %v2700_v9 = vadd.f32 %v2699_v59, %v2476_v57  ;;  %v3776_v47 = vpop.eup %3775  ;;  %v2815_v2 = vadd.f32 1.0, %v3774_v38 }
 0xaa3   :  { %v2703_v21 = vpop.f32.mrb[142].mxu0  ;;  %v2702_v4 = vadd.f32 %v2701_v62, %v2476_v57  ;;  %v3778_v26 = vpop.eup %3777  ;;  %v2828_v34 = vmul.f32 0.5, %v2814_v11  ;;  %v2816_v49 = vadd.f32 1.0, %v3776_v47 }
 0xaa4   :  { %v2705_v55 = vpop.f32.mrb[143].mxu0  ;;  %v2704_v31 = vadd.f32 %v2703_v21, %v2481_v33  ;;  %v2794_v22 = vmul.f32 0.5, %v2700_v9  ;;  %v2829_v18 = vmul.f32 0.5, %v2815_v2  ;;  %v2817_v35 = vadd.f32 1.0, %v3778_v26  ;;  %v5202_v21 = vpop.permute.xlu0 %2530 }
 0xaa5   :  { %v2706_v48 = vadd.f32 %v2705_v55, %v2481_v33  ;;  %v2795_v53 = vmul.f32 0.5, %v2702_v4  ;;  %v2830_v5 = vmul.f32 0.5, %v2816_v49 }
 0xaa6   :  { %v2796_v29 = vmul.f32 0.5, %v2704_v31  ;;  %v2831_v58 = vmul.f32 0.5, %v2817_v35 }
 0xaa8   :  { %v3780_v43 = vpop.eup %3779 }
 0xaa9   :  { %v2709_v25 = vpop.f32.mrb[144].mxu0  ;;  %v3782_v45 = vpop.eup %3781  ;;  %v2818_v27 = vadd.f32 1.0, %v3780_v43 }
 0xaaa   :  { %v2711_v8 = vpop.f32.mrb[145].mxu0  ;;  %v2710_v24 = vadd.f32 %v2709_v25, %v2486_v13  ;;  %v2819_v28 = vadd.f32 1.0, %v3782_v45 }
 0xaab   :  { %v2713_v12 = vpop.f32.mrb[146].mxu0  ;;  %v2712_v62 = vadd.f32 %v2711_v8, %v2486_v13 }
 0xaac   :  { %v2714_v54 = vadd.f32 %v2713_v12, %v2491_v16  ;;  %v2715_v23 = vpop.f32.mrb[147].mxu0  ;;  %v2798_v59 = vmul.f32 0.5, %v2710_v24 }
 0xaad   :  { %v2716_v42 = vadd.f32 %v2715_v23, %v2491_v16  ;;  %v2799_v0 = vmul.f32 0.5, %v2712_v62 }
 0xaae   :  { %3783 = vtanh.f32 %v2714_v54  ;;  %v2832_v54 = vmul.f32 0.5, %v2818_v27 }
 0xaaf   :  { %3785 = vtanh.f32 %v2716_v42  ;;  %v2833_v42 = vmul.f32 0.5, %v2819_v28 }
 0xab0   :  { %3787 = vtanh.f32 %v2792_v30 }
 0xab1   :  { %v2719_v10 = vpop.f32.mrb[148].mxu0  ;;  %3789 = vtanh.f32 %v2793_v1  ;;  %v2516_v1 = vpop.permute.xlu0 %2515 }
 0xab2   :  { %v2720_v56 = vadd.f32 %v2719_v10, %v2496_v52  ;;  %v2721_v40 = vpop.f32.mrb[149].mxu0 }
 0xab3   :  { %v2722_v15 = vadd.f32 %v2721_v40, %v2496_v52  ;;  %v2723_v19 = vpop.f32.mrb[150].mxu0  ;;  %v2797_v52 = vmul.f32 0.5, %v2706_v48 }
 0xab4   :  { %3791 = vtanh.f32 %v2720_v56  ;;  %v2724_v36 = vadd.f32 %v2723_v19, %v2501_v14  ;;  %v2725_v41 = vpop.f32.mrb[151].mxu0 }
 0xab5   :  { %3793 = vtanh.f32 %v2722_v15  ;;  %v2726_v6 = vadd.f32 %v2725_v41, %v2501_v14  ;;  %v2521_v15 = vpop.permute.xlu1 %2520 }
 0xab6   :  { %3795 = vtanh.f32 %v2724_v36 }
 0xab7   :  { %3797 = vtanh.f32 %v2726_v6 }
 0xab8   :  { %3799 = vtanh.f32 %v2794_v22  ;;  %v3784_v61 = vpop.eup %3783 }
 0xab9   :  { %v2729_v7 = vpop.f32.mrb[152].mxu0  ;;  %3801 = vtanh.f32 %v2795_v53  ;;  %v3786_v51 = vpop.eup %3785  ;;  %v5204_v60 = vmul.f32 %v3784_v61, %v2828_v34 }
 0xaba   :  { %v2730_v16 = vadd.f32 %v2729_v7, %v5197_v32  ;;  %v2731_v20 = vpop.f32.mrb[153].mxu0  ;;  %3803 = vtanh.f32 %v2796_v29  ;;  %v3788_v17 = vpop.eup %3787  ;;  %v5207_v44 = vmul.f32 %v3786_v51, %v2829_v18 }
 0xabb   :  { %v2732_v55 = vadd.f32 %v2731_v20, %v5197_v32  ;;  %v2733_v33 = vpop.f32.mrb[154].mxu0  ;;  %v3790_v25 = vpop.eup %3789  ;;  %v2820_v9 = vadd.f32 1.0, %v3788_v17 }
 0xabc   :  { %3805 = vtanh.f32 %v2730_v16  ;;  %v2734_v37 = vadd.f32 %v2733_v33, %v2511_v46  ;;  %v2735_v57 = vpop.f32.mrb[155].mxu0  ;;  %v2821_v36 = vadd.f32 1.0, %v3790_v25 }
 0xabd   :  { %3807 = vtanh.f32 %v2797_v52  ;;  %v2736_v10 = vadd.f32 %v2735_v57, %v2511_v46  ;;  %v2834_v2 = vmul.f32 0.5, %v2820_v9  ;;  %v2541_v9 = vpop.permute.xlu0 %2540 }
 0xabe   :  { %v3792_v8 = vpop.eup %3791  ;;  %3809 = vtanh.f32 %v2798_v59  ;;  %v2835_v29 = vmul.f32 0.5, %v2821_v36 }
 0xabf   :  { %v3794_v12 = vpop.eup %3793  ;;  %v2914_v32 = vmul.f32 %v3792_v8, %v2830_v5  ;;  %3811 = vtanh.f32 %v2732_v55 }
 0xac0   :  { %v3796_v23 = vpop.eup %3795  ;;  %v5211_v30 = vmul.f32 %v3794_v12, %v2831_v58  ;;  %3813 = vtanh.f32 %v2734_v37 }
 0xac1   :  { %v3798_v14 = vpop.eup %3797  ;;  %v5213_v3 = vmul.f32 %v3796_v23, %v2832_v54  ;;  %v2739_v38 = vpop.f32.mrb[156].mxu0  ;;  %3815 = vtanh.f32 %v2799_v0 }
 0xac2   :  { %v3800_v4 = vpop.eup %3799  ;;  %v5215_v56 = vmul.f32 %v3798_v14, %v2833_v42  ;;  %v2740_v40 = vadd.f32 %v2739_v38, %v2516_v1  ;;  %v2741_v31 = vpop.f32.mrb[157].mxu0  ;;  %3817 = vtanh.f32 %v2736_v10 }
 0xac3   :  { %v2742_v19 = vadd.f32 %v2741_v31, %v2516_v1  ;;  %v2743_v11 = vpop.f32.mrb[158].mxu0  ;;  %v3802_v22 = vpop.eup %3801  ;;  %v2822_v48 = vadd.f32 1.0, %v3800_v4 }
 0xac4   :  { %v2744_v41 = vadd.f32 %v2743_v11, %v2521_v15  ;;  %v2745_v47 = vpop.f32.mrb[159].mxu0  ;;  %v3804_v13 = vpop.eup %3803  ;;  %3819 = vtanh.f32 %v2740_v40  ;;  %v2823_v49 = vadd.f32 1.0, %v3802_v22 }
 0xac5   :  { %v2746_v26 = vadd.f32 %v2745_v47, %v2521_v15  ;;  %3821 = vtanh.f32 %v2742_v19  ;;  %v2836_v34 = vmul.f32 0.5, %v2822_v48  ;;  %v2824_v61 = vadd.f32 1.0, %v3804_v13 }
 0xac6   :  { %v3806_v6 = vpop.eup %3805  ;;  %3823 = vtanh.f32 %v2744_v41  ;;  %v2837_v57 = vmul.f32 0.5, %v2823_v49 }
 0xac7   :  { %v3808_v53 = vpop.eup %3807  ;;  %v2918_v24 = vmul.f32 %v3806_v6, %v2834_v2  ;;  %3825 = vtanh.f32 %v2746_v26  ;;  %v2838_v5 = vmul.f32 0.5, %v2824_v61  ;;  %v2546_v6 = vpop.permute.xlu0 %2545 }
 0xac8   :  { %v3810_v46 = vpop.eup %3809  ;;  %3827 = vtanh.f32 %v5204_v60  ;;  %v2825_v51 = vadd.f32 1.0, %v3808_v53 }
 0xac9   :  { %v3812_v43 = vpop.eup %3811  ;;  %v2749_v45 = vpop.f32.mrb[160].mxu0  ;;  %3829 = vtanh.f32 %v5207_v44  ;;  %v2826_v17 = vadd.f32 1.0, %v3810_v46 }
 0xaca   :  { %v3814_v18 = vpop.eup %3813  ;;  %v2919_v35 = vmul.f32 %v3812_v43, %v2835_v29  ;;  %v2750_v52 = vadd.f32 %v2749_v45, %v5199_v39  ;;  %v2751_v7 = vpop.f32.mrb[161].mxu0  ;;  %3831 = vtanh.f32 %v2914_v32  ;;  %v2839_v0 = vmul.f32 0.5, %v2825_v51 }
 0xacb   :  { %v5219_v59 = vmul.f32 %v3814_v18, %v2836_v34  ;;  %v2752_v62 = vadd.f32 %v2751_v7, %v5199_v39  ;;  %v2753_v16 = vpop.f32.mrb[162].mxu0  ;;  %v3816_v20 = vpop.eup %3815  ;;  %v2840_v54 = vmul.f32 0.5, %v2826_v17 }
 0xacc   :  { %v2856_v27 = vmul.f32 0.5, %v2750_v52  ;;  %v2754_v55 = vadd.f32 %v2753_v16, %v5202_v21  ;;  %v2755_v33 = vpop.f32.mrb[163].mxu0  ;;  %v3818_v25 = vpop.eup %3817  ;;  %v2827_v39 = vadd.f32 1.0, %v3816_v20 }
 0xacd   :  { %v2857_v28 = vmul.f32 0.5, %v2752_v62  ;;  %v2756_v37 = vadd.f32 %v2755_v33, %v5202_v21  ;;  %v5225_v44 = vmul.f32 %v3818_v25, %v2837_v57  ;;  %v2551_v34 = vpop.permute.xlu1 %2550 }
 0xace   :  { %3833 = vtanh.f32 %v2856_v27  ;;  %v2858_v60 = vmul.f32 0.5, %v2754_v55  ;;  %v3820_v58 = vpop.eup %3819  ;;  %v2841_v10 = vmul.f32 0.5, %v2827_v39 }
 0xacf   :  { %3835 = vtanh.f32 %v2857_v28  ;;  %v2859_v8 = vmul.f32 0.5, %v2756_v37  ;;  %v3822_v12 = vpop.eup %3821  ;;  %v5227_v23 = vmul.f32 %v3820_v58, %v2838_v5 }
 0xad0   :  { %3837 = vtanh.f32 %v2858_v60  ;;  %v3824_v21 = vpop.eup %3823  ;;  %v5230_v42 = vmul.f32 %v3822_v12, %v2839_v0  ;;  %v2556_v0 = vpop.permute.xlu0 %2555 }
 0xad1   :  { %3839 = vtanh.f32 %v2859_v8  ;;  %v2759_v32 = vpop.f32.mrb[164].mxu0  ;;  %v5234_v38 = vmul.f32 %v3824_v21, %v2840_v54  ;;  %v3826_v31 = vpop.eup %3825 }
 0xad2   :  { %3841 = vtanh.f32 %v5211_v30  ;;  %v2760_v14 = vadd.f32 %v2759_v32, %v5209_v50  ;;  %v2761_v1 = vpop.f32.mrb[165].mxu0  ;;  %v3828_v11 = vpop.eup %3827  ;;  %v5238_v22 = vmul.f32 %v3826_v31, %v2841_v10 }
 0xad3   :  { %3843 = vtanh.f32 %v5213_v3  ;;  %v2762_v4 = vadd.f32 %v2761_v1, %v5209_v50  ;;  %v2763_v40 = vpop.f32.mrb[166].mxu0  ;;  %v3830_v47 = vpop.eup %3829 }
 0xad4   :  { %3845 = vtanh.f32 %v5215_v56  ;;  %v2860_v15 = vmul.f32 0.5, %v2760_v14  ;;  %v2764_v19 = vadd.f32 %v2763_v40, %v2541_v9  ;;  %v2765_v30 = vpop.f32.mrb[167].mxu0  ;;  %v3832_v13 = vpop.eup %3831 }
 0xad5   :  { %3847 = vtanh.f32 %v2918_v24  ;;  %v2861_v36 = vmul.f32 0.5, %v2762_v4  ;;  %v2766_v41 = vadd.f32 %v2765_v30, %v2541_v9 }
 0xad6   :  { %3849 = vtanh.f32 %v2860_v15  ;;  %v2862_v3 = vmul.f32 0.5, %v2764_v19 }
 0xad7   :  { %3851 = vtanh.f32 %v2919_v35  ;;  %v2863_v2 = vmul.f32 0.5, %v2766_v41 }
 0xad8   :  { %v3834_v50 = vpop.eup %3833  ;;  %3853 = vtanh.f32 %v2861_v36 }
 0xad9   :  { %v3836_v48 = vpop.eup %3835  ;;  %v2884_v56 = vadd.f32 1.0, %v3834_v50  ;;  %3855 = vtanh.f32 %v2862_v3  ;;  %v2769_v26 = vpop.f32.mrb[168].mxu0 }
 0xada   :  { %v3838_v53 = vpop.eup %3837  ;;  %v2885_v46 = vadd.f32 1.0, %v3836_v48  ;;  %3857 = vtanh.f32 %v2863_v2  ;;  %v2770_v24 = vadd.f32 %v2769_v26, %v2546_v6  ;;  %v2771_v29 = vpop.f32.mrb[169].mxu0 }
 0xadb   :  { %v3840_v43 = vpop.eup %3839  ;;  %3859 = vtanh.f32 %v5219_v59  ;;  %v2898_v45 = vmul.f32 0.5, %v2884_v56  ;;  %v2886_v18 = vadd.f32 1.0, %v3838_v53  ;;  %v2772_v49 = vadd.f32 %v2771_v29, %v2546_v6  ;;  %v2773_v35 = vpop.f32.mrb[170].mxu0 }
 0xadc   :  { %v3842_v52 = vpop.eup %3841  ;;  %v2899_v7 = vmul.f32 0.5, %v2885_v46  ;;  %v2887_v61 = vadd.f32 1.0, %v3840_v43  ;;  %v2864_v62 = vmul.f32 0.5, %v2770_v24  ;;  %v2774_v16 = vadd.f32 %v2773_v35, %v2551_v34  ;;  %v2775_v20 = vpop.f32.mrb[171].mxu0 }
 0xadd   :  { %v3844_v51 = vpop.eup %3843  ;;  %v2940_v27 = vmul.f32 %v3828_v11, %v2898_v45  ;;  %v2900_v55 = vmul.f32 0.5, %v2886_v18  ;;  %v2865_v33 = vmul.f32 0.5, %v2772_v49  ;;  %v2776_v17 = vadd.f32 %v2775_v20, %v2551_v34 }
 0xade   :  { %v3846_v28 = vpop.eup %3845  ;;  %v2901_v37 = vmul.f32 0.5, %v2887_v61  ;;  %3861 = vtanh.f32 %v2864_v62  ;;  %v2866_v57 = vmul.f32 0.5, %v2774_v16  ;;  %v2941_v59 = vmul.f32 %v3830_v47, %v2899_v7 }
 0xadf   :  { %v3848_v60 = vpop.eup %3847  ;;  %v2942_v25 = vmul.f32 %v3832_v13, %v2900_v55  ;;  %3863 = vtanh.f32 %v2865_v33  ;;  %v2867_v5 = vmul.f32 0.5, %v2776_v17 }
 0xae0   :  { %v3850_v39 = vpop.eup %3849  ;;  %3865 = vtanh.f32 %v2866_v57  ;;  %v2943_v8 = vmul.f32 %v3842_v52, %v2901_v37 }
 0xae1   :  { %v3852_v58 = vpop.eup %3851  ;;  %v2888_v12 = vadd.f32 1.0, %v3850_v39  ;;  %3867 = vtanh.f32 %v2867_v5  ;;  %v2779_v54 = vpop.f32.mrb[172].mxu0  ;;  %v2970_v32 = vpack.c.bf16 %v2942_v25, %v2940_v27 }
 0xae2   :  { %v3854_v21 = vpop.eup %3853  ;;  %3869 = vtanh.f32 %v5225_v44  ;;  %v2780_v14 = vadd.f32 %v2779_v54, %v2556_v0  ;;  %v2781_v1 = vpop.f32.mrb[173].mxu0  ;;  %v2971_v9 = vpack.c.bf16 %v2943_v8, %v2941_v59  ;;  %v3729_v54 = vld [vmem:[%s5308_s1 + $0x4d0] ss:$8 sps:$4 sm:$0xff]  }
 0xae3   :  { %v3856_v10 = vpop.eup %3855  ;;  %3871 = vtanh.f32 %v5227_v23  ;;  %v2902_v4 = vmul.f32 0.5, %v2888_v12  ;;  %v2889_v40 = vadd.f32 1.0, %v3854_v21  ;;  %v2782_v31 = vadd.f32 %v2781_v1, %v2556_v0  ;;  %v2783_v15 = vpop.f32.mrb[174].mxu0  ;;  %v3727_v0 = vld [vmem:[%s5308_s1 + $0x4b0] ss:$8 sps:$4 sm:$0xff]  }
 0xae4   :  { %v3858_v19 = vpop.eup %3857  ;;  %3873 = vtanh.f32 %v5230_v42  ;;  %v2890_v30 = vadd.f32 1.0, %v3856_v10  ;;  %v2868_v11 = vmul.f32 0.5, %v2780_v14  ;;  %3145 = vmatprep.subr.bf16.mxu1 %v2971_v9  ;;  %v2784_v36 = vpop.f32.mrb[175].mxu0  ;;  %v3728_v12 = vld [vmem:[%s5308_s1 + $0x4c0] ss:$8 sps:$4 sm:$0xff]  }
 0xae5   :  { %v3860_v41 = vpop.eup %3859  ;;  %v2944_v47 = vmul.f32 %v3844_v51, %v2902_v4  ;;  %v2903_v44 = vmul.f32 0.5, %v2889_v40  ;;  %v2891_v3 = vadd.f32 1.0, %v3858_v19  ;;  %v2869_v13 = vmul.f32 0.5, %v2782_v31  ;;  %3146 = vmatpush1.bf16.msra.mxu1 %v2970_v32  ;;  %v3730_v32 = vld [vmem:[%s5308_s1 + $0x4e0] ss:$8 sps:$4 sm:$0xff]   ;;  %v2997_v10 = vpop.permute.xlu1 %2996 }
 0xae6   :  { %v2904_v2 = vmul.f32 0.5, %v2890_v30  ;;  %3875 = vtanh.f32 %v2868_v11  ;;  %v3731_v21 = vld [vmem:[%s5308_s1 + $0x4f0] ss:$8 sps:$4 sm:$0xff]   ;;  %v3732_v14 = vld [vmem:[%s5308_s1 + $0x500] ss:$8 sps:$4 sm:$0xff]   ;;  %v3002_v15 = vpop.permute.xlu0 %3001 }
 0xae7   :  { %v2905_v23 = vmul.f32 0.5, %v2891_v3  ;;  %3877 = vtanh.f32 %v2869_v13  ;;  %v2945_v50 = vmul.f32 %v3846_v28, %v2903_v44  ;;  %v3733_v1 = vld [vmem:[%s5308_s1 + $0x510] ss:$8 sps:$4 sm:$0xff]   ;;  %v3734_v9 = vld [vmem:[%s5308_s1 + $0x520] ss:$8 sps:$4 sm:$0xff]  }
 0xae8   :  { %v3862_v48 = vpop.eup %3861  ;;  %v2946_v6 = vmul.f32 %v3848_v60, %v2904_v2  ;;  %3879 = vtanh.f32 %v5234_v38 }
 0xae9   :  { %v3864_v56 = vpop.eup %3863  ;;  %v2892_v26 = vadd.f32 1.0, %v3862_v48  ;;  %v2947_v42 = vmul.f32 %v3852_v58, %v2905_v23  ;;  %3881 = vtanh.f32 %v5238_v22  ;;  %v3007_v23 = vpop.permute.xlu1 %3006 }
 0xaea   :  { %v3866_v53 = vpop.eup %3865  ;;  %v2893_v46 = vadd.f32 1.0, %v3864_v56  ;;  %v2972_v24 = vpack.c.bf16 %v2946_v6, %v2944_v47  ;;  %v3012_v56 = vpop.permute.xlu0 %3011 }
 0xaeb   :  { %v3868_v29 = vpop.eup %3867  ;;  %v2906_v43 = vmul.f32 0.5, %v2892_v26  ;;  %v2894_v34 = vadd.f32 1.0, %v3866_v53  ;;  %v2973_v45 = vpack.c.bf16 %v2947_v42, %v2945_v50 }
 0xaec   :  { %v3870_v18 = vpop.eup %3869  ;;  %v2907_v49 = vmul.f32 0.5, %v2893_v46  ;;  %v2895_v35 = vadd.f32 1.0, %v3868_v29 }
 0xaed   :  { %v3872_v52 = vpop.eup %3871  ;;  %v2948_v7 = vmul.f32 %v3860_v41, %v2906_v43  ;;  %v2908_v61 = vmul.f32 0.5, %v2894_v34  ;;  %3147 = vmatprep.subr.bf16.mxu1 %v2973_v45 }
 0xaee   :  { %v3874_v62 = vpop.eup %3873  ;;  %v2909_v16 = vmul.f32 0.5, %v2895_v35  ;;  %3148 = vmatpush1.bf16.msra.mxu1 %v2972_v24  ;;  %v2949_v20 = vmul.f32 %v3870_v18, %v2907_v49  ;;  %v3017_v49 = vpop.permute.xlu1 %3016 }
 0xaef   :  { %v2950_v38 = vmul.f32 %v3872_v52, %v2908_v61 }
 0xaf0   :  { %v3876_v51 = vpop.eup %3875  ;;  %v2951_v27 = vmul.f32 %v3874_v62, %v2909_v16  ;;  %v3022_v62 = vpop.permute.xlu0 %3021 }
 0xaf1   :  { %v3878_v55 = vpop.eup %3877  ;;  %v2896_v33 = vadd.f32 1.0, %v3876_v51  ;;  %v2974_v22 = vpack.c.bf16 %v2950_v38, %v2948_v7 }
 0xaf2   :  { %v2897_v17 = vadd.f32 1.0, %v3878_v55  ;;  %v2975_v28 = vpack.c.bf16 %v2951_v27, %v2949_v20  ;;  %v3880_v57 = vpop.eup %3879 }
 0xaf3   :  { %v2910_v37 = vmul.f32 0.5, %v2896_v33  ;;  %v3882_v60 = vpop.eup %3881 }
 0xaf4   :  { %v2911_v59 = vmul.f32 0.5, %v2897_v17  ;;  %3149 = vmatprep.subr.bf16.mxu1 %v2975_v28 }
 0xaf5   :  { %3150 = vmatpush1.bf16.msra.mxu1 %v2974_v22  ;;  %v2952_v25 = vmul.f32 %v3880_v57, %v2910_v37  ;;  %v3027_v37 = vpop.permute.xlu1 %3026 }
 0xaf6   :  { %v2953_v5 = vmul.f32 %v3882_v60, %v2911_v59 }
 0xaf7   :  { %v2976_v39 = vpack.c.bf16 %v2952_v25, %v2952_v25 }
 0xaf8   :  { %v2977_v8 = vpack.c.bf16 %v2953_v5, %v2953_v5  ;;  %v3032_v5 = vpop.permute.xlu0 %3031 }
 0xaf9   :  { %v3140_v58 = vsel %vm1760_vm5, %v2976_v39, 0 }
 0xafa   :  { %3593 = vmatprep.subr.msk.bf16.mxu1 %vm1760_vm5, %v2977_v8 }
 0xafb   :  { %3152 = vmatpush1.bf16.msra.mxu1 %v3140_v58 }
 0xafe   :  { %3594 = vmatmul.mubr.msk.bf16.vlgmr.msra.gmra.mrb[120].mxu1 %vm3114_vm11, %v3727_v0 }
 0xaff   :  { %3187 = vmatprep.mubr.bf16.mxu1 %v5403_v63 }
 0xb06   :  { %3595 = vmatmul.mubr.msk.bf16.gmra.mrb[124].mxu1 %vm3114_vm11, %v3728_v12 }
 0xb07   :  { %3197 = vmatprep.mubr.bf16.mxu1 %v5403_v63 }
 0xb0e   :  { %3596 = vmatmul.mubr.msk.bf16.gmra.mrb[128].mxu1 %vm3114_vm11, %v3729_v54 }
 0xb0f   :  { %3207 = vmatprep.mubr.bf16.mxu1 %v5403_v63 }
 0xb16   :  { %3597 = vmatmul.mubr.msk.bf16.gmra.mrb[132].mxu1 %vm3114_vm11, %v3730_v32 }
 0xb17   :  { %3217 = vmatprep.mubr.bf16.mxu1 %v5403_v63 }
 0xb1e   :  { %3598 = vmatmul.mubr.msk.bf16.gmra.mrb[136].mxu1 %vm3114_vm11, %v3731_v21 }
 0xb1f   :  { %3227 = vmatprep.mubr.bf16.mxu1 %v5403_v63 }
 0xb26   :  { %3599 = vmatmul.mubr.msk.bf16.gmra.mrb[140].mxu1 %vm3114_vm11, %v3732_v14 }
 0xb27   :  { %3237 = vmatprep.mubr.bf16.mxu1 %v5403_v63 }
 0xb2e   :  { %3600 = vmatmul.mubr.msk.bf16.gmra.mrb[144].mxu1 %vm3114_vm11, %v3733_v1 }
 0xb2f   :  { %3247 = vmatprep.mubr.bf16.mxu1 %v5403_v63 }
 0xb36   :  { %3601 = vmatmul.mubr.msk.bf16.gmra.mrb[148].mxu1 %vm3114_vm11, %v3734_v9  ;;  %v3037_v9 = vpop.permute.xlu1 %3036 }
 0xb37   :  { %3345 = vmatprep.mubr.bf16.mxu1 %v5403_v63 }
 0xbd1   :  { %v3179_v4 = vpop.f32.mrb[120].mxu1 }
 0xbd2   :  { %v3180_v40 = vadd.f32 %v3179_v4, %v2997_v10  ;;  %v3181_v31 = vpop.f32.mrb[121].mxu1 }
 0xbd3   :  { %v3182_v19 = vadd.f32 %v3181_v31, %v2997_v10  ;;  %v3183_v30 = vpop.f32.mrb[122].mxu1 }
 0xbd4   :  { %v3184_v11 = vadd.f32 %v3183_v30, %v3002_v15  ;;  %v3185_v36 = vpop.f32.mrb[123].mxu1  ;;  %v3258_v47 = vmax.f32 %v3180_v40, 0.0 }
 0xbd5   :  { %v3186_v41 = vadd.f32 %v3185_v36, %v3002_v15  ;;  %v3259_v3 = vmax.f32 %v3182_v19, 0.0  ;;  %v3042_v15 = vpop.permute.xlu0 %3041 }
 0xbd6   :  { %v3260_v44 = vmax.f32 %v3184_v11, 0.0 }
 0xbd7   :  { %v3261_v13 = vmax.f32 %v3186_v41, 0.0 }
 0xbd8   :  { %v3291_v2 = vpack.c.bf16 %v3260_v44, %v3258_v47 }
 0xbd9   :  { %v3292_v50 = vpack.c.bf16 %v3261_v13, %v3259_v3  ;;  %v3189_v48 = vpop.f32.mrb[124].mxu1 }
 0xbda   :  { %v3190_v6 = vadd.f32 %v3189_v48, %v3007_v23  ;;  %v3191_v63 = vpop.f32.mrb[125].mxu1 }
 0xbdb   :  { %v3192_v26 = vadd.f32 %v3191_v63, %v3007_v23  ;;  %v3193_v42 = vpop.f32.mrb[126].mxu1  ;;  %3313 = vmatprep.subr.bf16.mxu1 %v3292_v50  ;;  %v3047_v23 = vpop.permute.xlu1 %3046 }
 0xbdc   :  { %v3194_v53 = vadd.f32 %v3193_v42, %v3012_v56  ;;  %v3195_v46 = vpop.f32.mrb[127].mxu1  ;;  %3314 = vmatpush1.bf16.msra.mxu1 %v3291_v2  ;;  %v3262_v29 = vmax.f32 %v3190_v6, 0.0 }
 0xbdd   :  { %v3196_v24 = vadd.f32 %v3195_v46, %v3012_v56  ;;  %v3263_v34 = vmax.f32 %v3192_v26, 0.0  ;;  %v3052_v56 = vpop.permute.xlu0 %3051 }
 0xbde   :  { %v3264_v43 = vmax.f32 %v3194_v53, 0.0 }
 0xbdf   :  { %v3265_v45 = vmax.f32 %v3196_v24, 0.0 }
 0xbe0   :  { %v3293_v18 = vpack.c.bf16 %v3264_v43, %v3262_v29 }
 0xbe1   :  { %v3294_v35 = vpack.c.bf16 %v3265_v45, %v3263_v34  ;;  %v3199_v52 = vpop.f32.mrb[128].mxu1 }
 0xbe2   :  { %v3200_v7 = vadd.f32 %v3199_v52, %v3017_v49  ;;  %v3201_v61 = vpop.f32.mrb[129].mxu1 }
 0xbe3   :  { %v3202_v16 = vadd.f32 %v3201_v61, %v3017_v49  ;;  %v3203_v20 = vpop.f32.mrb[130].mxu1  ;;  %3315 = vmatprep.subr.bf16.mxu1 %v3294_v35  ;;  %v3057_v49 = vpop.permute.xlu1 %3056 }
 0xbe4   :  { %v3204_v38 = vadd.f32 %v3203_v20, %v3022_v62  ;;  %v3205_v51 = vpop.f32.mrb[131].mxu1  ;;  %3316 = vmatpush1.bf16.msra.mxu1 %v3293_v18  ;;  %v3266_v55 = vmax.f32 %v3200_v7, 0.0 }
 0xbe5   :  { %v3206_v27 = vadd.f32 %v3205_v51, %v3022_v62  ;;  %v3267_v22 = vmax.f32 %v3202_v16, 0.0  ;;  %v3062_v62 = vpop.permute.xlu0 %3061 }
 0xbe6   :  { %v3268_v33 = vmax.f32 %v3204_v38, 0.0 }
 0xbe7   :  { %v3269_v17 = vmax.f32 %v3206_v27, 0.0 }
 0xbe8   :  { %v3295_v28 = vpack.c.bf16 %v3268_v33, %v3266_v55 }
 0xbe9   :  { %v3296_v57 = vpack.c.bf16 %v3269_v17, %v3267_v22  ;;  %v3209_v59 = vpop.f32.mrb[132].mxu1 }
 0xbea   :  { %v3210_v60 = vadd.f32 %v3209_v59, %v3027_v37  ;;  %v3211_v25 = vpop.f32.mrb[133].mxu1 }
 0xbeb   :  { %v3212_v39 = vadd.f32 %v3211_v25, %v3027_v37  ;;  %v3213_v8 = vpop.f32.mrb[134].mxu1  ;;  %3317 = vmatprep.subr.bf16.mxu1 %v3296_v57  ;;  %v3067_v37 = vpop.permute.xlu1 %3066 }
 0xbec   :  { %v3214_v58 = vadd.f32 %v3213_v8, %v3032_v5  ;;  %v3215_v0 = vpop.f32.mrb[135].mxu1  ;;  %3318 = vmatpush1.bf16.msra.mxu1 %v3295_v28  ;;  %v3270_v54 = vmax.f32 %v3210_v60, 0.0 }
 0xbed   :  { %v3216_v12 = vadd.f32 %v3215_v0, %v3032_v5  ;;  %v3271_v21 = vmax.f32 %v3212_v39, 0.0  ;;  %v3072_v5 = vpop.permute.xlu0 %3071 }
 0xbee   :  { %v3272_v32 = vmax.f32 %v3214_v58, 0.0 }
 0xbef   :  { %v3273_v14 = vmax.f32 %v3216_v12, 0.0 }
 0xbf0   :  { %v3297_v1 = vpack.c.bf16 %v3272_v32, %v3270_v54 }
 0xbf1   :  { %v3298_v10 = vpack.c.bf16 %v3273_v14, %v3271_v21  ;;  %v3219_v4 = vpop.f32.mrb[136].mxu1 }
 0xbf2   :  { %v3220_v40 = vadd.f32 %v3219_v4, %v3037_v9  ;;  %v3221_v31 = vpop.f32.mrb[137].mxu1  ;;  %v3311_v4 = vpop.permute.xlu1 %3310 }
 0xbf3   :  { %v3222_v19 = vadd.f32 %v3221_v31, %v3037_v9  ;;  %v3223_v30 = vpop.f32.mrb[138].mxu1  ;;  %3319 = vmatprep.subr.bf16.mxu1 %v3298_v10  ;;  %v3290_v10 = vld [vmem:[%s5308_s1 + $0x530] sm:$0x3]  ;;  %s3917_s1 = smov [#allocation2]  }
 0xbf4   :  { %v3224_v11 = vadd.f32 %v3223_v30, %v3042_v15  ;;  %v3225_v36 = vpop.f32.mrb[139].mxu1  ;;  %3320 = vmatpush1.bf16.msra.mxu1 %v3297_v1  ;;  %v3274_v47 = vmax.f32 %v3220_v40, 0.0  ;;  %s3405_s7 = sshll.u32 %s3917_s1, 4  ;;  %s3406_s7 = int_to_ptr.vmem [resolvable:$true] %s3405_s7 }
 0xbf5   :  { %v3226_v41 = vadd.f32 %v3225_v36, %v3042_v15  ;;  %v3275_v3 = vmax.f32 %v3222_v19, 0.0  ;;  %s3891_s8 = scalar_lea.vmem %s3406_s7, 128  ;;  %p3896_p1 = scmp.lt.s32.totalorder %s3406_s7, %s3406_s7 }
 0xbf6   :  { %v3276_v44 = vmax.f32 %v3224_v11, 0.0  ;;  %p3892_p0 = scmp.ne.s32.totalorder %s3406_s7, %s3891_s8  ;;  %p3897_p2 = scmp.lt.s32.totalorder %s3891_s8, %s3891_s8 }
 0xbf7   :  { %v3277_v13 = vmax.f32 %v3226_v41, 0.0 }
 0xbf8   :  { %v3299_v2 = vpack.c.bf16 %v3276_v44, %v3274_v47  ;;  %p3898_p3 = por %p3897_p2, %p3896_p1 }
 0xbf9   :  { %v3300_v50 = vpack.c.bf16 %v3277_v13, %v3275_v3  ;;  %v3229_v48 = vpop.f32.mrb[140].mxu1 }
 0xbfa   :  { %v3230_v6 = vadd.f32 %v3229_v48, %v3047_v23  ;;  %v3231_v63 = vpop.f32.mrb[141].mxu1  ;;  %p3899_p4 = pnand %p3898_p3, %p3892_p0 }
 0xbfb   :  { %v3232_v26 = vadd.f32 %v3231_v63, %v3047_v23  ;;  %v3233_v42 = vpop.f32.mrb[142].mxu1  ;;  %3321 = vmatprep.subr.bf16.mxu1 %v3300_v50 }
 0xbfc   :  { %v3234_v53 = vadd.f32 %v3233_v42, %v3052_v56  ;;  %v3235_v46 = vpop.f32.mrb[143].mxu1  ;;  %3322 = vmatpush1.bf16.msra.mxu1 %v3299_v2  ;;  %v3278_v29 = vmax.f32 %v3230_v6, 0.0 }
 0xbfd   :  { %v3236_v24 = vadd.f32 %v3235_v46, %v3052_v56  ;;  %v3279_v34 = vmax.f32 %v3232_v26, 0.0 }
 0xbfe   :  { %v3280_v43 = vmax.f32 %v3234_v53, 0.0 }
 0xbff   :  { %v3281_v45 = vmax.f32 %v3236_v24, 0.0 }
 0xc00   :  { %v3301_v18 = vpack.c.bf16 %v3280_v43, %v3278_v29 }
 0xc01   :  { %v3302_v35 = vpack.c.bf16 %v3281_v45, %v3279_v34  ;;  %v3239_v52 = vpop.f32.mrb[144].mxu1 }
 0xc02   :  { %v3240_v7 = vadd.f32 %v3239_v52, %v3057_v49  ;;  %v3241_v61 = vpop.f32.mrb[145].mxu1 }
 0xc03   :  { %v3242_v16 = vadd.f32 %v3241_v61, %v3057_v49  ;;  %v3243_v20 = vpop.f32.mrb[146].mxu1  ;;  %3323 = vmatprep.subr.bf16.mxu1 %v3302_v35 }
 0xc04   :  { %v3244_v38 = vadd.f32 %v3243_v20, %v3062_v62  ;;  %v3245_v51 = vpop.f32.mrb[147].mxu1  ;;  %3324 = vmatpush1.bf16.msra.mxu1 %v3301_v18  ;;  %v3282_v55 = vmax.f32 %v3240_v7, 0.0 }
 0xc05   :  { %v3246_v27 = vadd.f32 %v3245_v51, %v3062_v62  ;;  %v3283_v22 = vmax.f32 %v3242_v16, 0.0 }
 0xc06   :  { %v3284_v33 = vmax.f32 %v3244_v38, 0.0 }
 0xc07   :  { %v3285_v17 = vmax.f32 %v3246_v27, 0.0 }
 0xc08   :  { %v3303_v28 = vpack.c.bf16 %v3284_v33, %v3282_v55 }
 0xc09   :  { %v3304_v57 = vpack.c.bf16 %v3285_v17, %v3283_v22  ;;  %v3249_v59 = vpop.f32.mrb[148].mxu1 }
 0xc0a   :  { %v3250_v60 = vadd.f32 %v3249_v59, %v3067_v37  ;;  %v3251_v25 = vpop.f32.mrb[149].mxu1 }
 0xc0b   :  { %v3252_v39 = vadd.f32 %v3251_v25, %v3067_v37  ;;  %v3253_v8 = vpop.f32.mrb[150].mxu1  ;;  %3325 = vmatprep.subr.bf16.mxu1 %v3304_v57 }
 0xc0c   :  { %v3254_v58 = vadd.f32 %v3253_v8, %v3072_v5  ;;  %v3255_v0 = vpop.f32.mrb[151].mxu1  ;;  %3326 = vmatpush1.bf16.msra.mxu1 %v3303_v28  ;;  %v3286_v54 = vmax.f32 %v3250_v60, 0.0 }
 0xc0d   :  { %v3256_v12 = vadd.f32 %v3255_v0, %v3072_v5  ;;  %v3287_v21 = vmax.f32 %v3252_v39, 0.0 }
 0xc0e   :  { %v3288_v32 = vmax.f32 %v3254_v58, 0.0 }
 0xc0f   :  { %v3289_v14 = vmax.f32 %v3256_v12, 0.0 }
 0xc10   :  { %v3305_v1 = vpack.c.bf16 %v3288_v32, %v3286_v54 }
 0xc11   :  { %v3306_v9 = vpack.c.bf16 %v3289_v14, %v3287_v21 }
 0xc13   :  { %3327 = vmatprep.subr.bf16.mxu1 %v3306_v9 }
 0xc14   :  { %3328 = vmatpush1.bf16.msra.mxu1 %v3305_v1 }
 0xc17   :  { %3346 = vmatmul.mubr.bf16.vlgmr.msra.gmra.mrb[152].mxu1 %v3290_v10 }
 0xcea   :  { %v3347_v40 = vpop.f32.mrb[152].mxu1 }
 0xceb   :  { %v3348_v31 = vadd.f32 %v3347_v40, %v3311_v4  ;;  %v3349_v15 = vpop.f32.mrb[153].mxu1 }
 0xcec   :  { %v3350_v19 = vadd.f32 %v3349_v15, %v3311_v4  ;;  %v3351_v30 = vpop.f32.mrb[154].mxu1 }
 0xced   :  { %v3354_v11 = vsel %vm1960_vm8, %v3348_v31, -inf  ;;  %v3352_v36 = vpop.f32.mrb[155].mxu1 }
 0xcee   :  { %v3355_v41 = vrot.slane %v3354_v11, 4  ;;  %v3361_v47 = vsel %vm1960_vm8, %v3350_v19, -inf }
 0xcef   :  { %v3362_v44 = vrot.slane %v3361_v47, 4 }
 0xcf0   :  { %v3356_v3 = vmax.f32 %v3354_v11, %v3355_v41 }
 0xcf1   :  { %v3363_v13 = vmax.f32 %v3361_v47, %v3362_v44 }
 0xcf2   :  { %v3357_v2 = vrot.slane %v3356_v3, 2 }
 0xcf3   :  { %v3364_v23 = vrot.slane %v3363_v13, 2 }
 0xcf4   :  { %v3358_v50 = vmax.f32 %v3356_v3, %v3357_v2 }
 0xcf5   :  { %v3365_v48 = vmax.f32 %v3363_v13, %v3364_v23 }
 0xcf6   :  { %v3359_v6 = vrot.slane %v3358_v50, 1 }
 0xcf7   :  { %v3366_v63 = vrot.slane %v3365_v48, 1 }
 0xcf8   :  { %v3360_v56 = vmax.f32 %v3358_v50, %v3359_v6 }
 0xcf9   :  { %v3367_v26 = vmax.f32 %v3365_v48, %v3366_v63 }
 0xcfa   :  { %v3368_v42 = vsub.f32 %v3348_v31, %v3360_v56 }
 0xcfb   :  { %v3369_v53 = vsub.f32 %v3350_v19, %v3367_v26 }
 0xcfc   :  { %v3370_v46 = vmul.f32 1.442695, %v3368_v42 }
 0xcfd   :  { %v3372_v24 = vmul.f32 1.442695, %v3369_v53 }
 0xcfe   :  { %3883 = vpow2.f32 %v3370_v46 }
 0xcff   :  { %3885 = vpow2.f32 %v3372_v24 }
 0xd08   :  { %v3884_v29 = vpop.eup %3883 }
 0xd09   :  { %v3886_v43 = vpop.eup %3885  ;;  %v3374_v34 = vsel %vm1960_vm8, %v3884_v29, 0.0 }
 0xd0a   :  { %v3375_v45 = vrot.slane %v3374_v34, 4  ;;  %v3381_v18 = vsel %vm1960_vm8, %v3886_v43, 0.0 }
 0xd0b   :  { %v3382_v49 = vrot.slane %v3381_v18, 4 }
 0xd0c   :  { %v3376_v35 = vadd.f32 %v3375_v45, %v3374_v34 }
 0xd0d   :  { %v3383_v52 = vadd.f32 %v3382_v49, %v3381_v18 }
 0xd0e   :  { %v3377_v7 = vrot.slane %v3376_v35, 2 }
 0xd0f   :  { %v3384_v61 = vrot.slane %v3383_v52, 2 }
 0xd10   :  { %v3378_v62 = vadd.f32 %v3377_v7, %v3376_v35 }
 0xd11   :  { %v3385_v16 = vadd.f32 %v3384_v61, %v3383_v52 }
 0xd12   :  { %v3379_v20 = vrot.slane %v3378_v62, 1 }
 0xd13   :  { %v3386_v38 = vrot.slane %v3385_v16, 1 }
 0xd14   :  { %v3380_v51 = vadd.f32 %v3379_v20, %v3378_v62 }
 0xd15   :  { %v3387_v27 = vadd.f32 %v3386_v38, %v3385_v16 }
 0xd16   :  { %3887 = vlog2.f32 %v3380_v51 }
 0xd17   :  { %3889 = vlog2.f32 %v3387_v27 }
 0xd20   :  { %v3888_v55 = vpop.eup %3887 }
 0xd21   :  { %v3890_v33 = vpop.eup %3889  ;;  %v3389_v22 = vmul.f32 0.6931472, %v3888_v55 }
 0xd22   :  { %v3391_v17 = vmul.f32 0.6931472, %v3890_v33 }
 0xd23   :  { %v3392_v28 = vsub.f32 %v3368_v42, %v3389_v22 }
 0xd24   :  { %v3393_v37 = vsub.f32 %v3369_v53, %v3391_v17 }
 0xd26   :  { %v3396_v57 = vcombine.low %v3392_v28, %v3393_v37 }
 0xd28   :  { %3398 = vst [vmem:[#allocation2] sm:$0x77] %v3396_v57 }
 0xd29   :  { %3902 = shalt.err (!%p3899_p4)
}
 0xd2a   :  { %s3903_s11 = scalar_lea.hbm %s5310_s3, 128 }
 0xd2b   :  { %p3904_p5 = scmp.ne.s32.totalorder %s5310_s3, %s3903_s11  ;;  %p3907_p6 = scmp.lt.u32.totalorder %s3903_s11, %s5310_s3 }
 0xd2d   :  { %p3909_p7 = pnand %p3907_p6, %p3904_p5 }
 0xd2f   :  { %3912 = shalt.err (!%p3909_p7)
}
 0xd30   :  { %3408 = dma.vmem_to_hbm [thread:$0]  %s3406_s7, 128, %s5310_s3, [#allocation3]  }
 0xd31   :  { %3913 = dma.done.wait [#allocation3], 128  }
 0xd32   :  { %3914 = vsyncadd [#allocation3], 4294967168 }
 0xd33   :  { %3412 = vsyncpa [#allocation3], 1 }

</bundles_post_ra>
